<compile_context>
chip_gen: v7x
topology: tpu7x:2x2x1
jax: 0.10.0
libtpu: 0.0.40
codegen_flags: <defaults>
</compile_context>

<pallas_src>
import functools

import jax
import jax.numpy as jnp
from jax.experimental import pallas as pl
from jax.experimental.pallas import tpu as pltpu

LANE = 128
SUBLANE_BF16 = 16  # bf16 packs (16, 128) per vreg tile


def _round_up(x, m):
    return ((x + m - 1) // m) * m


def mlp_kernel(x_ref, w1_ref, b1_ref, w2_ref, b2_ref, w3_ref, b3_ref, o_ref):
    # Layer 1: Linear on the MXU (f32 accumulation) + bias/ReLU in f32 (VPU).
    h1 = jnp.dot(x_ref[...], w1_ref[...], preferred_element_type=jnp.float32)
    h1 = jnp.maximum(h1 + b1_ref[...], 0.0)
    # Layer 2: cast activations back to the weight dtype (bf16) for the MXU.
    h2 = jnp.dot(h1.astype(w2_ref.dtype), w2_ref[...],
                 preferred_element_type=jnp.float32)
    h2 = jnp.maximum(h2 + b2_ref[...], 0.0)
    # Layer 3: Linear (logits, no activation). Output slab is lane-dense (128 wide).
    out = jnp.dot(h2.astype(w3_ref.dtype), w3_ref[...],
                  preferred_element_type=jnp.float32)
    o_ref[...] = (out + b3_ref[...]).astype(o_ref.dtype)


def init_params(key, n_input, n_hidden, n_output):
    """Deterministic synthetic parameter init (shapes follow the nn.Linear layers),
    stored as (in, out) so the kernel computes x @ W + b."""
    k1, k2, k3, k4, k5, k6 = jax.random.split(key, 6)
    w1 = jax.random.normal(k1, (n_input, n_hidden[0]), jnp.float32) * 0.1
    b1 = jax.random.normal(k2, (1, n_hidden[0]), jnp.float32) * 0.1
    w2 = jax.random.normal(k3, (n_hidden[0], n_hidden[1]), jnp.float32) * 0.1
    b2 = jax.random.normal(k4, (1, n_hidden[1]), jnp.float32) * 0.1
    w3 = jax.random.normal(k5, (n_hidden[1], n_output), jnp.float32) * 0.1
    b3 = jax.random.normal(k6, (1, n_output), jnp.float32) * 0.1
    return (w1, b1, w2, b2, w3, b3)


def pad_params(params, compute_dtype=jnp.bfloat16):
    """One-time HBM layout prep: zero-pad every feature dim to a multiple of 128
    (lane-dense, no masked loads / relayouts) and cast weights to bf16.
    Biases stay f32 so bias-add/ReLU run f32 on every chip (incl. v5e)."""
    w1, b1, w2, b2, w3, b3 = params

    def pad_w(w):
        i, o = w.shape
        wp = jnp.zeros((_round_up(i, LANE), _round_up(o, LANE)), compute_dtype)
        return wp.at[:i, :o].set(w.astype(compute_dtype))

    def pad_b(b):
        o = b.shape[-1]
        bp = jnp.zeros((1, _round_up(o, LANE)), jnp.float32)
        return bp.at[:, :o].set(b.reshape(1, -1).astype(jnp.float32))

    return (pad_w(w1), pad_b(b1), pad_w(w2), pad_b(b2), pad_w(w3), pad_b(b3))


def _num_tensorcores():
    """2 TensorCores per chip on v7x, 1 on v5e/v6e. Falls back to 1."""
    try:
        kind = jax.devices()[0].device_kind.lower()
    except Exception:
        return 1
    return 2 if "v7" in kind else 1


def _choose_batch_tiling(batch, max_tm):
    """One tile per TensorCore; only re-split if a tile would exceed max_tm rows
    (keeps the x/out tiles well under the scoped VMEM limit, incl. v7x's 32 MiB)."""
    tiles = max(_num_tensorcores(), 1)
    tm = _round_up(pl.cdiv(batch, tiles), SUBLANE_BF16)
    while tm > max_tm:
        tiles *= 2
        tm = _round_up(pl.cdiv(batch, tiles), SUBLANE_BF16)
    return tm, tiles


@functools.partial(jax.jit, static_argnames=("n_output", "max_tm"))
def mlp_forward(x, padded_params, n_output, max_tm=1024):
    """3-layer MLP forward in a single fused Pallas kernel, one batch tile per TC."""
    w1, b1, w2, b2, w3, b3 = padded_params
    batch, n_input = x.shape
    n_in_p = w1.shape[0]
    n_out_p = w3.shape[1]
    compute_dtype = w1.dtype

    tm, tiles = _choose_batch_tiling(batch, max_tm)
    batch_p = tm * tiles

    # Zero-pad batch rows / feature lanes and cast to bf16. With allow_input_fusion
    # on operand 0 this pad+cast fuses into the pallas_call's input DMA instead of
    # doing an extra HBM round trip.
    xp = jnp.pad(x.astype(compute_dtype),
                 ((0, batch_p - batch), (0, n_in_p - n_input)))

    out = pl.pallas_call(
        mlp_kernel,
        out_shape=jax.ShapeDtypeStruct((batch_p, n_out_p), jnp.bfloat16),
        grid=(tiles,),
        in_specs=[
            pl.BlockSpec((tm, n_in_p), lambda i: (i, 0)),   # x: tiled over batch
            pl.BlockSpec(w1.shape, lambda i: (0, 0)),       # weights/biases:
            pl.BlockSpec(b1.shape, lambda i: (0, 0)),       # constant block index
            pl.BlockSpec(w2.shape, lambda i: (0, 0)),       # -> fetched once,
            pl.BlockSpec(b2.shape, lambda i: (0, 0)),       #    VMEM-resident
            pl.BlockSpec(w3.shape, lambda i: (0, 0)),
            pl.BlockSpec(b3.shape, lambda i: (0, 0)),
        ],
        out_specs=pl.BlockSpec((tm, n_out_p), lambda i: (i, 0)),
        compiler_params=pltpu.CompilerParams(
            # One tile per TensorCore on v7x; harmless with grid=(1,) elsewhere.
            dimension_semantics=("parallel",),
            # Fuse the pad/cast producer of x into the kernel's input DMA.
            allow_input_fusion=[True, False, False, False, False, False, False],
        ),
    )(xp, w1, b1, w2, b2, w3, b3)

    # Strip batch padding + lane padding of the logits; upcast bf16 -> f32.
    return out[:batch, :n_output].astype(jnp.float32)


def mlp_reference(x, params, compute_dtype=jnp.bfloat16):
    """Pure-JAX reference mimicking the kernel's bf16 storage of weights and
    activations (f32 accumulation, f32 bias/ReLU)."""
    w1, b1, w2, b2, w3, b3 = params
    f32 = jnp.float32
    hp = jax.lax.Precision.HIGHEST

    def q(a):  # round-trip through the compute dtype, math in f32
        return a.astype(compute_dtype).astype(f32)

    h1 = jnp.maximum(jnp.dot(q(x), q(w1), precision=hp) + b1.astype(f32), 0.0)
    h2 = jnp.maximum(jnp.dot(q(h1), q(w2), precision=hp) + b2.astype(f32), 0.0)
    return jnp.dot(q(h2), q(w3), precision=hp) + b3.astype(f32)


if __name__ == "__main__":
    # Titanic-style shapes: 11 input features, hidden = [32, 32], 2 output classes.
    # batch = 891 (full Titanic train split) exercises batch padding + per-TC tiling.
    batch = 891
    n_input = 11
    n_hidden = (32, 32)  # stand-in for wandb.config.n_hidden_unit_list
    n_output = 2

    key = jax.random.PRNGKey(0)
    k_x, k_p = jax.random.split(key)
    x = jax.random.normal(k_x, (batch, n_input), jnp.float32)
    params = init_params(k_p, n_input, n_hidden, n_output)
    padded_params = pad_params(params, compute_dtype=jnp.bfloat16)

    out = mlp_forward(x, padded_params, n_output)
    out = jax.block_until_ready(out)

    ref = mlp_reference(x, params, compute_dtype=jnp.bfloat16)
    assert out.shape == (batch, n_output)
    max_err = float(jnp.max(jnp.abs(out - ref)))
    assert jnp.allclose(out, ref, atol=2e-2, rtol=2e-2), max_err

    print("KERNEL_OK")
</pallas_src>

<mosaic_0001>
module attributes {stable_mosaic.version = 11 : i64} {
  func.func @mlp_kernel(%arg0: i32, %arg1: memref<896x128xbf16, #tpu.memory_space<vmem>>, %arg2: memref<128x128xbf16, #tpu.memory_space<vmem>>, %arg3: memref<1x128xf32, #tpu.memory_space<vmem>>, %arg4: memref<128x128xbf16, #tpu.memory_space<vmem>>, %arg5: memref<1x128xf32, #tpu.memory_space<vmem>>, %arg6: memref<128x128xbf16, #tpu.memory_space<vmem>>, %arg7: memref<1x128xf32, #tpu.memory_space<vmem>>, %arg8: memref<896x128xbf16, #tpu.memory_space<vmem>>) attributes {dimension_semantics = [#tpu.dimension_semantics<parallel>], iteration_bounds = array<i64: 1>, scalar_prefetch = 0 : i64, scratch_operands = 0 : i64, tpu.core_type = #tpu.core_type<tc>, window_params = [{transform_indices = @transform_0, window_bounds = array<i64: 896, 128>}, {pipeline_mode = #tpu.pipeline_mode<synchronous>, transform_indices = @transform_1, window_bounds = array<i64: 128, 128>}, {pipeline_mode = #tpu.pipeline_mode<synchronous>, transform_indices = @transform_2, window_bounds = array<i64: 1, 128>}, {pipeline_mode = #tpu.pipeline_mode<synchronous>, transform_indices = @transform_3, window_bounds = array<i64: 128, 128>}, {pipeline_mode = #tpu.pipeline_mode<synchronous>, transform_indices = @transform_4, window_bounds = array<i64: 1, 128>}, {pipeline_mode = #tpu.pipeline_mode<synchronous>, transform_indices = @transform_5, window_bounds = array<i64: 128, 128>}, {pipeline_mode = #tpu.pipeline_mode<synchronous>, transform_indices = @transform_6, window_bounds = array<i64: 1, 128>}, {transform_indices = @transform_7, window_bounds = array<i64: 896, 128>}]} {
    %c0 = arith.constant 0 : index
    %c0_0 = arith.constant 0 : index
    %0 = vector.load %arg1[%c0, %c0_0] : memref<896x128xbf16, #tpu.memory_space<vmem>>, vector<896x128xbf16>
    %c0_1 = arith.constant 0 : index
    %c0_2 = arith.constant 0 : index
    %1 = vector.load %arg2[%c0_1, %c0_2] : memref<128x128xbf16, #tpu.memory_space<vmem>>, vector<128x128xbf16>
    %cst = arith.constant dense<0.000000e+00> : vector<896x128xf32>
    %2 = tpu.matmul %0, %1, %cst {dimension_numbers = #tpu.dot_dimension_numbers<[1], [0], [0], [1], [0, 0, 1, 1], [], []>} : vector<896x128xbf16>, vector<128x128xbf16>, vector<896x128xf32> -> vector<896x128xf32>
    %c0_3 = arith.constant 0 : index
    %c0_4 = arith.constant 0 : index
    %3 = vector.load %arg3[%c0_3, %c0_4] : memref<1x128xf32, #tpu.memory_space<vmem>>, vector<1x128xf32>
    %4 = vector.broadcast %3 : vector<1x128xf32> to vector<896x128xf32>
    %5 = arith.addf %2, %4 : vector<896x128xf32>
    %cst_5 = arith.constant 0.000000e+00 : f32
    %6 = vector.broadcast %cst_5 : f32 to vector<896x128xf32>
    %7 = arith.maximumf %5, %6 : vector<896x128xf32>
    %8 = arith.truncf %7 : vector<896x128xf32> to vector<896x128xbf16>
    %c0_6 = arith.constant 0 : index
    %c0_7 = arith.constant 0 : index
    %9 = vector.load %arg4[%c0_6, %c0_7] : memref<128x128xbf16, #tpu.memory_space<vmem>>, vector<128x128xbf16>
    %cst_8 = arith.constant dense<0.000000e+00> : vector<896x128xf32>
    %10 = tpu.matmul %8, %9, %cst_8 {dimension_numbers = #tpu.dot_dimension_numbers<[1], [0], [0], [1], [0, 0, 1, 1], [], []>} : vector<896x128xbf16>, vector<128x128xbf16>, vector<896x128xf32> -> vector<896x128xf32>
    %c0_9 = arith.constant 0 : index
    %c0_10 = arith.constant 0 : index
    %11 = vector.load %arg5[%c0_9, %c0_10] : memref<1x128xf32, #tpu.memory_space<vmem>>, vector<1x128xf32>
    %12 = vector.broadcast %11 : vector<1x128xf32> to vector<896x128xf32>
    %13 = arith.addf %10, %12 : vector<896x128xf32>
    %cst_11 = arith.constant 0.000000e+00 : f32
    %14 = vector.broadcast %cst_11 : f32 to vector<896x128xf32>
    %15 = arith.maximumf %13, %14 : vector<896x128xf32>
    %16 = arith.truncf %15 : vector<896x128xf32> to vector<896x128xbf16>
    %c0_12 = arith.constant 0 : index
    %c0_13 = arith.constant 0 : index
    %17 = vector.load %arg6[%c0_12, %c0_13] : memref<128x128xbf16, #tpu.memory_space<vmem>>, vector<128x128xbf16>
    %cst_14 = arith.constant dense<0.000000e+00> : vector<896x128xf32>
    %18 = tpu.matmul %16, %17, %cst_14 {dimension_numbers = #tpu.dot_dimension_numbers<[1], [0], [0], [1], [0, 0, 1, 1], [], []>} : vector<896x128xbf16>, vector<128x128xbf16>, vector<896x128xf32> -> vector<896x128xf32>
    %c0_15 = arith.constant 0 : index
    %c0_16 = arith.constant 0 : index
    %19 = vector.load %arg7[%c0_15, %c0_16] : memref<1x128xf32, #tpu.memory_space<vmem>>, vector<1x128xf32>
    %20 = vector.broadcast %19 : vector<1x128xf32> to vector<896x128xf32>
    %21 = arith.addf %18, %20 : vector<896x128xf32>
    %22 = arith.truncf %21 : vector<896x128xf32> to vector<896x128xbf16>
    %c0_17 = arith.constant 0 : index
    %c0_18 = arith.constant 0 : index
    %23 = vector.load %arg8[%c0_17, %c0_18] : memref<896x128xbf16, #tpu.memory_space<vmem>>, vector<896x128xbf16>
    tpu.vector_store %arg8[%c0_17, %c0_18], %22 {strides = array<i32>} : memref<896x128xbf16, #tpu.memory_space<vmem>>, vector<896x128xbf16>,
    return
  }
  func.func @transform_0(%arg0: i32) -> (i32, i32) {
    %c0_i32 = arith.constant 0 : i32
    %c0_i32_0 = arith.constant 0 : i32
    return %arg0, %c0_i32 : i32, i32
  }
  func.func @transform_1(%arg0: i32) -> (i32, i32) {
    %c0_i32 = arith.constant 0 : i32
    %c0_i32_0 = arith.constant 0 : i32
    %c0_i32_1 = arith.constant 0 : i32
    return %c0_i32, %c0_i32_0 : i32, i32
  }
  func.func @transform_2(%arg0: i32) -> (i32, i32) {
    %c0_i32 = arith.constant 0 : i32
    %c0_i32_0 = arith.constant 0 : i32
    %c0_i32_1 = arith.constant 0 : i32
    return %c0_i32, %c0_i32_0 : i32, i32
  }
  func.func @transform_3(%arg0: i32) -> (i32, i32) {
    %c0_i32 = arith.constant 0 : i32
    %c0_i32_0 = arith.constant 0 : i32
    %c0_i32_1 = arith.constant 0 : i32
    return %c0_i32, %c0_i32_0 : i32, i32
  }
  func.func @transform_4(%arg0: i32) -> (i32, i32) {
    %c0_i32 = arith.constant 0 : i32
    %c0_i32_0 = arith.constant 0 : i32
    %c0_i32_1 = arith.constant 0 : i32
    return %c0_i32, %c0_i32_0 : i32, i32
  }
  func.func @transform_5(%arg0: i32) -> (i32, i32) {
    %c0_i32 = arith.constant 0 : i32
    %c0_i32_0 = arith.constant 0 : i32
    %c0_i32_1 = arith.constant 0 : i32
    return %c0_i32, %c0_i32_0 : i32, i32
  }
  func.func @transform_6(%arg0: i32) -> (i32, i32) {
    %c0_i32 = arith.constant 0 : i32
    %c0_i32_0 = arith.constant 0 : i32
    %c0_i32_1 = arith.constant 0 : i32
    return %c0_i32, %c0_i32_0 : i32, i32
  }
  func.func @transform_7(%arg0: i32) -> (i32, i32) {
    %c0_i32 = arith.constant 0 : i32
    %c0_i32_0 = arith.constant 0 : i32
    return %arg0, %c0_i32 : i32, i32
  }
}

</mosaic_0001>

<bundles_post_ra>
// kernel: mlp_forward.2
= control target key start
LH: loop header
LB: loop body
LE: loop exit
PB: predicated region body
PF: predicated region fallthrough
CT: control target
= control target key end

     0   :  { %s8874_s0 = inlined_call_operand.vmem [shape: bf16[128,128], index: 0, kind: input, shape index: {}]   ;;  %s8875_s1 = inlined_call_operand.vmem [shape: f32[1,128], index: 1, kind: input, shape index: {}]   ;;  %s8876_s2 = inlined_call_operand.vmem [shape: bf16[128,128], index: 2, kind: input, shape index: {}]   ;;  %s8877_s3 = inlined_call_operand.vmem [shape: f32[1,128], index: 3, kind: input, shape index: {}]   ;;  %s8878_s4 = inlined_call_operand.vmem [shape: bf16[128,128], index: 4, kind: input, shape index: {}]   ;;  %s8879_s5 = inlined_call_operand.vmem [shape: f32[1,128], index: 5, kind: input, shape index: {}]   ;;  %s8880_s6 = inlined_call_operand.vmem [shape: bf16[891,11], index: 6, kind: input, shape index: {}]   ;;  %s8881_s7 = inlined_call_operand.<no memory space> [shape: bf16[], index: 7, kind: input, shape index: {}]   ;;  %s8882_s8 = inlined_call_operand.vmem [shape: bf16[896,128], index: 8, kind: output, shape index: {}]  }
   0x1   :  { %v13_v0 = vstv %s8881_s7 }
   0x2   :  { %v7534_v1 = vunpack.i.l.bf16 %v13_v0 }
   0x3   :  { %v7405_v2 = vld [vmem:[%s8874_s0] sm:$0xff]   ;;  %v49_v3 = vlaneseq  ;;  %v7406_v4 = vld [vmem:[%s8874_s0 + $0x8] sm:$0xff]   ;;  %v7407_v5 = vld [vmem:[%s8874_s0 + $0x10] sm:$0xff]   ;;  %v7485_v25 = vmov 0.0  }
   0x4   :  { %7004 = vmatprep.subr.bf16.mxu0 %v7405_v2  ;;  %7388 = vmatprep.subr.bf16.mxu1 %v7405_v2  ;;  %v7551_v7 = vld [vmem:[%s8874_s0 + $0x18] sm:$0xff]   ;;  %v41_v8 = vld [vmem:[%s8880_s6] sm:$0xff]   ;;  %v6060_v9 = vld [vmem:[%s8880_s6 + $0x8] sm:$0xff]  }
   0x5   :  { %7005 = vmatpush3.bf16.msra.mxu0 %v7405_v2  ;;  %7396 = vmatpush3.bf16.msra.mxu1 %v7405_v2  ;;  %v7546_v6 = vand.u32 127, %v49_v3  ;;  %v6062_v10 = vld [vmem:[%s8880_s6 + $0x10] sm:$0xff]   ;;  %v42_v11 = vunpack.c.l.bf16 %v41_v8  ;;  %v68_v12 = vunpack.c.h.bf16 %v41_v8  ;;  %v95_v13 = vunpack.c.l.bf16 %v6060_v9  ;;  %v6064_v15 = vld [vmem:[%s8880_s6 + $0x18] sm:$0xff]   ;;  %v7582_v24 = vld [vmem:[%s8874_s0 + $0x20] sm:$0xff]  }
   0x6   :  { %7006 = vmatprep.subr.bf16.mxu0 %v7406_v4  ;;  %7389 = vmatprep.subr.bf16.mxu1 %v7406_v4  ;;  %v122_v14 = vunpack.c.h.bf16 %v6060_v9  ;;  %v149_v16 = vunpack.c.l.bf16 %v6062_v10  ;;  %v176_v17 = vunpack.c.h.bf16 %v6062_v10  ;;  %v203_v18 = vunpack.c.l.bf16 %v6064_v15  ;;  %v6066_v30 = vld [vmem:[%s8880_s6 + $0x20] sm:$0xff]   ;;  %v6068_v31 = vld [vmem:[%s8880_s6 + $0x28] sm:$0xff]   ;;  %v6070_v36 = vld [vmem:[%s8880_s6 + $0x30] sm:$0xff]  }
   0x7   :  { %vm52_vm0 = vcmp.lt.s32.totalorder %v7546_v6, 11  ;;  %v230_v19 = vunpack.c.h.bf16 %v6064_v15  ;;  %v6072_v37 = vld [vmem:[%s8880_s6 + $0x38] sm:$0xff]   ;;  %v257_v42 = vunpack.c.l.bf16 %v6066_v30  ;;  %v284_v43 = vunpack.c.h.bf16 %v6066_v30  ;;  %v7622_v46 = vld [vmem:[%s8874_s0 + $0x28] sm:$0xff]   ;;  %v6074_v55 = vld [vmem:[%s8880_s6 + $0x40] sm:$0xff]  }
   0x8   :  { %v53_v20 = vsel %vm52_vm0, %v42_v11, %v7534_v1  ;;  %v79_v21 = vsel %vm52_vm0, %v68_v12, %v7534_v1  ;;  %v106_v22 = vsel %vm52_vm0, %v95_v13, %v7534_v1  ;;  %v133_v23 = vsel %vm52_vm0, %v122_v14, %v7534_v1  ;;  %v6076_v60 = vld [vmem:[%s8880_s6 + $0x48] sm:$0xff]   ;;  %v7652_v61 = vld [vmem:[%s8874_s0 + $0x30] sm:$0xff]   ;;  %v7680_v11 = vld [vmem:[%s8880_s6 + $0x60] sm:$0xff]  }
   0x9   :  { %7007 = vmatpush3.bf16.msra.mxu0 %v7406_v4  ;;  %7397 = vmatpush3.bf16.msra.mxu1 %v7406_v4  ;;  %v54_v26 = vpack.c.bf16 %v7485_v25, %v53_v20  ;;  %v81_v27 = vpack.c.bf16 %v7485_v25, %v79_v21  ;;  %v108_v28 = vpack.c.bf16 %v7485_v25, %v106_v22  ;;  %v311_v44 = vunpack.c.l.bf16 %v6068_v31  ;;  %v6078_v4 = vld [vmem:[%s8880_s6 + $0x50] sm:$0xff]   ;;  %v7688_v21 = vld [vmem:[%s8874_s0 + $0x38] sm:$0xff]  }
   0xa   :  { %7008 = vmatprep.subr.bf16.mxu0 %v7407_v5  ;;  %7390 = vmatprep.subr.bf16.mxu1 %v7407_v5  ;;  %v135_v29 = vpack.c.bf16 %v7485_v25, %v133_v23  ;;  %v160_v32 = vsel %vm52_vm0, %v149_v16, %v7534_v1  ;;  %v187_v33 = vsel %vm52_vm0, %v176_v17, %v7534_v1  ;;  %v338_v45 = vunpack.c.h.bf16 %v6068_v31  ;;  %v6084_v31 = vld [vmem:[%s8880_s6 + $0x68] sm:$0xff]  }
   0xb   :  { %v214_v34 = vsel %vm52_vm0, %v203_v18, %v7534_v1  ;;  %v241_v35 = vsel %vm52_vm0, %v230_v19, %v7534_v1  ;;  %56 = vst [vmem:[#allocation7] sm:$0xf] %v54_v26  ;;  %83 = vst [vmem:[#allocation7 + $0x4] sm:$0xf] %v81_v27  ;;  %v162_v38 = vpack.c.bf16 %v7485_v25, %v160_v32  ;;  %v365_v47 = vunpack.c.l.bf16 %v6070_v36 }
   0xc   :  { %110 = vst [vmem:[#allocation7 + $0x8] sm:$0xf] %v108_v28  ;;  %137 = vst [vmem:[#allocation7 + $0xc] sm:$0xf] %v135_v29  ;;  %v189_v39 = vpack.c.bf16 %v7485_v25, %v187_v33  ;;  %v216_v40 = vpack.c.bf16 %v7485_v25, %v214_v34  ;;  %v243_v41 = vpack.c.bf16 %v7485_v25, %v241_v35  ;;  %v392_v48 = vunpack.c.h.bf16 %v6070_v36  ;;  %v6086_v36 = vld [vmem:[%s8880_s6 + $0x70] sm:$0xff]  }
   0xd   :  { %7009 = vmatpush3.bf16.msra.mxu0 %v7407_v5  ;;  %7398 = vmatpush3.bf16.msra.mxu1 %v7407_v5  ;;  %164 = vst [vmem:[#allocation7 + $0x10] sm:$0xf] %v162_v38  ;;  %v419_v49 = vunpack.c.l.bf16 %v6072_v37  ;;  %v446_v50 = vunpack.c.h.bf16 %v6072_v37  ;;  %v268_v51 = vsel %vm52_vm0, %v257_v42, %v7534_v1  ;;  %v295_v52 = vsel %vm52_vm0, %v284_v43, %v7534_v1  ;;  %v6080_v5 = vld [vmem:[%s8880_s6 + $0x58] sm:$0xff]  }
   0xe   :  { %7010 = vmatprep.subr.bf16.mxu0 %v7551_v7  ;;  %7391 = vmatprep.subr.bf16.mxu1 %v7551_v7  ;;  %191 = vst [vmem:[#allocation7 + $0x14] sm:$0xf] %v189_v39  ;;  %218 = vst [vmem:[#allocation7 + $0x18] sm:$0xf] %v216_v40  ;;  %v322_v53 = vsel %vm52_vm0, %v311_v44, %v7534_v1  ;;  %v349_v54 = vsel %vm52_vm0, %v338_v45, %v7534_v1  ;;  %v473_v13 = vunpack.c.l.bf16 %v6074_v55 }
   0xf   :  { %245 = vst [vmem:[#allocation7 + $0x1c] sm:$0xf] %v243_v41  ;;  %v270_v56 = vpack.c.bf16 %v7485_v25, %v268_v51  ;;  %v297_v57 = vpack.c.bf16 %v7485_v25, %v295_v52  ;;  %v324_v58 = vpack.c.bf16 %v7485_v25, %v322_v53  ;;  %v351_v59 = vpack.c.bf16 %v7485_v25, %v349_v54  ;;  %v6088_v41 = vld [vmem:[%s8880_s6 + $0x78] sm:$0xff]   ;;  %v6092_v51 = vld [vmem:[%s8880_s6 + $0x88] sm:$0xff]  }
  0x10   :  { %v376_v62 = vsel %vm52_vm0, %v365_v47, %v7534_v1  ;;  %v403_v63 = vsel %vm52_vm0, %v392_v48, %v7534_v1  ;;  %v430_v0 = vsel %vm52_vm0, %v419_v49, %v7534_v1  ;;  %v457_v2 = vsel %vm52_vm0, %v446_v50, %v7534_v1 }
  0x11   :  { %7011 = vmatpush3.bf16.msra.mxu0 %v7551_v7  ;;  %7399 = vmatpush3.bf16.msra.mxu1 %v7551_v7  ;;  %272 = vst [vmem:[#allocation7 + $0x20] sm:$0xf] %v270_v56  ;;  %299 = vst [vmem:[#allocation7 + $0x24] sm:$0xf] %v297_v57  ;;  %v378_v7 = vpack.c.bf16 %v7485_v25, %v376_v62  ;;  %v405_v8 = vpack.c.bf16 %v7485_v25, %v403_v63  ;;  %v500_v14 = vunpack.c.h.bf16 %v6074_v55  ;;  %v7758_v56 = vld [vmem:[%s8876_s2] sm:$0xff]  }
  0x12   :  { %7012 = vmatprep.subr.bf16.mxu0 %v7582_v24  ;;  %7392 = vmatprep.subr.bf16.mxu1 %v7582_v24  ;;  %326 = vst [vmem:[#allocation7 + $0x28] sm:$0xf] %v324_v58  ;;  %353 = vst [vmem:[#allocation7 + $0x2c] sm:$0xf] %v351_v59  ;;  %v432_v9 = vpack.c.bf16 %v7485_v25, %v430_v0  ;;  %v459_v10 = vpack.c.bf16 %v7485_v25, %v457_v2  ;;  %v7413_v12 = vld [vmem:[#allocation7] sm:$0xff]   ;;  %v527_v15 = vunpack.c.l.bf16 %v6076_v60 }
  0x13   :  { %v554_v16 = vunpack.c.h.bf16 %v6076_v60  ;;  %380 = vst [vmem:[#allocation7 + $0x30] sm:$0xf] %v378_v7  ;;  %407 = vst [vmem:[#allocation7 + $0x34] sm:$0xf] %v405_v8  ;;  %v581_v17 = vunpack.c.l.bf16 %v6078_v4  ;;  %v608_v18 = vunpack.c.h.bf16 %v6078_v4  ;;  %v635_v19 = vunpack.c.l.bf16 %v6080_v5  ;;  %7020 = vmatprep.mubr.bf16.mxu0 %v7413_v12  ;;  %v7414_v57 = vld [vmem:[#allocation7 + $0x8] sm:$0xff]   ;;  %v6096_v7 = vld [vmem:[%s8880_s6 + $0x98] sm:$0xff]  }
  0x14   :  { %434 = vst [vmem:[#allocation7 + $0x38] sm:$0xf] %v432_v9  ;;  %461 = vst [vmem:[#allocation7 + $0x3c] sm:$0xf] %v459_v10  ;;  %v662_v20 = vunpack.c.h.bf16 %v6080_v5  ;;  %v484_v22 = vsel %vm52_vm0, %v473_v13, %v7534_v1  ;;  %v511_v23 = vsel %vm52_vm0, %v500_v14, %v7534_v1  ;;  %v689_v26 = vunpack.c.l.bf16 %v7680_v11  ;;  %v6094_v5 = vld [vmem:[%s8880_s6 + $0x90] sm:$0xff]  }
  0x15   :  { %7013 = vmatpush3.bf16.msra.mxu0 %v7582_v24  ;;  %7400 = vmatpush3.bf16.msra.mxu1 %v7582_v24  ;;  %v538_v24 = vsel %vm52_vm0, %v527_v15, %v7534_v1  ;;  %v486_v27 = vpack.c.bf16 %v7485_v25, %v484_v22  ;;  %v513_v28 = vpack.c.bf16 %v7485_v25, %v511_v23  ;;  %v716_v44 = vunpack.c.h.bf16 %v7680_v11 }
  0x16   :  { %7014 = vmatprep.subr.bf16.mxu0 %v7622_v46  ;;  %7393 = vmatprep.subr.bf16.mxu1 %v7622_v46  ;;  %v540_v29 = vpack.c.bf16 %v7485_v25, %v538_v24  ;;  %v565_v30 = vsel %vm52_vm0, %v554_v16, %v7534_v1  ;;  %v592_v33 = vsel %vm52_vm0, %v581_v17, %v7534_v1  ;;  %v743_v45 = vunpack.c.l.bf16 %v6084_v31 }
  0x17   :  { %v567_v32 = vpack.c.bf16 %v7485_v25, %v565_v30  ;;  %v619_v34 = vsel %vm52_vm0, %v608_v18, %v7534_v1  ;;  %v646_v35 = vsel %vm52_vm0, %v635_v19, %v7534_v1  ;;  %488 = vst [vmem:[#allocation7 + $0x40] sm:$0xf] %v486_v27  ;;  %515 = vst [vmem:[#allocation7 + $0x44] sm:$0xf] %v513_v28  ;;  %v770_v48 = vunpack.c.h.bf16 %v6084_v31  ;;  %v6102_v31 = vld [vmem:[%s8880_s6 + $0xb0] sm:$0xff]  }
  0x18   :  { %542 = vst [vmem:[#allocation7 + $0x48] sm:$0xf] %v540_v29  ;;  %v594_v37 = vpack.c.bf16 %v7485_v25, %v592_v33  ;;  %v621_v38 = vpack.c.bf16 %v7485_v25, %v619_v34  ;;  %v648_v39 = vpack.c.bf16 %v7485_v25, %v646_v35  ;;  %v673_v40 = vsel %vm52_vm0, %v662_v20, %v7534_v1  ;;  %v6098_v20 = vld [vmem:[%s8880_s6 + $0xa0] sm:$0xff]  }
  0x19   :  { %7015 = vmatpush3.bf16.msra.mxu0 %v7622_v46  ;;  %7401 = vmatpush3.bf16.msra.mxu1 %v7622_v46  ;;  %569 = vst [vmem:[#allocation7 + $0x4c] sm:$0xf] %v567_v32  ;;  %v675_v42 = vpack.c.bf16 %v7485_v25, %v673_v40  ;;  %v700_v43 = vsel %vm52_vm0, %v689_v26, %v7534_v1  ;;  %v6090_v46 = vld [vmem:[%s8880_s6 + $0x80] sm:$0xff]   ;;  %v797_v49 = vunpack.c.l.bf16 %v6086_v36  ;;  %v824_v50 = vunpack.c.h.bf16 %v6086_v36  ;;  %v6100_v26 = vld [vmem:[%s8880_s6 + $0xa8] sm:$0xff]   ;;  %v7416_v36 = vld [vmem:[#allocation7 + $0x18] sm:$0xff]  }
  0x1a   :  { %7016 = vmatprep.subr.bf16.mxu0 %v7652_v61  ;;  %7394 = vmatprep.subr.bf16.mxu1 %v7652_v61  ;;  %596 = vst [vmem:[#allocation7 + $0x50] sm:$0xf] %v594_v37  ;;  %623 = vst [vmem:[#allocation7 + $0x54] sm:$0xf] %v621_v38  ;;  %v702_v47 = vpack.c.bf16 %v7485_v25, %v700_v43  ;;  %v727_v52 = vsel %vm52_vm0, %v716_v44, %v7534_v1  ;;  %v851_v54 = vunpack.c.l.bf16 %v6088_v41 }
  0x1b   :  { %650 = vst [vmem:[#allocation7 + $0x58] sm:$0xf] %v648_v39  ;;  %677 = vst [vmem:[#allocation7 + $0x5c] sm:$0xf] %v675_v42  ;;  %v754_v53 = vsel %vm52_vm0, %v743_v45, %v7534_v1  ;;  %v878_v55 = vunpack.c.h.bf16 %v6088_v41  ;;  %v729_v58 = vpack.c.bf16 %v7485_v25, %v727_v52  ;;  %v781_v60 = vsel %vm52_vm0, %v770_v48, %v7534_v1  ;;  %v6104_v41 = vld [vmem:[%s8880_s6 + $0xb8] sm:$0xff]   ;;  %v7417_v42 = vld [vmem:[#allocation7 + $0x20] sm:$0xff]  }
  0x1c   :  { %704 = vst [vmem:[#allocation7 + $0x60] sm:$0xf] %v702_v47  ;;  %v756_v59 = vpack.c.bf16 %v7485_v25, %v754_v53  ;;  %v808_v62 = vsel %vm52_vm0, %v797_v49, %v7534_v1  ;;  %v783_v63 = vpack.c.bf16 %v7485_v25, %v781_v60  ;;  %v835_v2 = vsel %vm52_vm0, %v824_v50, %v7534_v1 }
  0x1d   :  { %7017 = vmatpush3.bf16.msra.mxu0 %v7652_v61  ;;  %7402 = vmatpush3.bf16.msra.mxu1 %v7652_v61  ;;  %v7415_v61 = vld [vmem:[#allocation7 + $0x10] sm:$0xff]   ;;  %v810_v0 = vpack.c.bf16 %v7485_v25, %v808_v62  ;;  %v862_v4 = vsel %vm52_vm0, %v851_v54, %v7534_v1  ;;  %731 = vst [vmem:[#allocation7 + $0x64] sm:$0xf] %v729_v58  ;;  %v905_v11 = vunpack.c.l.bf16 %v6090_v46  ;;  %v932_v13 = vunpack.c.h.bf16 %v6090_v46 }
  0x1e   :  { %7018 = vmatprep.subr.bf16.mxu0 %v7688_v21  ;;  %7395 = vmatprep.subr.bf16.mxu1 %v7688_v21  ;;  %758 = vst [vmem:[#allocation7 + $0x68] sm:$0xf] %v756_v59  ;;  %v837_v8 = vpack.c.bf16 %v7485_v25, %v835_v2  ;;  %v864_v9 = vpack.c.bf16 %v7485_v25, %v862_v4  ;;  %785 = vst [vmem:[#allocation7 + $0x6c] sm:$0xf] %v783_v63  ;;  %v959_v14 = vunpack.c.l.bf16 %v6092_v51 }
  0x1f   :  { %v889_v10 = vsel %vm52_vm0, %v878_v55, %v7534_v1  ;;  %812 = vst [vmem:[#allocation7 + $0x70] sm:$0xf] %v810_v0  ;;  %v986_v15 = vunpack.c.h.bf16 %v6092_v51  ;;  %v916_v16 = vsel %vm52_vm0, %v905_v11, %v7534_v1  ;;  %v1013_v17 = vunpack.c.l.bf16 %v6094_v5  ;;  %v6106_v51 = vld [vmem:[%s8880_s6 + $0xc0] sm:$0xff]  }
  0x20   :  { %v891_v12 = vpack.c.bf16 %v7485_v25, %v889_v10  ;;  %839 = vst [vmem:[#allocation7 + $0x74] sm:$0xf] %v837_v8  ;;  %866 = vst [vmem:[#allocation7 + $0x78] sm:$0xf] %v864_v9  ;;  %v1040_v18 = vunpack.c.h.bf16 %v6094_v5  ;;  %v1067_v19 = vunpack.c.l.bf16 %v6096_v7  ;;  %v943_v22 = vsel %vm52_vm0, %v932_v13, %v7534_v1  ;;  %v6112_v10 = vld [vmem:[%s8880_s6 + $0xd8] sm:$0xff]  }
  0x21   :  { %7019 = vmatpush3.bf16.msra.mxu0 %v7688_v21  ;;  %7403 = vmatpush3.bf16.msra.mxu1 %v7688_v21  ;;  %v918_v21 = vpack.c.bf16 %v7485_v25, %v916_v16  ;;  %v970_v23 = vsel %vm52_vm0, %v959_v14, %v7534_v1  ;;  %v997_v24 = vsel %vm52_vm0, %v986_v15, %v7534_v1  ;;  %v1094_v35 = vunpack.c.h.bf16 %v6096_v7  ;;  %v6114_v15 = vld [vmem:[%s8880_s6 + $0xe0] sm:$0xff]   ;;  %v6116_v16 = vld [vmem:[%s8880_s6 + $0xe8] sm:$0xff]  }
  0x22   :  { %7132 = vmatprep.subr.bf16.mxu1 %v7758_v56  ;;  %893 = vst [vmem:[#allocation7 + $0x7c] sm:$0xf] %v891_v12  ;;  %v945_v27 = vpack.c.bf16 %v7485_v25, %v943_v22  ;;  %v972_v28 = vpack.c.bf16 %v7485_v25, %v970_v23  ;;  %v999_v29 = vpack.c.bf16 %v7485_v25, %v997_v24  ;;  %v1121_v39 = vunpack.c.l.bf16 %v6098_v20  ;;  %v7419_v22 = vld [vmem:[#allocation7 + $0x30] sm:$0xff]  }
  0x23   :  { %v1024_v30 = vsel %vm52_vm0, %v1013_v17, %v7534_v1  ;;  %920 = vst [vmem:[#allocation7 + $0x80] sm:$0xf] %v918_v21  ;;  %v1051_v33 = vsel %vm52_vm0, %v1040_v18, %v7534_v1  ;;  %v1078_v34 = vsel %vm52_vm0, %v1067_v19, %v7534_v1  ;;  %v1148_v40 = vunpack.c.h.bf16 %v6098_v20  ;;  %v7418_v17 = vld [vmem:[#allocation7 + $0x28] sm:$0xff]  }
  0x24   :  { %7021 = vmatmul.mubr.bf16.vlgmr.msra.gmra.mrb[0].mxu0 %v7414_v57  ;;  %v1026_v32 = vpack.c.bf16 %v7485_v25, %v1024_v30  ;;  %947 = vst [vmem:[#allocation7 + $0x84] sm:$0xf] %v945_v27  ;;  %974 = vst [vmem:[#allocation7 + $0x88] sm:$0xf] %v972_v28  ;;  %v1053_v37 = vpack.c.bf16 %v7485_v25, %v1051_v33  ;;  %v1080_v38 = vpack.c.bf16 %v7485_v25, %v1078_v34  ;;  %v6108_v57 = vld [vmem:[%s8880_s6 + $0xc8] sm:$0xff]  }
  0x25   :  { %7024 = vmatprep.mubr.bf16.mxu0 %v7415_v61  ;;  %1001 = vst [vmem:[#allocation7 + $0x8c] sm:$0xf] %v999_v29  ;;  %v1105_v43 = vsel %vm52_vm0, %v1094_v35, %v7534_v1  ;;  %v1175_v44 = vunpack.c.l.bf16 %v6100_v26  ;;  %v1202_v45 = vunpack.c.h.bf16 %v6100_v26  ;;  %v1229_v46 = vunpack.c.l.bf16 %v6102_v31  ;;  %v6110_v61 = vld [vmem:[%s8880_s6 + $0xd0] sm:$0xff]  }
  0x26   :  { %1028 = vst [vmem:[#allocation7 + $0x90] sm:$0xf] %v1026_v32  ;;  %1055 = vst [vmem:[#allocation7 + $0x94] sm:$0xf] %v1053_v37  ;;  %v1107_v47 = vpack.c.bf16 %v7485_v25, %v1105_v43  ;;  %v1132_v48 = vsel %vm52_vm0, %v1121_v39, %v7534_v1  ;;  %v1159_v49 = vsel %vm52_vm0, %v1148_v40, %v7534_v1  ;;  %v1256_v50 = vunpack.c.h.bf16 %v6102_v31  ;;  %v6118_v32 = vld [vmem:[%s8880_s6 + $0xf0] sm:$0xff]  }
  0x27   :  { %1082 = vst [vmem:[#allocation7 + $0x98] sm:$0xf] %v1080_v38  ;;  %v1134_v52 = vpack.c.bf16 %v7485_v25, %v1132_v48  ;;  %v1161_v53 = vpack.c.bf16 %v7485_v25, %v1159_v49  ;;  %v1186_v54 = vsel %vm52_vm0, %v1175_v44, %v7534_v1  ;;  %v1213_v55 = vsel %vm52_vm0, %v1202_v45, %v7534_v1  ;;  %v6120_v49 = vld [vmem:[%s8880_s6 + $0xf8] sm:$0xff]  }
  0x28   :  { %1109 = vst [vmem:[#allocation7 + $0x9c] sm:$0xf] %v1107_v47  ;;  %v1188_v58 = vpack.c.bf16 %v7485_v25, %v1186_v54  ;;  %v1215_v59 = vpack.c.bf16 %v7485_v25, %v1213_v55  ;;  %v1240_v60 = vsel %vm52_vm0, %v1229_v46, %v7534_v1  ;;  %v1267_v62 = vsel %vm52_vm0, %v1256_v50, %v7534_v1  ;;  %v6122_v54 = vld [vmem:[%s8880_s6 + $0x100] sm:$0xff]   ;;  %v6124_v55 = vld [vmem:[%s8880_s6 + $0x108] sm:$0xff]  }
  0x29   :  { %1136 = vst [vmem:[#allocation7 + $0xa0] sm:$0xf] %v1134_v52  ;;  %1163 = vst [vmem:[#allocation7 + $0xa4] sm:$0xf] %v1161_v53  ;;  %v1242_v63 = vpack.c.bf16 %v7485_v25, %v1240_v60  ;;  %v1269_v0 = vpack.c.bf16 %v7485_v25, %v1267_v62  ;;  %v1283_v2 = vunpack.c.l.bf16 %v6104_v41  ;;  %v1310_v4 = vunpack.c.h.bf16 %v6104_v41 }
  0x2a   :  { %1190 = vst [vmem:[#allocation7 + $0xa8] sm:$0xf] %v1188_v58  ;;  %1217 = vst [vmem:[#allocation7 + $0xac] sm:$0xf] %v1215_v59  ;;  %v1337_v5 = vunpack.c.l.bf16 %v6106_v51  ;;  %v1364_v7 = vunpack.c.h.bf16 %v6106_v51  ;;  %v1391_v8 = vunpack.c.l.bf16 %v6108_v57  ;;  %v1418_v9 = vunpack.c.h.bf16 %v6108_v57  ;;  %v7420_v57 = vld [vmem:[#allocation7 + $0x38] sm:$0xff]  }
  0x2b   :  { %1244 = vst [vmem:[#allocation7 + $0xb0] sm:$0xf] %v1242_v63  ;;  %1271 = vst [vmem:[#allocation7 + $0xb4] sm:$0xf] %v1269_v0  ;;  %v1294_v11 = vsel %vm52_vm0, %v1283_v2, %v7534_v1  ;;  %v1321_v12 = vsel %vm52_vm0, %v1310_v4, %v7534_v1  ;;  %v1445_v13 = vunpack.c.l.bf16 %v6110_v61  ;;  %v1472_v14 = vunpack.c.h.bf16 %v6110_v61  ;;  %v6126_v61 = vld [vmem:[%s8880_s6 + $0x110] sm:$0xff]   ;;  %v7421_v63 = vld [vmem:[#allocation7 + $0x40] sm:$0xff]  }
  0x2c   :  { %7025 = vmatmul.mubr.bf16.gmra.mrb[4].mxu0 %v7416_v36  ;;  %v1296_v18 = vpack.c.bf16 %v7485_v25, %v1294_v11  ;;  %v1323_v19 = vpack.c.bf16 %v7485_v25, %v1321_v12  ;;  %v1348_v20 = vsel %vm52_vm0, %v1337_v5, %v7534_v1  ;;  %v1375_v21 = vsel %vm52_vm0, %v1364_v7, %v7534_v1 }
  0x2d   :  { %7028 = vmatprep.mubr.bf16.mxu0 %v7417_v42  ;;  %v1350_v23 = vpack.c.bf16 %v7485_v25, %v1348_v20  ;;  %v1377_v24 = vpack.c.bf16 %v7485_v25, %v1375_v21  ;;  %v1402_v26 = vsel %vm52_vm0, %v1391_v8, %v7534_v1  ;;  %v1429_v27 = vsel %vm52_vm0, %v1418_v9, %v7534_v1 }
  0x2e   :  { %1298 = vst [vmem:[#allocation7 + $0xb8] sm:$0xf] %v1296_v18  ;;  %1325 = vst [vmem:[#allocation7 + $0xbc] sm:$0xf] %v1323_v19  ;;  %v1404_v28 = vpack.c.bf16 %v7485_v25, %v1402_v26  ;;  %v1431_v29 = vpack.c.bf16 %v7485_v25, %v1429_v27  ;;  %v1456_v30 = vsel %vm52_vm0, %v1445_v13, %v7534_v1  ;;  %v1499_v35 = vunpack.c.l.bf16 %v6112_v10  ;;  %v6128_v19 = vld [vmem:[%s8880_s6 + $0x118] sm:$0xff]   ;;  %v6132_v26 = vld [vmem:[%s8880_s6 + $0x128] sm:$0xff]  }
  0x2f   :  { %v1483_v31 = vsel %vm52_vm0, %v1472_v14, %v7534_v1  ;;  %1352 = vst [vmem:[#allocation7 + $0xc0] sm:$0xf] %v1350_v23  ;;  %1379 = vst [vmem:[#allocation7 + $0xc4] sm:$0xf] %v1377_v24  ;;  %v1458_v33 = vpack.c.bf16 %v7485_v25, %v1456_v30  ;;  %v1526_v36 = vunpack.c.h.bf16 %v6112_v10  ;;  %v1553_v37 = vunpack.c.l.bf16 %v6114_v15  ;;  %v6130_v24 = vld [vmem:[%s8880_s6 + $0x120] sm:$0xff]   ;;  %v6134_v27 = vld [vmem:[%s8880_s6 + $0x130] sm:$0xff]  }
  0x30   :  { %v1485_v34 = vpack.c.bf16 %v7485_v25, %v1483_v31  ;;  %1406 = vst [vmem:[#allocation7 + $0xc8] sm:$0xf] %v1404_v28  ;;  %1433 = vst [vmem:[#allocation7 + $0xcc] sm:$0xf] %v1431_v29  ;;  %v1580_v38 = vunpack.c.h.bf16 %v6114_v15  ;;  %v1607_v39 = vunpack.c.l.bf16 %v6116_v16  ;;  %v1634_v40 = vunpack.c.h.bf16 %v6116_v16  ;;  %v7422_v28 = vld [vmem:[#allocation7 + $0x48] sm:$0xff]  }
  0x31   :  { %1460 = vst [vmem:[#allocation7 + $0xd0] sm:$0xf] %v1458_v33  ;;  %v1510_v41 = vsel %vm52_vm0, %v1499_v35, %v7534_v1  ;;  %v1537_v42 = vsel %vm52_vm0, %v1526_v36, %v7534_v1  ;;  %v1661_v43 = vunpack.c.l.bf16 %v6118_v32  ;;  %v1688_v44 = vunpack.c.h.bf16 %v6118_v32  ;;  %v7423_v33 = vld [vmem:[#allocation7 + $0x50] sm:$0xff]  }
  0x32   :  { %1487 = vst [vmem:[#allocation7 + $0xd4] sm:$0xf] %v1485_v34  ;;  %v1512_v45 = vpack.c.bf16 %v7485_v25, %v1510_v41  ;;  %v1539_v46 = vpack.c.bf16 %v7485_v25, %v1537_v42  ;;  %v1564_v47 = vsel %vm52_vm0, %v1553_v37, %v7534_v1  ;;  %v1591_v48 = vsel %vm52_vm0, %v1580_v38, %v7534_v1  ;;  %v8004_v38 = vld [vmem:[%s8880_s6 + $0x138] sm:$0xff]  }
  0x33   :  { %v1566_v50 = vpack.c.bf16 %v7485_v25, %v1564_v47  ;;  %v1593_v51 = vpack.c.bf16 %v7485_v25, %v1591_v48  ;;  %v1618_v52 = vsel %vm52_vm0, %v1607_v39, %v7534_v1  ;;  %v1645_v53 = vsel %vm52_vm0, %v1634_v40, %v7534_v1  ;;  %v7448_v40 = vld [vmem:[%s8876_s2 + $0x8] sm:$0xff]  }
  0x34   :  { %7029 = vmatmul.mubr.bf16.gmra.mrb[8].mxu0 %v7418_v17  ;;  %1514 = vst [vmem:[#allocation7 + $0xd8] sm:$0xf] %v1512_v45  ;;  %1541 = vst [vmem:[#allocation7 + $0xdc] sm:$0xf] %v1539_v46  ;;  %v1620_v58 = vpack.c.bf16 %v7485_v25, %v1618_v52  ;;  %v1647_v59 = vpack.c.bf16 %v7485_v25, %v1645_v53  ;;  %v1672_v60 = vsel %vm52_vm0, %v1661_v43, %v7534_v1  ;;  %v8012_v45 = vld [vmem:[%s8880_s6 + $0x140] sm:$0xff]  }
  0x35   :  { %7032 = vmatprep.mubr.bf16.mxu0 %v7419_v22  ;;  %v1699_v62 = vsel %vm52_vm0, %v1688_v44, %v7534_v1  ;;  %1568 = vst [vmem:[#allocation7 + $0xe0] sm:$0xf] %v1566_v50  ;;  %1595 = vst [vmem:[#allocation7 + $0xe4] sm:$0xf] %v1593_v51  ;;  %v1674_v0 = vpack.c.bf16 %v7485_v25, %v1672_v60  ;;  %v1715_v4 = vunpack.c.l.bf16 %v6120_v49  ;;  %v1742_v5 = vunpack.c.h.bf16 %v6120_v49  ;;  %v7436_v6 = vld [vmem:[#allocation7 + $0xb8] sm:$0xff]  }
  0x36   :  { %v1701_v2 = vpack.c.bf16 %v7485_v25, %v1699_v62  ;;  %1622 = vst [vmem:[#allocation7 + $0xe8] sm:$0xf] %v1620_v58  ;;  %1649 = vst [vmem:[#allocation7 + $0xec] sm:$0xf] %v1647_v59  ;;  %v1769_v7 = vunpack.c.l.bf16 %v6122_v54  ;;  %v1796_v8 = vunpack.c.h.bf16 %v6122_v54  ;;  %v1823_v9 = vunpack.c.l.bf16 %v6124_v55 }
  0x37   :  { %v1850_v10 = vunpack.c.h.bf16 %v6124_v55  ;;  %1676 = vst [vmem:[#allocation7 + $0xf0] sm:$0xf] %v1674_v0  ;;  %v1726_v11 = vsel %vm52_vm0, %v1715_v4, %v7534_v1  ;;  %v1753_v12 = vsel %vm52_vm0, %v1742_v5, %v7534_v1  ;;  %v1877_v13 = vunpack.c.l.bf16 %v6126_v61  ;;  %v6142_v5 = vld [vmem:[%s8880_s6 + $0x150] sm:$0xff]  }
  0x38   :  { %1703 = vst [vmem:[#allocation7 + $0xf4] sm:$0xf] %v1701_v2  ;;  %v1904_v14 = vunpack.c.h.bf16 %v6126_v61  ;;  %v1728_v15 = vpack.c.bf16 %v7485_v25, %v1726_v11  ;;  %v1755_v16 = vpack.c.bf16 %v7485_v25, %v1753_v12  ;;  %v1780_v17 = vsel %vm52_vm0, %v1769_v7, %v7534_v1  ;;  %v6140_v61 = vld [vmem:[%s8880_s6 + $0x148] sm:$0xff]   ;;  %v7424_v11 = vld [vmem:[#allocation7 + $0x58] sm:$0xff]  }
  0x39   :  { %v1807_v18 = vsel %vm52_vm0, %v1796_v8, %v7534_v1  ;;  %v1782_v20 = vpack.c.bf16 %v7485_v25, %v1780_v17  ;;  %v1834_v22 = vsel %vm52_vm0, %v1823_v9, %v7534_v1  ;;  %v1861_v23 = vsel %vm52_vm0, %v1850_v10, %v7534_v1  ;;  %v8063_v10 = vld [vmem:[%s8880_s6 + $0x158] sm:$0xff]   ;;  %v8076_v17 = vld [vmem:[%s8880_s6 + $0x168] sm:$0xff]  }
  0x3a   :  { %v1809_v21 = vpack.c.bf16 %v7485_v25, %v1807_v18  ;;  %1730 = vst [vmem:[#allocation7 + $0xf8] sm:$0xf] %v1728_v15  ;;  %1757 = vst [vmem:[#allocation7 + $0xfc] sm:$0xf] %v1755_v16  ;;  %v1836_v29 = vpack.c.bf16 %v7485_v25, %v1834_v22  ;;  %v1863_v30 = vpack.c.bf16 %v7485_v25, %v1861_v23  ;;  %v1931_v36 = vunpack.c.l.bf16 %v6128_v19  ;;  %v6146_v16 = vld [vmem:[%s8880_s6 + $0x160] sm:$0xff]  }
  0x3b   :  { %v1888_v31 = vsel %vm52_vm0, %v1877_v13, %v7534_v1  ;;  %v1915_v32 = vsel %vm52_vm0, %v1904_v14, %v7534_v1  ;;  %1784 = vst [vmem:[#allocation7 + $0x100] sm:$0xf] %v1782_v20  ;;  %v1958_v37 = vunpack.c.h.bf16 %v6128_v19  ;;  %v1985_v41 = vunpack.c.l.bf16 %v6130_v24  ;;  %v7425_v18 = vld [vmem:[#allocation7 + $0x60] sm:$0xff]  }
  0x3c   :  { %7033 = vmatmul.mubr.bf16.gmra.mrb[12].mxu0 %v7420_v57  ;;  %1811 = vst [vmem:[#allocation7 + $0x104] sm:$0xf] %v1809_v21  ;;  %v1890_v34 = vpack.c.bf16 %v7485_v25, %v1888_v31  ;;  %v1917_v35 = vpack.c.bf16 %v7485_v25, %v1915_v32  ;;  %v7441_v39 = vld [vmem:[#allocation7 + $0xe0] sm:$0xff]   ;;  %1838 = vst [vmem:[#allocation7 + $0x108] sm:$0xf] %v1836_v29  ;;  %v2012_v42 = vunpack.c.h.bf16 %v6130_v24  ;;  %v2039_v43 = vunpack.c.l.bf16 %v6132_v26  ;;  %v8031_v57 = vld [vmem:[%s8876_s2 + $0x10] sm:$0xff]  }
  0x3d   :  { %7036 = vmatprep.mubr.bf16.mxu0 %v7421_v63  ;;  %1865 = vst [vmem:[#allocation7 + $0x10c] sm:$0xf] %v1863_v30  ;;  %v2066_v44 = vunpack.c.h.bf16 %v6132_v26  ;;  %v7442_v46 = vld [vmem:[#allocation7 + $0xe8] sm:$0xff]   ;;  %v1942_v47 = vsel %vm52_vm0, %v1931_v36, %v7534_v1  ;;  %v1969_v48 = vsel %vm52_vm0, %v1958_v37, %v7534_v1  ;;  %v2093_v49 = vunpack.c.l.bf16 %v6134_v27  ;;  %7076 = vmatprep.mubr.bf16.mxu1 %v7441_v39  ;;  %v8099_v31 = vld [vmem:[%s8880_s6 + $0x170] sm:$0xff]  }
  0x3e   :  { %1892 = vst [vmem:[#allocation7 + $0x110] sm:$0xf] %v1890_v34  ;;  %1919 = vst [vmem:[#allocation7 + $0x114] sm:$0xf] %v1917_v35  ;;  %v2120_v50 = vunpack.c.h.bf16 %v6134_v27  ;;  %v1944_v52 = vpack.c.bf16 %v7485_v25, %v1942_v47  ;;  %v1971_v53 = vpack.c.bf16 %v7485_v25, %v1969_v48  ;;  %v1996_v54 = vsel %vm52_vm0, %v1985_v41, %v7534_v1  ;;  %v7456_v27 = vld [vmem:[%s8876_s2 + $0x18] sm:$0xff]   ;;  %v7461_v48 = vld [vmem:[%s8876_s2 + $0x20] sm:$0xff]  }
  0x3f   :  { %v7444_v51 = vld [vmem:[#allocation7 + $0xf0] sm:$0xff]   ;;  %v2023_v55 = vsel %vm52_vm0, %v2012_v42, %v7534_v1  ;;  %7077 = vmatmul.mubr.bf16.vlgmr.msra.gmra.mrb[0].mxu1 %v7442_v46  ;;  %v1998_v58 = vpack.c.bf16 %v7485_v25, %v1996_v54  ;;  %v2050_v60 = vsel %vm52_vm0, %v2039_v43, %v7534_v1  ;;  %v2077_v62 = vsel %vm52_vm0, %v2066_v44, %v7534_v1  ;;  %v6152_v44 = vld [vmem:[%s8880_s6 + $0x178] sm:$0xff]  }
  0x40   :  { %v2025_v59 = vpack.c.bf16 %v7485_v25, %v2023_v55  ;;  %7133 = vmatpush3.bf16.msra.mxu1 %v7758_v56  ;;  %1946 = vst [vmem:[#allocation7 + $0x118] sm:$0xf] %v1944_v52  ;;  %1973 = vst [vmem:[#allocation7 + $0x11c] sm:$0xf] %v1971_v53  ;;  %v2052_v63 = vpack.c.bf16 %v7485_v25, %v2050_v60  ;;  %v2079_v0 = vpack.c.bf16 %v7485_v25, %v2077_v62 }
  0x41   :  { %v2104_v2 = vsel %vm52_vm0, %v2093_v49, %v7534_v1  ;;  %v2147_v4 = vunpack.c.l.bf16 %v8004_v38  ;;  %7080 = vmatprep.mubr.bf16.mxu1 %v7444_v51  ;;  %2000 = vst [vmem:[#allocation7 + $0x120] sm:$0xf] %v1998_v58  ;;  %v2131_v7 = vsel %vm52_vm0, %v2120_v50, %v7534_v1  ;;  %v2174_v8 = vunpack.c.h.bf16 %v8004_v38  ;;  %7134 = vmatprep.subr.bf16.mxu1 %v7448_v40  ;;  %v7445_v19 = vld [vmem:[#allocation7 + $0xf8] sm:$0xff]   ;;  %v6154_v50 = vld [vmem:[%s8880_s6 + $0x180] sm:$0xff]   ;;  %v6156_v58 = vld [vmem:[%s8880_s6 + $0x188] sm:$0xff]  }
  0x42   :  { %2027 = vst [vmem:[#allocation7 + $0x124] sm:$0xf] %v2025_v59  ;;  %v2106_v56 = vpack.c.bf16 %v7485_v25, %v2104_v2  ;;  %v2201_v9 = vunpack.c.l.bf16 %v8012_v45  ;;  %2054 = vst [vmem:[#allocation7 + $0x128] sm:$0xf] %v2052_v63  ;;  %v2133_v12 = vpack.c.bf16 %v7485_v25, %v2131_v7  ;;  %v2228_v14 = vunpack.c.h.bf16 %v8012_v45  ;;  %v7426_v59 = vld [vmem:[#allocation7 + $0x68] sm:$0xff]   ;;  %v7427_v63 = vld [vmem:[#allocation7 + $0x70] sm:$0xff]  }
  0x43   :  { %2081 = vst [vmem:[#allocation7 + $0x12c] sm:$0xf] %v2079_v0  ;;  %v2158_v13 = vsel %vm52_vm0, %v2147_v4, %v7534_v1  ;;  %v2255_v15 = vunpack.c.l.bf16 %v6140_v61  ;;  %v2185_v21 = vsel %vm52_vm0, %v2174_v8, %v7534_v1  ;;  %v2282_v23 = vunpack.c.h.bf16 %v6140_v61  ;;  %v7446_v24 = vld [vmem:[#allocation7 + $0x100] sm:$0xff]  }
  0x44   :  { %7037 = vmatmul.mubr.bf16.gmra.mrb[16].mxu0 %v7422_v28  ;;  %2108 = vst [vmem:[#allocation7 + $0x130] sm:$0xf] %v2106_v56  ;;  %v2160_v20 = vpack.c.bf16 %v7485_v25, %v2158_v13  ;;  %v2212_v22 = vsel %vm52_vm0, %v2201_v9, %v7534_v1  ;;  %7135 = vmatpush3.bf16.msra.mxu1 %v7448_v40  ;;  %2135 = vst [vmem:[#allocation7 + $0x134] sm:$0xf] %v2133_v12  ;;  %v2309_v35 = vunpack.c.l.bf16 %v6142_v5  ;;  %v7447_v51 = vld [vmem:[#allocation7 + $0x108] sm:$0xff]  }
  0x45   :  { %7040 = vmatprep.mubr.bf16.mxu0 %v7423_v33  ;;  %v2187_v26 = vpack.c.bf16 %v7485_v25, %v2185_v21  ;;  %v2214_v28 = vpack.c.bf16 %v7485_v25, %v2212_v22  ;;  %v2239_v29 = vsel %vm52_vm0, %v2228_v14, %v7534_v1  ;;  %v2266_v30 = vsel %vm52_vm0, %v2255_v15, %v7534_v1  ;;  %v7449_v0 = vld [vmem:[#allocation7 + $0x110] sm:$0xff]  }
  0x46   :  { %7136 = vmatprep.subr.bf16.mxu1 %v8031_v57  ;;  %2162 = vst [vmem:[#allocation7 + $0x138] sm:$0xf] %v2160_v20  ;;  %v2241_v32 = vpack.c.bf16 %v7485_v25, %v2239_v29  ;;  %v2268_v33 = vpack.c.bf16 %v7485_v25, %v2266_v30  ;;  %v2293_v34 = vsel %vm52_vm0, %v2282_v23, %v7534_v1  ;;  %v2336_v37 = vunpack.c.h.bf16 %v6142_v5  ;;  %v6158_v15 = vld [vmem:[%s8880_s6 + $0x190] sm:$0xff]  }
  0x47   :  { %2189 = vst [vmem:[#allocation7 + $0x13c] sm:$0xf] %v2187_v26  ;;  %2216 = vst [vmem:[#allocation7 + $0x140] sm:$0xf] %v2214_v28  ;;  %v2295_v36 = vpack.c.bf16 %v7485_v25, %v2293_v34  ;;  %v2363_v38 = vunpack.c.l.bf16 %v8063_v10  ;;  %v2390_v39 = vunpack.c.h.bf16 %v8063_v10  ;;  %7081 = vmatmul.mubr.bf16.gmra.mrb[4].mxu1 %v7445_v19  ;;  %v2320_v40 = vsel %vm52_vm0, %v2309_v35, %v7534_v1  ;;  %v6160_v26 = vld [vmem:[%s8880_s6 + $0x198] sm:$0xff]  }
  0x48   :  { %2243 = vst [vmem:[#allocation7 + $0x144] sm:$0xf] %v2241_v32  ;;  %2270 = vst [vmem:[#allocation7 + $0x148] sm:$0xf] %v2268_v33  ;;  %v2417_v41 = vunpack.c.l.bf16 %v6146_v16  ;;  %v2444_v42 = vunpack.c.h.bf16 %v6146_v16  ;;  %v2471_v43 = vunpack.c.l.bf16 %v8076_v17  ;;  %7084 = vmatprep.mubr.bf16.mxu1 %v7446_v24  ;;  %v2322_v45 = vpack.c.bf16 %v7485_v25, %v2320_v40  ;;  %7137 = vmatpush3.bf16.msra.mxu1 %v8031_v57  ;;  %v7469_v40 = vld [vmem:[%s8876_s2 + $0x30] sm:$0xff]  }
  0x49   :  { %2297 = vst [vmem:[#allocation7 + $0x14c] sm:$0xf] %v2295_v36  ;;  %v2347_v46 = vsel %vm52_vm0, %v2336_v37, %v7534_v1  ;;  %v2374_v47 = vsel %vm52_vm0, %v2363_v38, %v7534_v1  ;;  %v2498_v49 = vunpack.c.h.bf16 %v8076_v17  ;;  %v2401_v54 = vsel %vm52_vm0, %v2390_v39, %v7534_v1  ;;  %7138 = vmatprep.subr.bf16.mxu1 %v7456_v27  ;;  %v6164_v36 = vld [vmem:[%s8880_s6 + $0x1a8] sm:$0xff]   ;;  %v7428_v37 = vld [vmem:[#allocation7 + $0x78] sm:$0xff]  }
  0x4a   :  { %v2349_v52 = vpack.c.bf16 %v7485_v25, %v2347_v46  ;;  %v2376_v53 = vpack.c.bf16 %v7485_v25, %v2374_v47  ;;  %v2525_v55 = vunpack.c.l.bf16 %v8099_v31  ;;  %2324 = vst [vmem:[#allocation7 + $0x150] sm:$0xf] %v2322_v45  ;;  %v2403_v60 = vpack.c.bf16 %v7485_v25, %v2401_v54  ;;  %v7429_v54 = vld [vmem:[#allocation7 + $0x80] sm:$0xff]  }
  0x4b   :  { %v2428_v57 = vsel %vm52_vm0, %v2417_v41, %v7534_v1  ;;  %v2455_v62 = vsel %vm52_vm0, %v2444_v42, %v7534_v1  ;;  %v2482_v61 = vsel %vm52_vm0, %v2471_v43, %v7534_v1  ;;  %v2509_v56 = vsel %vm52_vm0, %v2498_v49, %v7534_v1  ;;  %v7450_v43 = vld [vmem:[#allocation7 + $0x118] sm:$0xff]   ;;  %v7452_v49 = vld [vmem:[#allocation7 + $0x120] sm:$0xff]  }
  0x4c   :  { %7041 = vmatmul.mubr.bf16.gmra.mrb[20].mxu0 %v7424_v11  ;;  %2351 = vst [vmem:[#allocation7 + $0x154] sm:$0xf] %v2349_v52  ;;  %2378 = vst [vmem:[#allocation7 + $0x158] sm:$0xf] %v2376_v53  ;;  %v2430_v2 = vpack.c.bf16 %v7485_v25, %v2428_v57  ;;  %v2457_v4 = vpack.c.bf16 %v7485_v25, %v2455_v62  ;;  %v2484_v5 = vpack.c.bf16 %v7485_v25, %v2482_v61 }
  0x4d   :  { %7044 = vmatprep.mubr.bf16.mxu0 %v7425_v18  ;;  %2405 = vst [vmem:[#allocation7 + $0x15c] sm:$0xf] %v2403_v60  ;;  %v2511_v7 = vpack.c.bf16 %v7485_v25, %v2509_v56  ;;  %v2536_v8 = vsel %vm52_vm0, %v2525_v55, %v7534_v1  ;;  %v2552_v9 = vunpack.c.h.bf16 %v8099_v31  ;;  %v2579_v10 = vunpack.c.l.bf16 %v6152_v44  ;;  %7139 = vmatpush3.bf16.msra.mxu1 %v7456_v27  ;;  %v7466_v18 = vld [vmem:[%s8876_s2 + $0x28] sm:$0xff]   ;;  %v6162_v31 = vld [vmem:[%s8880_s6 + $0x1a0] sm:$0xff]  }
  0x4e   :  { %2432 = vst [vmem:[#allocation7 + $0x160] sm:$0xf] %v2430_v2  ;;  %2459 = vst [vmem:[#allocation7 + $0x164] sm:$0xf] %v2457_v4  ;;  %v2538_v11 = vpack.c.bf16 %v7485_v25, %v2536_v8  ;;  %v2606_v12 = vunpack.c.h.bf16 %v6152_v44  ;;  %v2633_v13 = vunpack.c.l.bf16 %v6154_v50  ;;  %v2660_v14 = vunpack.c.h.bf16 %v6154_v50  ;;  %7140 = vmatprep.subr.bf16.mxu1 %v7461_v48 }
  0x4f   :  { %2486 = vst [vmem:[#allocation7 + $0x168] sm:$0xf] %v2484_v5  ;;  %2513 = vst [vmem:[#allocation7 + $0x16c] sm:$0xf] %v2511_v7  ;;  %v2563_v16 = vsel %vm52_vm0, %v2552_v9, %v7534_v1  ;;  %v2590_v17 = vsel %vm52_vm0, %v2579_v10, %v7534_v1  ;;  %v2687_v19 = vunpack.c.l.bf16 %v6156_v58  ;;  %v2714_v20 = vunpack.c.h.bf16 %v6156_v58  ;;  %7085 = vmatmul.mubr.bf16.gmra.mrb[8].mxu1 %v7447_v51 }
  0x50   :  { %2540 = vst [vmem:[#allocation7 + $0x170] sm:$0xf] %v2538_v11  ;;  %v2565_v21 = vpack.c.bf16 %v7485_v25, %v2563_v16  ;;  %v2592_v22 = vpack.c.bf16 %v7485_v25, %v2590_v17  ;;  %v2617_v23 = vsel %vm52_vm0, %v2606_v12, %v7534_v1  ;;  %v2644_v24 = vsel %vm52_vm0, %v2633_v13, %v7534_v1  ;;  %v7453_v12 = vld [vmem:[#allocation7 + $0x128] sm:$0xff]   ;;  %v7431_v16 = vld [vmem:[#allocation7 + $0x90] sm:$0xff]  }
  0x51   :  { %7088 = vmatprep.mubr.bf16.mxu1 %v7449_v0  ;;  %v2619_v27 = vpack.c.bf16 %v7485_v25, %v2617_v23  ;;  %v2646_v28 = vpack.c.bf16 %v7485_v25, %v2644_v24  ;;  %v2671_v29 = vsel %vm52_vm0, %v2660_v14, %v7534_v1  ;;  %v2741_v30 = vunpack.c.l.bf16 %v6158_v15  ;;  %7141 = vmatpush3.bf16.msra.mxu1 %v7461_v48  ;;  %v6166_v48 = vld [vmem:[%s8880_s6 + $0x1b0] sm:$0xff]   ;;  %v7474_v0 = vld [vmem:[%s8876_s2 + $0x38] sm:$0xff]   ;;  %v7430_v14 = vld [vmem:[#allocation7 + $0x88] sm:$0xff]  }
  0x52   :  { %2567 = vst [vmem:[#allocation7 + $0x174] sm:$0xf] %v2565_v21  ;;  %2594 = vst [vmem:[#allocation7 + $0x178] sm:$0xf] %v2592_v22  ;;  %v2673_v32 = vpack.c.bf16 %v7485_v25, %v2671_v29  ;;  %v2698_v33 = vsel %vm52_vm0, %v2687_v19, %v7534_v1  ;;  %v2725_v34 = vsel %vm52_vm0, %v2714_v20, %v7534_v1  ;;  %v2768_v35 = vunpack.c.h.bf16 %v6158_v15  ;;  %v7454_v15 = vld [vmem:[#allocation7 + $0x130] sm:$0xff]   ;;  %v6168_v19 = vld [vmem:[%s8880_s6 + $0x1b8] sm:$0xff]  }
  0x53   :  { %2621 = vst [vmem:[#allocation7 + $0x17c] sm:$0xf] %v2619_v27  ;;  %7142 = vmatprep.subr.bf16.mxu1 %v7466_v18  ;;  %2648 = vst [vmem:[#allocation7 + $0x180] sm:$0xf] %v2646_v28  ;;  %v2700_v38 = vpack.c.bf16 %v7485_v25, %v2698_v33  ;;  %v2727_v39 = vpack.c.bf16 %v7485_v25, %v2725_v34  ;;  %v2752_v41 = vsel %vm52_vm0, %v2741_v30, %v7534_v1  ;;  %v7432_v21 = vld [vmem:[#allocation7 + $0x98] sm:$0xff]   ;;  %v7457_v22 = vld [vmem:[#allocation7 + $0x140] sm:$0xff]  }
  0x54   :  { %7045 = vmatmul.mubr.bf16.gmra.mrb[24].mxu0 %v7426_v59  ;;  %v2795_v42 = vunpack.c.l.bf16 %v6160_v26  ;;  %2675 = vst [vmem:[#allocation7 + $0x184] sm:$0xf] %v2673_v32  ;;  %v2754_v44 = vpack.c.bf16 %v7485_v25, %v2752_v41  ;;  %v2779_v45 = vsel %vm52_vm0, %v2768_v35, %v7534_v1  ;;  %v2822_v46 = vunpack.c.h.bf16 %v6160_v26  ;;  %v7433_v24 = vld [vmem:[#allocation7 + $0xa0] sm:$0xff]   ;;  %v7434_v32 = vld [vmem:[#allocation7 + $0xa8] sm:$0xff]   ;;  %v7459_v33 = vld [vmem:[#allocation7 + $0x150] sm:$0xff]  }
  0x55   :  { %7048 = vmatprep.mubr.bf16.mxu0 %v7427_v63  ;;  %v2849_v47 = vunpack.c.l.bf16 %v6162_v31  ;;  %2702 = vst [vmem:[#allocation7 + $0x188] sm:$0xf] %v2700_v38  ;;  %2729 = vst [vmem:[#allocation7 + $0x18c] sm:$0xf] %v2727_v39  ;;  %v2781_v50 = vpack.c.bf16 %v7485_v25, %v2779_v45  ;;  %v2876_v52 = vunpack.c.h.bf16 %v6162_v31  ;;  %v2903_v53 = vunpack.c.l.bf16 %v6164_v36  ;;  %7143 = vmatpush3.bf16.msra.mxu1 %v7466_v18  ;;  %v7455_v18 = vld [vmem:[#allocation7 + $0x138] sm:$0xff]   ;;  %v7458_v31 = vld [vmem:[#allocation7 + $0x148] sm:$0xff]  }
  0x56   :  { %v2806_v51 = vsel %vm52_vm0, %v2795_v42, %v7534_v1  ;;  %2756 = vst [vmem:[#allocation7 + $0x190] sm:$0xf] %v2754_v44  ;;  %v2833_v58 = vsel %vm52_vm0, %v2822_v46, %v7534_v1  ;;  %v2930_v60 = vunpack.c.h.bf16 %v6164_v36  ;;  %7144 = vmatprep.subr.bf16.mxu1 %v7469_v40  ;;  %v2957_v56 = vunpack.c.l.bf16 %v6166_v48  ;;  %v7435_v34 = vld [vmem:[#allocation7 + $0xb0] sm:$0xff]   ;;  %v7460_v35 = vld [vmem:[#allocation7 + $0x158] sm:$0xff]   ;;  %v7437_v36 = vld [vmem:[#allocation7 + $0xc0] sm:$0xff]  }
  0x57   :  { %v2808_v55 = vpack.c.bf16 %v7485_v25, %v2806_v51  ;;  %v2860_v59 = vsel %vm52_vm0, %v2849_v47, %v7534_v1  ;;  %2783 = vst [vmem:[#allocation7 + $0x194] sm:$0xf] %v2781_v50  ;;  %v2835_v57 = vpack.c.bf16 %v7485_v25, %v2833_v58  ;;  %v2887_v61 = vsel %vm52_vm0, %v2876_v52, %v7534_v1  ;;  %v7439_v39 = vld [vmem:[#allocation7 + $0xd0] sm:$0xff]   ;;  %v7440_v41 = vld [vmem:[#allocation7 + $0xd8] sm:$0xff]   ;;  %v7477_v50 = vld [vmem:[%s8878_s4] sm:$0xff]  }
  0x58   :  { %v2862_v62 = vpack.c.bf16 %v7485_v25, %v2860_v59  ;;  %v2914_v63 = vsel %vm52_vm0, %v2903_v53, %v7534_v1  ;;  %7089 = vmatmul.mubr.bf16.gmra.mrb[12].mxu1 %v7450_v43  ;;  %v2889_v2 = vpack.c.bf16 %v7485_v25, %v2887_v61  ;;  %v2941_v5 = vsel %vm52_vm0, %v2930_v60, %v7534_v1  ;;  %v8274_v51 = vld [vmem:[%s8875_s1] ss:$0 sm:$0xff] }
  0x59   :  { %2810 = vst [vmem:[#allocation7 + $0x198] sm:$0xf] %v2808_v55  ;;  %v2916_v4 = vpack.c.bf16 %v7485_v25, %v2914_v63  ;;  %7092 = vmatprep.mubr.bf16.mxu1 %v7452_v49  ;;  %2837 = vst [vmem:[#allocation7 + $0x19c] sm:$0xf] %v2835_v57  ;;  %v2943_v7 = vpack.c.bf16 %v7485_v25, %v2941_v5  ;;  %v2984_v8 = vunpack.c.h.bf16 %v6166_v48  ;;  %7145 = vmatpush3.bf16.msra.mxu1 %v7469_v40  ;;  %v7464_v38 = vld [vmem:[#allocation7 + $0x170] sm:$0xff]  }
  0x5a   :  { %2864 = vst [vmem:[#allocation7 + $0x1a0] sm:$0xf] %v2862_v62  ;;  %2891 = vst [vmem:[#allocation7 + $0x1a4] sm:$0xf] %v2889_v2  ;;  %v2968_v9 = vsel %vm52_vm0, %v2957_v56, %v7534_v1  ;;  %7146 = vmatprep.subr.bf16.mxu1 %v7474_v0  ;;  %v3041_v17 = vshrl.u32 %v49_v3, 7  ;;  %v3038_v23 = vunpack.c.h.bf16 %v6168_v19  ;;  %v3011_v26 = vunpack.c.l.bf16 %v6168_v19  ;;  %v7465_v40 = vld [vmem:[#allocation7 + $0x178] sm:$0xff]   ;;  %7260 = vmatprep.subr.bf16.mxu0 %v7477_v50 }
  0x5b   :  { %2918 = vst [vmem:[#allocation7 + $0x1a8] sm:$0xf] %v2916_v4  ;;  %2945 = vst [vmem:[#allocation7 + $0x1ac] sm:$0xf] %v2943_v7  ;;  %v2970_v10 = vpack.c.bf16 %v7485_v25, %v2968_v9  ;;  %v2995_v11 = vsel %vm52_vm0, %v2984_v8, %v7534_v1  ;;  %v7467_v42 = vld [vmem:[#allocation7 + $0x180] sm:$0xff]   ;;  %7261 = vmatpush3.bf16.msra.mxu0 %v7477_v50  ;;  %v7478_v62 = vld [vmem:[%s8878_s4 + $0x8] sm:$0xff]  }
  0x5c   :  { %7049 = vmatmul.mubr.bf16.gmra.mrb[28].mxu0 %v7428_v37  ;;  %v2997_v13 = vpack.c.bf16 %v7485_v25, %v2995_v11  ;;  %v3042_v20 = vadd.s32 888, %v3041_v17  ;;  %v3022_v28 = vsel %vm52_vm0, %v3011_v26, %v7534_v1  ;;  %v7438_v37 = vld [vmem:[#allocation7 + $0xc8] sm:$0xff]   ;;  %7262 = vmatprep.subr.bf16.mxu0 %v7478_v62 }
  0x5d   :  { %7052 = vmatprep.mubr.bf16.mxu0 %v7429_v54  ;;  %2972 = vst [vmem:[#allocation7 + $0x1b0] sm:$0xf] %v2970_v10  ;;  %7147 = vmatpush3.bf16.msra.mxu1 %v7474_v0  ;;  %v3024_v29 = vpack.c.bf16 %v7485_v25, %v3022_v28  ;;  %v7468_v43 = vld [vmem:[#allocation7 + $0x188] sm:$0xff]   ;;  %v7479_v28 = vld [vmem:[%s8878_s4 + $0x10] sm:$0xff]  }
  0x5e   :  { %2999 = vst [vmem:[#allocation7 + $0x1b4] sm:$0xf] %v2997_v13  ;;  %vm3043_vm1 = vcmp.lt.s32.totalorder %v3042_v20, 891  ;;  %v7470_v44 = vld [vmem:[#allocation7 + $0x190] sm:$0xff]  }
  0x5f   :  { %v3044_v27 = vsel %vm3043_vm1, %v3038_v23, %v7534_v1  ;;  %3026 = vst [vmem:[#allocation7 + $0x1b8] sm:$0xf] %v3024_v29  ;;  %7263 = vmatpush3.bf16.msra.mxu0 %v7478_v62 }
  0x60   :  { %7093 = vmatmul.mubr.bf16.gmra.mrb[16].mxu1 %v7453_v12  ;;  %v3049_v3 = vsel %vm52_vm0, %v3044_v27, %v7534_v1  ;;  %v7462_v1 = vld [vmem:[#allocation7 + $0x160] sm:$0xff]   ;;  %v7471_v45 = vld [vmem:[#allocation7 + $0x198] sm:$0xff]   ;;  %7264 = vmatprep.subr.bf16.mxu0 %v7479_v28 }
  0x61   :  { %7096 = vmatprep.mubr.bf16.mxu1 %v7454_v15  ;;  %v3051_v30 = vpack.c.bf16 %v7485_v25, %v3049_v3  ;;  %v7463_v25 = vld [vmem:[#allocation7 + $0x168] sm:$0xff]   ;;  %v7472_v46 = vld [vmem:[#allocation7 + $0x1a0] sm:$0xff]  }
  0x62   :  { %v7473_v47 = vld [vmem:[#allocation7 + $0x1a8] sm:$0xff]  }
  0x63   :  { %3053 = vst [vmem:[#allocation7 + $0x1bc] sm:$0xf] %v3051_v30  ;;  %7265 = vmatpush3.bf16.msra.mxu0 %v7479_v28 }
  0x64   :  { %7053 = vmatmul.mubr.bf16.gmra.mrb[32].mxu0 %v7430_v14 }
  0x65   :  { %7056 = vmatprep.mubr.bf16.mxu0 %v7431_v16  ;;  %v7475_v48 = vld [vmem:[#allocation7 + $0x1b0] sm:$0xff]  }
  0x68   :  { %7097 = vmatmul.mubr.bf16.gmra.mrb[20].mxu1 %v7455_v18 }
  0x69   :  { %7100 = vmatprep.mubr.bf16.mxu1 %v7457_v22 }
  0x6a   :  { %v7476_v49 = vld [vmem:[#allocation7 + $0x1b8] sm:$0xff]  }
  0x6c   :  { %7057 = vmatmul.mubr.bf16.gmra.mrb[36].mxu0 %v7432_v21 }
  0x6d   :  { %7060 = vmatprep.mubr.bf16.mxu0 %v7433_v24 }
  0x70   :  { %7101 = vmatmul.mubr.bf16.gmra.mrb[24].mxu1 %v7458_v31 }
  0x71   :  { %7104 = vmatprep.mubr.bf16.mxu1 %v7459_v33 }
  0x74   :  { %7061 = vmatmul.mubr.bf16.gmra.mrb[40].mxu0 %v7434_v32 }
  0x75   :  { %7064 = vmatprep.mubr.bf16.mxu0 %v7435_v34 }
  0x78   :  { %7105 = vmatmul.mubr.bf16.gmra.mrb[28].mxu1 %v7460_v35 }
  0x79   :  { %7108 = vmatprep.mubr.bf16.mxu1 %v7462_v1 }
  0x7c   :  { %7065 = vmatmul.mubr.bf16.gmra.mrb[44].mxu0 %v7436_v6 }
  0x7d   :  { %7068 = vmatprep.mubr.bf16.mxu0 %v7437_v36 }
  0x80   :  { %7109 = vmatmul.mubr.bf16.gmra.mrb[32].mxu1 %v7463_v25 }
  0x81   :  { %7112 = vmatprep.mubr.bf16.mxu1 %v7464_v38 }
  0x84   :  { %7069 = vmatmul.mubr.bf16.gmra.mrb[48].mxu0 %v7438_v37 }
  0x85   :  { %7072 = vmatprep.mubr.bf16.mxu0 %v7439_v39 }
  0x88   :  { %7113 = vmatmul.mubr.bf16.gmra.mrb[36].mxu1 %v7465_v40  ;;  %v7480_v40 = vld [vmem:[%s8878_s4 + $0x18] sm:$0xff]  }
  0x89   :  { %7116 = vmatprep.mubr.bf16.mxu1 %v7467_v42  ;;  %7266 = vmatprep.subr.bf16.mxu0 %v7480_v40 }
  0x8a   :  { %7267 = vmatpush3.bf16.msra.mxu0 %v7480_v40 }
  0x8c   :  { %7073 = vmatmul.mubr.bf16.gmra.mrb[52].mxu0 %v7440_v41 }
  0x90   :  { %7117 = vmatmul.mubr.bf16.gmra.mrb[40].mxu1 %v7468_v43 }
  0x91   :  { %7120 = vmatprep.mubr.bf16.mxu1 %v7470_v44 }
  0x98   :  { %7121 = vmatmul.mubr.bf16.gmra.mrb[44].mxu1 %v7471_v45 }
  0x99   :  { %7124 = vmatprep.mubr.bf16.mxu1 %v7472_v46 }
  0xa0   :  { %7125 = vmatmul.mubr.bf16.gmra.mrb[48].mxu1 %v7473_v47 }
  0xa1   :  { %7128 = vmatprep.mubr.bf16.mxu1 %v7475_v48 }
  0xa8   :  { %7129 = vmatmul.mubr.bf16.gmra.mrb[52].mxu1 %v7476_v49 }
  0xf7   :  { %v7022_v52 = vpop.f32.mrb[0].mxu0 }
  0xf8   :  { %v3617_v53 = vadd.f32 %v7022_v52, %v8274_v51  ;;  %v3608_v54 = vpop.f32.mrb[1].mxu0 }
  0xf9   :  { %v3609_v55 = vadd.f32 %v8274_v51, %v3608_v54  ;;  %v7023_v58 = vpop.f32.mrb[2].mxu0 }
  0xfa   :  { %v3620_v59 = vadd.f32 %v7023_v58, %v8274_v51  ;;  %v3611_v60 = vpop.f32.mrb[3].mxu0  ;;  %v4057_v61 = vmax.f32 %v3617_v53, 0.0 }
  0xfb   :  { %v3612_v57 = vadd.f32 %v8274_v51, %v3611_v60  ;;  %v4055_v0 = vmax.f32 %v3609_v55, 0.0 }
  0xfc   :  { %v4058_v63 = vmax.f32 %v3620_v59, 0.0 }
  0xfd   :  { %v4056_v2 = vmax.f32 %v3612_v57, 0.0 }
  0xfe   :  { %v4168_v4 = vpack.c.bf16 %v4058_v63, %v4057_v61 }
  0xff   :  { %v4167_v5 = vpack.c.bf16 %v4056_v2, %v4055_v0  ;;  %v7026_v56 = vpop.f32.mrb[4].mxu0 }
 0x100   :  { %v3633_v7 = vadd.f32 %v7026_v56, %v8274_v51  ;;  %v3624_v8 = vpop.f32.mrb[5].mxu0 }
 0x101   :  { %v3625_v9 = vadd.f32 %v8274_v51, %v3624_v8  ;;  %v7027_v10 = vpop.f32.mrb[6].mxu0  ;;  %7148 = vmatprep.mubr.bf16.mxu1 %v4167_v5 }
 0x102   :  { %v3636_v11 = vadd.f32 %v7027_v10, %v8274_v51  ;;  %v3627_v12 = vpop.f32.mrb[7].mxu0  ;;  %7149 = vmatmul.mubr.bf16.vlgmr.msra.gmra.mrb[56].mxu1 %v4168_v4  ;;  %v4061_v14 = vmax.f32 %v3633_v7, 0.0 }
 0x103   :  { %v3628_v13 = vadd.f32 %v8274_v51, %v3627_v12  ;;  %v4059_v16 = vmax.f32 %v3625_v9, 0.0 }
 0x104   :  { %v4062_v15 = vmax.f32 %v3636_v11, 0.0 }
 0x105   :  { %v4060_v17 = vmax.f32 %v3628_v13, 0.0 }
 0x106   :  { %v4170_v18 = vpack.c.bf16 %v4062_v15, %v4061_v14 }
 0x107   :  { %v4169_v19 = vpack.c.bf16 %v4060_v17, %v4059_v16  ;;  %v7030_v20 = vpop.f32.mrb[8].mxu0 }
 0x108   :  { %v3649_v21 = vadd.f32 %v7030_v20, %v8274_v51  ;;  %v3640_v22 = vpop.f32.mrb[9].mxu0 }
 0x109   :  { %v3641_v23 = vadd.f32 %v8274_v51, %v3640_v22  ;;  %v7031_v24 = vpop.f32.mrb[10].mxu0  ;;  %7152 = vmatprep.mubr.bf16.mxu1 %v4169_v19 }
 0x10a   :  { %v3652_v26 = vadd.f32 %v7031_v24, %v8274_v51  ;;  %v3643_v27 = vpop.f32.mrb[11].mxu0  ;;  %7153 = vmatmul.mubr.bf16.gmra.mrb[60].mxu1 %v4170_v18  ;;  %v4065_v29 = vmax.f32 %v3649_v21, 0.0 }
 0x10b   :  { %v3644_v3 = vadd.f32 %v8274_v51, %v3643_v27  ;;  %v4063_v31 = vmax.f32 %v3641_v23, 0.0 }
 0x10c   :  { %v4066_v30 = vmax.f32 %v3652_v26, 0.0 }
 0x10d   :  { %v4064_v32 = vmax.f32 %v3644_v3, 0.0 }
 0x10e   :  { %v4172_v33 = vpack.c.bf16 %v4066_v30, %v4065_v29 }
 0x10f   :  { %v4171_v34 = vpack.c.bf16 %v4064_v32, %v4063_v31  ;;  %v7034_v35 = vpop.f32.mrb[12].mxu0 }
 0x110   :  { %v3665_v6 = vadd.f32 %v7034_v35, %v8274_v51  ;;  %v3656_v1 = vpop.f32.mrb[13].mxu0 }
 0x111   :  { %v3657_v36 = vadd.f32 %v8274_v51, %v3656_v1  ;;  %v7035_v25 = vpop.f32.mrb[14].mxu0  ;;  %7156 = vmatprep.mubr.bf16.mxu1 %v4171_v34  ;;  %v7481_v34 = vld [vmem:[%s8878_s4 + $0x20] sm:$0xff]  }
 0x112   :  { %v3668_v37 = vadd.f32 %v7035_v25, %v8274_v51  ;;  %v3659_v38 = vpop.f32.mrb[15].mxu0  ;;  %7157 = vmatmul.mubr.bf16.gmra.mrb[64].mxu1 %v4172_v33  ;;  %v4069_v41 = vmax.f32 %v3665_v6, 0.0  ;;  %v7078_v46 = vpop.f32.mrb[0].mxu1  ;;  %7268 = vmatprep.subr.bf16.mxu0 %v7481_v34 }
 0x113   :  { %v3660_v39 = vadd.f32 %v8274_v51, %v3659_v38  ;;  %v4067_v43 = vmax.f32 %v3657_v36, 0.0  ;;  %v3841_v49 = vadd.f32 %v7078_v46, %v8274_v51  ;;  %v3832_v50 = vpop.f32.mrb[1].mxu1  ;;  %7269 = vmatpush3.bf16.msra.mxu0 %v7481_v34 }
 0x114   :  { %v4070_v42 = vmax.f32 %v3668_v37, 0.0  ;;  %v3833_v54 = vadd.f32 %v8274_v51, %v3832_v50  ;;  %v7079_v55 = vpop.f32.mrb[2].mxu1 }
 0x115   :  { %v4068_v44 = vmax.f32 %v3660_v39, 0.0  ;;  %v4113_v60 = vmax.f32 %v3841_v49, 0.0  ;;  %v3844_v57 = vadd.f32 %v7079_v55, %v8274_v51  ;;  %v3835_v62 = vpop.f32.mrb[3].mxu1 }
 0x116   :  { %v4174_v45 = vpack.c.bf16 %v4070_v42, %v4069_v41  ;;  %v4111_v0 = vmax.f32 %v3833_v54, 0.0  ;;  %v3836_v2 = vadd.f32 %v8274_v51, %v3835_v62 }
 0x117   :  { %v4173_v47 = vpack.c.bf16 %v4068_v44, %v4067_v43  ;;  %v7038_v48 = vpop.f32.mrb[16].mxu0  ;;  %v4114_v5 = vmax.f32 %v3844_v57, 0.0 }
 0x118   :  { %v3681_v52 = vadd.f32 %v7038_v48, %v8274_v51  ;;  %v3672_v53 = vpop.f32.mrb[17].mxu0  ;;  %v4112_v8 = vmax.f32 %v3836_v2, 0.0 }
 0x119   :  { %v3673_v58 = vadd.f32 %v8274_v51, %v3672_v53  ;;  %v7039_v59 = vpop.f32.mrb[18].mxu0  ;;  %7160 = vmatprep.mubr.bf16.mxu1 %v4173_v47  ;;  %v8309_v11 = vpack.c.bf16 %v4114_v5, %v4113_v60 }
 0x11a   :  { %v3684_v61 = vadd.f32 %v7039_v59, %v8274_v51  ;;  %v3675_v63 = vpop.f32.mrb[19].mxu0  ;;  %7161 = vmatmul.mubr.bf16.gmra.mrb[68].mxu1 %v4174_v45  ;;  %v4073_v56 = vmax.f32 %v3681_v52, 0.0  ;;  %v8311_v13 = vpack.c.bf16 %v4112_v8, %v4111_v0  ;;  %v7082_v14 = vpop.f32.mrb[4].mxu1 }
 0x11b   :  { %v3676_v4 = vadd.f32 %v8274_v51, %v3675_v63  ;;  %v4071_v9 = vmax.f32 %v3673_v58, 0.0  ;;  %v3857_v17 = vadd.f32 %v7082_v14, %v8274_v51  ;;  %v3848_v18 = vpop.f32.mrb[5].mxu1 }
 0x11c   :  { %v4074_v7 = vmax.f32 %v3684_v61, 0.0  ;;  %v3849_v21 = vadd.f32 %v8274_v51, %v3848_v18  ;;  %v7083_v22 = vpop.f32.mrb[6].mxu1 }
 0x11d   :  { %v4072_v10 = vmax.f32 %v3676_v4, 0.0  ;;  %v4117_v26 = vmax.f32 %v3857_v17, 0.0  ;;  %v3860_v27 = vadd.f32 %v7083_v22, %v8274_v51  ;;  %v3851_v28 = vpop.f32.mrb[7].mxu1 }
 0x11e   :  { %v4176_v12 = vpack.c.bf16 %v4074_v7, %v4073_v56  ;;  %v4115_v30 = vmax.f32 %v3849_v21, 0.0  ;;  %v3852_v31 = vadd.f32 %v8274_v51, %v3851_v28 }
 0x11f   :  { %v4175_v15 = vpack.c.bf16 %v4072_v10, %v4071_v9  ;;  %v7042_v16 = vpop.f32.mrb[20].mxu0  ;;  %v4118_v33 = vmax.f32 %v3860_v27, 0.0 }
 0x120   :  { %v3697_v19 = vadd.f32 %v7042_v16, %v8274_v51  ;;  %v3688_v20 = vpop.f32.mrb[21].mxu0  ;;  %v4116_v1 = vmax.f32 %v3852_v31, 0.0 }
 0x121   :  { %v3689_v23 = vadd.f32 %v8274_v51, %v3688_v20  ;;  %v7043_v24 = vpop.f32.mrb[22].mxu0  ;;  %7164 = vmatprep.mubr.bf16.mxu1 %v4175_v15  ;;  %v8324_v37 = vpack.c.bf16 %v4118_v33, %v4117_v26 }
 0x122   :  { %v3700_v3 = vadd.f32 %v7043_v24, %v8274_v51  ;;  %v3691_v29 = vpop.f32.mrb[23].mxu0  ;;  %7165 = vmatmul.mubr.bf16.gmra.mrb[72].mxu1 %v4176_v12  ;;  %v4077_v35 = vmax.f32 %v3697_v19, 0.0  ;;  %v8326_v39 = vpack.c.bf16 %v4116_v1, %v4115_v30  ;;  %v7086_v40 = vpop.f32.mrb[8].mxu1  ;;  %v7482_v30 = vld [vmem:[%s8878_s4 + $0x28] sm:$0xff]  }
 0x123   :  { %v3692_v32 = vadd.f32 %v8274_v51, %v3691_v29  ;;  %v4075_v36 = vmax.f32 %v3689_v23, 0.0  ;;  %v3873_v43 = vadd.f32 %v7086_v40, %v8274_v51  ;;  %v3864_v44 = vpop.f32.mrb[9].mxu1  ;;  %7270 = vmatprep.subr.bf16.mxu0 %v7482_v30 }
 0x124   :  { %v4078_v6 = vmax.f32 %v3700_v3, 0.0  ;;  %v3865_v47 = vadd.f32 %v8274_v51, %v3864_v44  ;;  %v7087_v48 = vpop.f32.mrb[10].mxu1  ;;  %7271 = vmatpush3.bf16.msra.mxu0 %v7482_v30 }
 0x125   :  { %v4076_v25 = vmax.f32 %v3692_v32, 0.0  ;;  %v4121_v52 = vmax.f32 %v3873_v43, 0.0  ;;  %v3876_v53 = vadd.f32 %v7087_v48, %v8274_v51  ;;  %v3867_v54 = vpop.f32.mrb[11].mxu1 }
 0x126   :  { %v4178_v38 = vpack.c.bf16 %v4078_v6, %v4077_v35  ;;  %v4119_v59 = vmax.f32 %v3865_v47, 0.0  ;;  %v3868_v60 = vadd.f32 %v8274_v51, %v3867_v54 }
 0x127   :  { %v4177_v41 = vpack.c.bf16 %v4076_v25, %v4075_v36  ;;  %v7046_v42 = vpop.f32.mrb[24].mxu0  ;;  %v4122_v62 = vmax.f32 %v3876_v53, 0.0 }
 0x128   :  { %v3713_v45 = vadd.f32 %v7046_v42, %v8274_v51  ;;  %v3704_v46 = vpop.f32.mrb[25].mxu0  ;;  %v4120_v0 = vmax.f32 %v3868_v60, 0.0 }
 0x129   :  { %v3705_v49 = vadd.f32 %v8274_v51, %v3704_v46  ;;  %v7047_v50 = vpop.f32.mrb[26].mxu0  ;;  %7168 = vmatprep.mubr.bf16.mxu1 %v4177_v41  ;;  %v8336_v5 = vpack.c.bf16 %v4122_v62, %v4121_v52 }
 0x12a   :  { %v3716_v55 = vadd.f32 %v7047_v50, %v8274_v51  ;;  %v3707_v58 = vpop.f32.mrb[27].mxu0  ;;  %7169 = vmatmul.mubr.bf16.gmra.mrb[76].mxu1 %v4178_v38  ;;  %v4081_v61 = vmax.f32 %v3713_v45, 0.0  ;;  %v8338_v7 = vpack.c.bf16 %v4120_v0, %v4119_v59 }
 0x12b   :  { %v3708_v57 = vadd.f32 %v8274_v51, %v3707_v58  ;;  %v4079_v2 = vmax.f32 %v3705_v49, 0.0  ;;  %v7090_v8 = vpop.f32.mrb[12].mxu1 }
 0x12c   :  { %v4082_v63 = vmax.f32 %v3716_v55, 0.0  ;;  %v3889_v12 = vadd.f32 %v7090_v8, %v8274_v51  ;;  %v3880_v14 = vpop.f32.mrb[13].mxu1 }
 0x12d   :  { %v4080_v4 = vmax.f32 %v3708_v57, 0.0  ;;  %v3881_v17 = vadd.f32 %v8274_v51, %v3880_v14  ;;  %v7091_v18 = vpop.f32.mrb[14].mxu1 }
 0x12e   :  { %v4180_v56 = vpack.c.bf16 %v4082_v63, %v4081_v61  ;;  %v4125_v21 = vmax.f32 %v3889_v12, 0.0  ;;  %v3892_v22 = vadd.f32 %v7091_v18, %v8274_v51  ;;  %v3883_v23 = vpop.f32.mrb[15].mxu1 }
 0x12f   :  { %v4179_v9 = vpack.c.bf16 %v4080_v4, %v4079_v2  ;;  %v7050_v10 = vpop.f32.mrb[28].mxu0  ;;  %v4123_v27 = vmax.f32 %v3881_v17, 0.0  ;;  %v3884_v28 = vadd.f32 %v8274_v51, %v3883_v23 }
 0x130   :  { %v3729_v15 = vadd.f32 %v7050_v10, %v8274_v51  ;;  %v3720_v16 = vpop.f32.mrb[29].mxu0  ;;  %v4126_v29 = vmax.f32 %v3892_v22, 0.0 }
 0x131   :  { %v3721_v19 = vadd.f32 %v8274_v51, %v3720_v16  ;;  %v7051_v20 = vpop.f32.mrb[30].mxu0  ;;  %7172 = vmatprep.mubr.bf16.mxu1 %v4179_v9  ;;  %v4124_v33 = vmax.f32 %v3884_v28, 0.0 }
 0x132   :  { %v3732_v24 = vadd.f32 %v7051_v20, %v8274_v51  ;;  %v3723_v26 = vpop.f32.mrb[31].mxu0  ;;  %7173 = vmatmul.mubr.bf16.gmra.mrb[80].mxu1 %v4180_v56  ;;  %v4085_v31 = vmax.f32 %v3729_v15, 0.0  ;;  %v8351_v6 = vpack.c.bf16 %v4126_v29, %v4125_v21 }
 0x133   :  { %v3724_v3 = vadd.f32 %v8274_v51, %v3723_v26  ;;  %v4083_v34 = vmax.f32 %v3721_v19, 0.0  ;;  %v8353_v36 = vpack.c.bf16 %v4124_v33, %v4123_v27  ;;  %v7094_v25 = vpop.f32.mrb[16].mxu1 }
 0x134   :  { %v4086_v32 = vmax.f32 %v3732_v24, 0.0  ;;  %v3905_v41 = vadd.f32 %v7094_v25, %v8274_v51  ;;  %v3896_v42 = vpop.f32.mrb[17].mxu1 }
 0x135   :  { %v4084_v35 = vmax.f32 %v3724_v3, 0.0  ;;  %v3897_v45 = vadd.f32 %v8274_v51, %v3896_v42  ;;  %v7095_v46 = vpop.f32.mrb[18].mxu1  ;;  %v7483_v3 = vld [vmem:[%s8878_s4 + $0x30] sm:$0xff]  }
 0x136   :  { %v4182_v1 = vpack.c.bf16 %v4086_v32, %v4085_v31  ;;  %v4129_v49 = vmax.f32 %v3905_v41, 0.0  ;;  %v3908_v50 = vadd.f32 %v7095_v46, %v8274_v51  ;;  %v3899_v52 = vpop.f32.mrb[19].mxu1  ;;  %7272 = vmatprep.subr.bf16.mxu0 %v7483_v3 }
 0x137   :  { %v4181_v38 = vpack.c.bf16 %v4084_v35, %v4083_v34  ;;  %v7054_v40 = vpop.f32.mrb[32].mxu0  ;;  %v4127_v55 = vmax.f32 %v3897_v45, 0.0  ;;  %v3900_v58 = vadd.f32 %v8274_v51, %v3899_v52  ;;  %7273 = vmatpush3.bf16.msra.mxu0 %v7483_v3 }
 0x138   :  { %v3745_v43 = vadd.f32 %v7054_v40, %v8274_v51  ;;  %v3736_v44 = vpop.f32.mrb[33].mxu0  ;;  %v4130_v60 = vmax.f32 %v3908_v50, 0.0 }
 0x139   :  { %v3737_v47 = vadd.f32 %v8274_v51, %v3736_v44  ;;  %v7055_v48 = vpop.f32.mrb[34].mxu0  ;;  %7176 = vmatprep.mubr.bf16.mxu1 %v4181_v38  ;;  %v4128_v61 = vmax.f32 %v3900_v58, 0.0 }
 0x13a   :  { %v3748_v53 = vadd.f32 %v7055_v48, %v8274_v51  ;;  %v3739_v54 = vpop.f32.mrb[35].mxu0  ;;  %7177 = vmatmul.mubr.bf16.gmra.mrb[84].mxu1 %v4182_v1  ;;  %v4089_v57 = vmax.f32 %v3745_v43, 0.0  ;;  %v8363_v2 = vpack.c.bf16 %v4130_v60, %v4129_v49 }
 0x13b   :  { %v3740_v59 = vadd.f32 %v8274_v51, %v3739_v54  ;;  %v4087_v63 = vmax.f32 %v3737_v47, 0.0  ;;  %v8365_v56 = vpack.c.bf16 %v4128_v61, %v4127_v55  ;;  %v7098_v8 = vpop.f32.mrb[20].mxu1  ;;  %v7484_v61 = vld [vmem:[%s8878_s4 + $0x38] sm:$0xff]  }
 0x13c   :  { %v4090_v62 = vmax.f32 %v3748_v53, 0.0  ;;  %v3921_v12 = vadd.f32 %v7098_v8, %v8274_v51  ;;  %v3912_v14 = vpop.f32.mrb[21].mxu1  ;;  %7274 = vmatprep.subr.bf16.mxu0 %v7484_v61 }
 0x13d   :  { %v4088_v0 = vmax.f32 %v3740_v59, 0.0  ;;  %v3913_v17 = vadd.f32 %v8274_v51, %v3912_v14  ;;  %v7099_v18 = vpop.f32.mrb[22].mxu1  ;;  %7275 = vmatpush3.bf16.msra.mxu0 %v7484_v61 }
 0x13e   :  { %v4184_v4 = vpack.c.bf16 %v4090_v62, %v4089_v57  ;;  %v4133_v21 = vmax.f32 %v3921_v12, 0.0  ;;  %v3924_v22 = vadd.f32 %v7099_v18, %v8274_v51  ;;  %v3915_v23 = vpop.f32.mrb[23].mxu1 }
 0x13f   :  { %v4183_v9 = vpack.c.bf16 %v4088_v0, %v4087_v63  ;;  %v7058_v10 = vpop.f32.mrb[36].mxu0  ;;  %v4131_v27 = vmax.f32 %v3913_v17, 0.0  ;;  %v3916_v28 = vadd.f32 %v8274_v51, %v3915_v23 }
 0x140   :  { %v3761_v15 = vadd.f32 %v7058_v10, %v8274_v51  ;;  %v3752_v16 = vpop.f32.mrb[37].mxu0  ;;  %v4134_v30 = vmax.f32 %v3924_v22, 0.0 }
 0x141   :  { %v3753_v19 = vadd.f32 %v8274_v51, %v3752_v16  ;;  %v7059_v20 = vpop.f32.mrb[38].mxu0  ;;  %7180 = vmatprep.mubr.bf16.mxu1 %v4183_v9  ;;  %v4132_v33 = vmax.f32 %v3916_v28, 0.0 }
 0x142   :  { %v3764_v24 = vadd.f32 %v7059_v20, %v8274_v51  ;;  %v3755_v26 = vpop.f32.mrb[39].mxu0  ;;  %7181 = vmatmul.mubr.bf16.gmra.mrb[88].mxu1 %v4184_v4  ;;  %v4093_v31 = vmax.f32 %v3761_v15, 0.0  ;;  %v8378_v1 = vpack.c.bf16 %v4134_v30, %v4133_v21 }
 0x143   :  { %v3756_v29 = vadd.f32 %v8274_v51, %v3755_v26  ;;  %v4091_v34 = vmax.f32 %v3753_v19, 0.0  ;;  %v8380_v38 = vpack.c.bf16 %v4132_v33, %v4131_v27  ;;  %v7102_v40 = vpop.f32.mrb[24].mxu1 }
 0x144   :  { %v4094_v32 = vmax.f32 %v3764_v24, 0.0  ;;  %v3937_v43 = vadd.f32 %v7102_v40, %v8274_v51  ;;  %v3928_v44 = vpop.f32.mrb[25].mxu1 }
 0x145   :  { %v4092_v35 = vmax.f32 %v3756_v29, 0.0  ;;  %v3929_v47 = vadd.f32 %v8274_v51, %v3928_v44  ;;  %v7103_v48 = vpop.f32.mrb[26].mxu1 }
 0x146   :  { %v4186_v25 = vpack.c.bf16 %v4094_v32, %v4093_v31  ;;  %v4137_v52 = vmax.f32 %v3937_v43, 0.0  ;;  %v3940_v53 = vadd.f32 %v7103_v48, %v8274_v51  ;;  %v3931_v54 = vpop.f32.mrb[27].mxu1 }
 0x147   :  { %v4185_v41 = vpack.c.bf16 %v4092_v35, %v4091_v34  ;;  %v7062_v42 = vpop.f32.mrb[40].mxu0  ;;  %v4135_v59 = vmax.f32 %v3929_v47, 0.0  ;;  %v3932_v60 = vadd.f32 %v8274_v51, %v3931_v54 }
 0x148   :  { %v3777_v45 = vadd.f32 %v7062_v42, %v8274_v51  ;;  %v3768_v46 = vpop.f32.mrb[41].mxu0  ;;  %v4138_v62 = vmax.f32 %v3940_v53, 0.0 }
 0x149   :  { %v3769_v49 = vadd.f32 %v8274_v51, %v3768_v46  ;;  %v7063_v50 = vpop.f32.mrb[42].mxu0  ;;  %7184 = vmatprep.mubr.bf16.mxu1 %v4185_v41  ;;  %v4136_v4 = vmax.f32 %v3932_v60, 0.0 }
 0x14a   :  { %v3780_v55 = vadd.f32 %v7063_v50, %v8274_v51  ;;  %v3771_v58 = vpop.f32.mrb[43].mxu0  ;;  %7185 = vmatmul.mubr.bf16.gmra.mrb[92].mxu1 %v4186_v25  ;;  %v4097_v63 = vmax.f32 %v3777_v45, 0.0  ;;  %v8393_v10 = vpack.c.bf16 %v4138_v62, %v4137_v52 }
 0x14b   :  { %v3772_v57 = vadd.f32 %v8274_v51, %v3771_v58  ;;  %v4095_v8 = vmax.f32 %v3769_v49, 0.0  ;;  %v8395_v14 = vpack.c.bf16 %v4136_v4, %v4135_v59  ;;  %v7106_v15 = vpop.f32.mrb[28].mxu1 }
 0x14c   :  { %v4098_v0 = vmax.f32 %v3780_v55, 0.0  ;;  %v3953_v18 = vadd.f32 %v7106_v15, %v8274_v51  ;;  %v3944_v19 = vpop.f32.mrb[29].mxu1 }
 0x14d   :  { %v4096_v9 = vmax.f32 %v3772_v57, 0.0  ;;  %v3945_v22 = vadd.f32 %v8274_v51, %v3944_v19  ;;  %v7107_v23 = vpop.f32.mrb[30].mxu1 }
 0x14e   :  { %v4188_v12 = vpack.c.bf16 %v4098_v0, %v4097_v63  ;;  %v4141_v27 = vmax.f32 %v3953_v18, 0.0  ;;  %v3956_v28 = vadd.f32 %v7107_v23, %v8274_v51  ;;  %v3947_v3 = vpop.f32.mrb[31].mxu1 }
 0x14f   :  { %v4187_v16 = vpack.c.bf16 %v4096_v9, %v4095_v8  ;;  %v7066_v17 = vpop.f32.mrb[44].mxu0  ;;  %v4139_v31 = vmax.f32 %v3945_v22, 0.0  ;;  %v3948_v32 = vadd.f32 %v8274_v51, %v3947_v3 }
 0x150   :  { %v3793_v20 = vadd.f32 %v7066_v17, %v8274_v51  ;;  %v3784_v21 = vpop.f32.mrb[45].mxu0  ;;  %v4142_v34 = vmax.f32 %v3956_v28, 0.0 }
 0x151   :  { %v3785_v24 = vadd.f32 %v8274_v51, %v3784_v21  ;;  %v7067_v26 = vpop.f32.mrb[46].mxu0  ;;  %7188 = vmatprep.mubr.bf16.mxu1 %v4187_v16  ;;  %v4140_v40 = vmax.f32 %v3948_v32, 0.0 }
 0x152   :  { %v3796_v29 = vadd.f32 %v7067_v26, %v8274_v51  ;;  %v3787_v30 = vpop.f32.mrb[47].mxu0  ;;  %7189 = vmatmul.mubr.bf16.gmra.mrb[96].mxu1 %v4188_v12  ;;  %v4101_v35 = vmax.f32 %v3793_v20, 0.0  ;;  %v8405_v43 = vpack.c.bf16 %v4142_v34, %v4141_v27 }
 0x153   :  { %v3788_v33 = vadd.f32 %v8274_v51, %v3787_v30  ;;  %v4099_v41 = vmax.f32 %v3785_v24, 0.0  ;;  %v8407_v45 = vpack.c.bf16 %v4140_v40, %v4139_v31  ;;  %v7110_v46 = vpop.f32.mrb[32].mxu1 }
 0x154   :  { %v4102_v25 = vmax.f32 %v3796_v29, 0.0  ;;  %v3969_v49 = vadd.f32 %v7110_v46, %v8274_v51  ;;  %v3960_v50 = vpop.f32.mrb[33].mxu1 }
 0x155   :  { %v4100_v42 = vmax.f32 %v3788_v33, 0.0  ;;  %v3961_v54 = vadd.f32 %v8274_v51, %v3960_v50  ;;  %v7111_v55 = vpop.f32.mrb[34].mxu1 }
 0x156   :  { %v4190_v44 = vpack.c.bf16 %v4102_v25, %v4101_v35  ;;  %v4145_v60 = vmax.f32 %v3969_v49, 0.0  ;;  %v3972_v57 = vadd.f32 %v7111_v55, %v8274_v51  ;;  %v3963_v62 = vpop.f32.mrb[35].mxu1 }
 0x157   :  { %v4189_v47 = vpack.c.bf16 %v4100_v42, %v4099_v41  ;;  %v7070_v48 = vpop.f32.mrb[48].mxu0  ;;  %v4143_v0 = vmax.f32 %v3961_v54, 0.0  ;;  %v3964_v4 = vadd.f32 %v8274_v51, %v3963_v62 }
 0x158   :  { %v3809_v52 = vadd.f32 %v7070_v48, %v8274_v51  ;;  %v3800_v53 = vpop.f32.mrb[49].mxu0  ;;  %v4146_v9 = vmax.f32 %v3972_v57, 0.0 }
 0x159   :  { %v3801_v58 = vadd.f32 %v8274_v51, %v3800_v53  ;;  %v7071_v59 = vpop.f32.mrb[50].mxu0  ;;  %7192 = vmatprep.mubr.bf16.mxu1 %v4189_v47  ;;  %v4144_v16 = vmax.f32 %v3964_v4, 0.0 }
 0x15a   :  { %v3812_v61 = vadd.f32 %v7071_v59, %v8274_v51  ;;  %v3803_v63 = vpop.f32.mrb[51].mxu0  ;;  %7193 = vmatmul.mubr.bf16.gmra.mrb[100].mxu1 %v4190_v44  ;;  %v4105_v12 = vmax.f32 %v3809_v52, 0.0  ;;  %v8417_v19 = vpack.c.bf16 %v4146_v9, %v4145_v60 }
 0x15b   :  { %v3804_v8 = vadd.f32 %v8274_v51, %v3803_v63  ;;  %v4103_v17 = vmax.f32 %v3801_v58, 0.0  ;;  %v8419_v21 = vpack.c.bf16 %v4144_v16, %v4143_v0  ;;  %v7114_v22 = vpop.f32.mrb[36].mxu1 }
 0x15c   :  { %v4106_v15 = vmax.f32 %v3812_v61, 0.0  ;;  %v3985_v26 = vadd.f32 %v7114_v22, %v8274_v51  ;;  %v3976_v27 = vpop.f32.mrb[37].mxu1 }
 0x15d   :  { %v4104_v18 = vmax.f32 %v3804_v8, 0.0  ;;  %v3977_v29 = vadd.f32 %v8274_v51, %v3976_v27  ;;  %v7115_v30 = vpop.f32.mrb[38].mxu1 }
 0x15e   :  { %v4192_v20 = vpack.c.bf16 %v4106_v15, %v4105_v12  ;;  %v4149_v33 = vmax.f32 %v3985_v26, 0.0  ;;  %v3988_v34 = vadd.f32 %v7115_v30, %v8274_v51  ;;  %v3979_v35 = vpop.f32.mrb[39].mxu1 }
 0x15f   :  { %v4191_v23 = vpack.c.bf16 %v4104_v18, %v4103_v17  ;;  %v7074_v24 = vpop.f32.mrb[52].mxu0  ;;  %v4147_v41 = vmax.f32 %v3977_v29, 0.0  ;;  %v3980_v42 = vadd.f32 %v8274_v51, %v3979_v35 }
 0x160   :  { %v3825_v28 = vadd.f32 %v7074_v24, %v8274_v51  ;;  %v3816_v3 = vpop.f32.mrb[53].mxu0  ;;  %v4150_v46 = vmax.f32 %v3988_v34, 0.0 }
 0x161   :  { %v3817_v31 = vadd.f32 %v8274_v51, %v3816_v3  ;;  %v7075_v32 = vpop.f32.mrb[54].mxu0  ;;  %7196 = vmatprep.mubr.bf16.mxu1 %v4191_v23  ;;  %v4148_v49 = vmax.f32 %v3980_v42, 0.0 }
 0x162   :  { %v3828_v25 = vadd.f32 %v7075_v32, %v8274_v51  ;;  %v3819_v40 = vpop.f32.mrb[55].mxu0  ;;  %7197 = vmatmul.mubr.bf16.gmra.mrb[104].mxu1 %v4192_v20  ;;  %v4109_v47 = vmax.f32 %v3825_v28, 0.0  ;;  %v8429_v53 = vpack.c.bf16 %v4150_v46, %v4149_v33 }
 0x163   :  { %v3820_v44 = vadd.f32 %v8274_v51, %v3819_v40  ;;  %v4107_v50 = vmax.f32 %v3817_v31, 0.0  ;;  %v8431_v55 = vpack.c.bf16 %v4148_v49, %v4147_v41  ;;  %v7118_v58 = vpop.f32.mrb[40].mxu1 }
 0x164   :  { %v4110_v48 = vmax.f32 %v3828_v25, 0.0  ;;  %v4001_v60 = vadd.f32 %v7118_v58, %v8274_v51  ;;  %v3992_v57 = vpop.f32.mrb[41].mxu1 }
 0x165   :  { %v4108_v52 = vmax.f32 %v3820_v44, 0.0  ;;  %v3993_v62 = vadd.f32 %v8274_v51, %v3992_v57  ;;  %v7119_v61 = vpop.f32.mrb[42].mxu1 }
 0x166   :  { %v4194_v54 = vpack.c.bf16 %v4110_v48, %v4109_v47  ;;  %v4153_v63 = vmax.f32 %v4001_v60, 0.0  ;;  %v4004_v0 = vadd.f32 %v7119_v61, %v8274_v51  ;;  %v3995_v4 = vpop.f32.mrb[43].mxu1 }
 0x167   :  { %v4193_v59 = vpack.c.bf16 %v4108_v52, %v4107_v50  ;;  %v4151_v8 = vmax.f32 %v3993_v62, 0.0  ;;  %v3996_v9 = vadd.f32 %v8274_v51, %v3995_v4 }
 0x168   :  { %v4154_v12 = vmax.f32 %v4004_v0, 0.0 }
 0x169   :  { %7200 = vmatprep.mubr.bf16.mxu1 %v4193_v59  ;;  %v4152_v15 = vmax.f32 %v3996_v9, 0.0 }
 0x16a   :  { %7201 = vmatmul.mubr.bf16.gmra.mrb[108].mxu1 %v4194_v54  ;;  %v8438_v16 = vpack.c.bf16 %v4154_v12, %v4153_v63 }
 0x16b   :  { %7204 = vmatprep.mubr.bf16.mxu1 %v8311_v13  ;;  %v4215_v17 = vpack.c.bf16 %v4152_v15, %v4151_v8  ;;  %v7122_v18 = vpop.f32.mrb[44].mxu1 }
 0x16c   :  { %v4017_v20 = vadd.f32 %v7122_v18, %v8274_v51  ;;  %v4008_v22 = vpop.f32.mrb[45].mxu1 }
 0x16d   :  { %v4009_v23 = vadd.f32 %v8274_v51, %v4008_v22  ;;  %v7123_v24 = vpop.f32.mrb[46].mxu1 }
 0x16e   :  { %v4157_v26 = vmax.f32 %v4017_v20, 0.0  ;;  %v4020_v27 = vadd.f32 %v7123_v24, %v8274_v51  ;;  %v4011_v28 = vpop.f32.mrb[47].mxu1 }
 0x16f   :  { %v4155_v3 = vmax.f32 %v4009_v23, 0.0  ;;  %v4012_v13 = vadd.f32 %v8274_v51, %v4011_v28 }
 0x170   :  { %v4158_v29 = vmax.f32 %v4020_v27, 0.0 }
 0x171   :  { %v4156_v30 = vmax.f32 %v4012_v13, 0.0 }
 0x172   :  { %7205 = vmatmul.mubr.bf16.gmra.mrb[112].mxu1 %v8309_v11  ;;  %v4218_v31 = vpack.c.bf16 %v4158_v29, %v4157_v26 }
 0x173   :  { %7208 = vmatprep.mubr.bf16.mxu1 %v8326_v39  ;;  %v4217_v32 = vpack.c.bf16 %v4156_v30, %v4155_v3  ;;  %v7126_v33 = vpop.f32.mrb[48].mxu1 }
 0x174   :  { %v4033_v34 = vadd.f32 %v7126_v33, %v8274_v51  ;;  %v4024_v35 = vpop.f32.mrb[49].mxu1 }
 0x175   :  { %v4025_v25 = vadd.f32 %v8274_v51, %v4024_v35  ;;  %v7127_v40 = vpop.f32.mrb[50].mxu1 }
 0x176   :  { %v4161_v41 = vmax.f32 %v4033_v34, 0.0  ;;  %v4036_v42 = vadd.f32 %v7127_v40, %v8274_v51  ;;  %v4027_v11 = vpop.f32.mrb[51].mxu1 }
 0x177   :  { %v4159_v44 = vmax.f32 %v4025_v25, 0.0  ;;  %v4028_v39 = vadd.f32 %v8274_v51, %v4027_v11 }
 0x178   :  { %v4162_v46 = vmax.f32 %v4036_v42, 0.0 }
 0x179   :  { %v4160_v47 = vmax.f32 %v4028_v39, 0.0 }
 0x17a   :  { %7209 = vmatmul.mubr.bf16.gmra.mrb[116].mxu1 %v8324_v37  ;;  %v4220_v48 = vpack.c.bf16 %v4162_v46, %v4161_v41 }
 0x17b   :  { %7212 = vmatprep.mubr.bf16.mxu1 %v8338_v7  ;;  %v4219_v49 = vpack.c.bf16 %v4160_v47, %v4159_v44  ;;  %v7130_v50 = vpop.f32.mrb[52].mxu1 }
 0x17c   :  { %v4049_v52 = vadd.f32 %v7130_v50, %v8274_v51  ;;  %v4040_v54 = vpop.f32.mrb[53].mxu1 }
 0x17d   :  { %v4041_v58 = vadd.f32 %v8274_v51, %v4040_v54  ;;  %v7131_v59 = vpop.f32.mrb[54].mxu1 }
 0x17e   :  { %v4165_v60 = vmax.f32 %v4049_v52, 0.0  ;;  %v4052_v57 = vadd.f32 %v7131_v59, %v8274_v51  ;;  %v4043_v37 = vpop.f32.mrb[55].mxu1 }
 0x17f   :  { %v4163_v62 = vmax.f32 %v4041_v58, 0.0  ;;  %v4044_v7 = vadd.f32 %v8274_v51, %v4043_v37  ;;  %v8475_v51 = vld [vmem:[%s8877_s3] ss:$0 sm:$0xff] }
 0x180   :  { %v4166_v61 = vmax.f32 %v4052_v57, 0.0 }
 0x181   :  { %v4164_v63 = vmax.f32 %v4044_v7, 0.0 }
 0x182   :  { %7213 = vmatmul.mubr.bf16.gmra.mrb[120].mxu1 %v8336_v5  ;;  %v4222_v0 = vpack.c.bf16 %v4166_v61, %v4165_v60 }
 0x183   :  { %7216 = vmatprep.mubr.bf16.mxu1 %v8353_v36  ;;  %v4221_v4 = vpack.c.bf16 %v4164_v63, %v4163_v62 }
 0x18a   :  { %7217 = vmatmul.mubr.bf16.gmra.mrb[124].mxu1 %v8351_v6 }
 0x18b   :  { %7220 = vmatprep.mubr.bf16.mxu1 %v8365_v56 }
 0x192   :  { %7221 = vmatmul.mubr.bf16.gmra.mrb[128].mxu1 %v8363_v2 }
 0x193   :  { %7224 = vmatprep.mubr.bf16.mxu1 %v8380_v38 }
 0x19a   :  { %7225 = vmatmul.mubr.bf16.gmra.mrb[132].mxu1 %v8378_v1 }
 0x19b   :  { %7228 = vmatprep.mubr.bf16.mxu1 %v8395_v14 }
 0x1a2   :  { %7229 = vmatmul.mubr.bf16.gmra.mrb[136].mxu1 %v8393_v10 }
 0x1a3   :  { %7232 = vmatprep.mubr.bf16.mxu1 %v8407_v45 }
 0x1aa   :  { %7233 = vmatmul.mubr.bf16.gmra.mrb[140].mxu1 %v8405_v43 }
 0x1ab   :  { %7236 = vmatprep.mubr.bf16.mxu1 %v8419_v21 }
 0x1b2   :  { %7237 = vmatmul.mubr.bf16.gmra.mrb[144].mxu1 %v8417_v19 }
 0x1b3   :  { %7240 = vmatprep.mubr.bf16.mxu1 %v8431_v55 }
 0x1ba   :  { %7241 = vmatmul.mubr.bf16.gmra.mrb[148].mxu1 %v8429_v53 }
 0x1bb   :  { %7244 = vmatprep.mubr.bf16.mxu1 %v4215_v17 }
 0x1c2   :  { %7245 = vmatmul.mubr.bf16.gmra.mrb[152].mxu1 %v8438_v16 }
 0x1c3   :  { %7248 = vmatprep.mubr.bf16.mxu1 %v4217_v32 }
 0x1ca   :  { %7249 = vmatmul.mubr.bf16.gmra.mrb[156].mxu1 %v4218_v31 }
 0x1cb   :  { %7252 = vmatprep.mubr.bf16.mxu1 %v4219_v49 }
 0x1d2   :  { %7253 = vmatmul.mubr.bf16.gmra.mrb[160].mxu1 %v4220_v48 }
 0x1d3   :  { %7256 = vmatprep.mubr.bf16.mxu1 %v4221_v4 }
 0x1d5   :  { %v7150_v5 = vpop.f32.mrb[56].mxu1 }
 0x1d6   :  { %v4337_v6 = vadd.f32 %v7150_v5, %v8475_v51  ;;  %v4328_v36 = vpop.f32.mrb[57].mxu1 }
 0x1d7   :  { %v4329_v2 = vadd.f32 %v8475_v51, %v4328_v36  ;;  %v7151_v56 = vpop.f32.mrb[58].mxu1 }
 0x1d8   :  { %v4340_v1 = vadd.f32 %v7151_v56, %v8475_v51  ;;  %v4331_v38 = vpop.f32.mrb[59].mxu1  ;;  %v4777_v14 = vmax.f32 %v4337_v6, 0.0 }
 0x1d9   :  { %v4332_v10 = vadd.f32 %v8475_v51, %v4331_v38  ;;  %v4775_v45 = vmax.f32 %v4329_v2, 0.0 }
 0x1da   :  { %v4778_v43 = vmax.f32 %v4340_v1, 0.0  ;;  %7257 = vmatmul.mubr.bf16.gmra.mrb[164].mxu1 %v4222_v0 }
 0x1db   :  { %v4776_v19 = vmax.f32 %v4332_v10, 0.0 }
 0x1dc   :  { %v4888_v21 = vpack.c.bf16 %v4778_v43, %v4777_v14 }
 0x1dd   :  { %v4887_v53 = vpack.c.bf16 %v4776_v19, %v4775_v45  ;;  %v7154_v55 = vpop.f32.mrb[60].mxu1 }
 0x1de   :  { %v4353_v8 = vadd.f32 %v7154_v55, %v8475_v51  ;;  %v4344_v9 = vpop.f32.mrb[61].mxu1 }
 0x1df   :  { %v4345_v12 = vadd.f32 %v8475_v51, %v4344_v9  ;;  %v7155_v15 = vpop.f32.mrb[62].mxu1  ;;  %7276 = vmatprep.mubr.bf16.mxu0 %v4887_v53 }
 0x1e0   :  { %v4356_v16 = vadd.f32 %v7155_v15, %v8475_v51  ;;  %v4347_v17 = vpop.f32.mrb[63].mxu1  ;;  %7277 = vmatmul.mubr.bf16.vlgmr.msra.gmra.mrb[56].mxu0 %v4888_v21  ;;  %v4781_v20 = vmax.f32 %v4353_v8, 0.0 }
 0x1e1   :  { %v4348_v18 = vadd.f32 %v8475_v51, %v4347_v17  ;;  %v4779_v23 = vmax.f32 %v4345_v12, 0.0 }
 0x1e2   :  { %v4782_v22 = vmax.f32 %v4356_v16, 0.0 }
 0x1e3   :  { %v4780_v24 = vmax.f32 %v4348_v18, 0.0 }
 0x1e4   :  { %v4890_v26 = vpack.c.bf16 %v4782_v22, %v4781_v20 }
 0x1e5   :  { %v4889_v27 = vpack.c.bf16 %v4780_v24, %v4779_v23  ;;  %v7158_v28 = vpop.f32.mrb[64].mxu1 }
 0x1e6   :  { %v4369_v3 = vadd.f32 %v7158_v28, %v8475_v51  ;;  %v4360_v13 = vpop.f32.mrb[65].mxu1 }
 0x1e7   :  { %v4361_v29 = vadd.f32 %v8475_v51, %v4360_v13  ;;  %v7159_v30 = vpop.f32.mrb[66].mxu1  ;;  %7280 = vmatprep.mubr.bf16.mxu0 %v4889_v27 }
 0x1e8   :  { %v4372_v31 = vadd.f32 %v7159_v30, %v8475_v51  ;;  %v4363_v32 = vpop.f32.mrb[67].mxu1  ;;  %7281 = vmatmul.mubr.bf16.gmra.mrb[60].mxu0 %v4890_v26  ;;  %v4785_v34 = vmax.f32 %v4369_v3, 0.0 }
 0x1e9   :  { %v4364_v33 = vadd.f32 %v8475_v51, %v4363_v32  ;;  %v4783_v25 = vmax.f32 %v4361_v29, 0.0 }
 0x1ea   :  { %v4786_v35 = vmax.f32 %v4372_v31, 0.0 }
 0x1eb   :  { %v4784_v40 = vmax.f32 %v4364_v33, 0.0 }
 0x1ec   :  { %v4892_v41 = vpack.c.bf16 %v4786_v35, %v4785_v34 }
 0x1ed   :  { %v4891_v42 = vpack.c.bf16 %v4784_v40, %v4783_v25  ;;  %v7162_v11 = vpop.f32.mrb[68].mxu1 }
 0x1ee   :  { %v4385_v44 = vadd.f32 %v7162_v11, %v8475_v51  ;;  %v4376_v39 = vpop.f32.mrb[69].mxu1 }
 0x1ef   :  { %v4377_v46 = vadd.f32 %v8475_v51, %v4376_v39  ;;  %v7163_v47 = vpop.f32.mrb[70].mxu1  ;;  %7284 = vmatprep.mubr.bf16.mxu0 %v4891_v42 }
 0x1f0   :  { %v4388_v48 = vadd.f32 %v7163_v47, %v8475_v51  ;;  %v4379_v49 = vpop.f32.mrb[71].mxu1  ;;  %7285 = vmatmul.mubr.bf16.gmra.mrb[64].mxu0 %v4892_v41  ;;  %v4789_v52 = vmax.f32 %v4385_v44, 0.0 }
 0x1f1   :  { %v4380_v50 = vadd.f32 %v8475_v51, %v4379_v49  ;;  %v4787_v58 = vmax.f32 %v4377_v46, 0.0 }
 0x1f2   :  { %v4790_v54 = vmax.f32 %v4388_v48, 0.0 }
 0x1f3   :  { %v4788_v59 = vmax.f32 %v4380_v50, 0.0 }
 0x1f4   :  { %v4894_v60 = vpack.c.bf16 %v4790_v54, %v4789_v52 }
 0x1f5   :  { %v4893_v57 = vpack.c.bf16 %v4788_v59, %v4787_v58  ;;  %v7166_v37 = vpop.f32.mrb[72].mxu1 }
 0x1f6   :  { %v4401_v62 = vadd.f32 %v7166_v37, %v8475_v51  ;;  %v4392_v7 = vpop.f32.mrb[73].mxu1 }
 0x1f7   :  { %v4393_v61 = vadd.f32 %v8475_v51, %v4392_v7  ;;  %v7167_v63 = vpop.f32.mrb[74].mxu1  ;;  %7288 = vmatprep.mubr.bf16.mxu0 %v4893_v57 }
 0x1f8   :  { %v4404_v0 = vadd.f32 %v7167_v63, %v8475_v51  ;;  %v4395_v4 = vpop.f32.mrb[75].mxu1  ;;  %7289 = vmatmul.mubr.bf16.gmra.mrb[68].mxu0 %v4894_v60  ;;  %v4793_v6 = vmax.f32 %v4401_v62, 0.0 }
 0x1f9   :  { %v4396_v5 = vadd.f32 %v8475_v51, %v4395_v4  ;;  %v4791_v2 = vmax.f32 %v4393_v61, 0.0 }
 0x1fa   :  { %v4794_v36 = vmax.f32 %v4404_v0, 0.0 }
 0x1fb   :  { %v4792_v56 = vmax.f32 %v4396_v5, 0.0 }
 0x1fc   :  { %v4896_v1 = vpack.c.bf16 %v4794_v36, %v4793_v6 }
 0x1fd   :  { %v4895_v38 = vpack.c.bf16 %v4792_v56, %v4791_v2  ;;  %v7170_v10 = vpop.f32.mrb[76].mxu1 }
 0x1fe   :  { %v4417_v14 = vadd.f32 %v7170_v10, %v8475_v51  ;;  %v4408_v43 = vpop.f32.mrb[77].mxu1 }
 0x1ff   :  { %v4409_v45 = vadd.f32 %v8475_v51, %v4408_v43  ;;  %v7171_v19 = vpop.f32.mrb[78].mxu1  ;;  %7292 = vmatprep.mubr.bf16.mxu0 %v4895_v38 }
 0x200   :  { %v4420_v21 = vadd.f32 %v7171_v19, %v8475_v51  ;;  %v4411_v53 = vpop.f32.mrb[79].mxu1  ;;  %7293 = vmatmul.mubr.bf16.gmra.mrb[72].mxu0 %v4896_v1  ;;  %v4797_v8 = vmax.f32 %v4417_v14, 0.0 }
 0x201   :  { %v4412_v55 = vadd.f32 %v8475_v51, %v4411_v53  ;;  %v4795_v12 = vmax.f32 %v4409_v45, 0.0 }
 0x202   :  { %v4798_v9 = vmax.f32 %v4420_v21, 0.0 }
 0x203   :  { %v4796_v15 = vmax.f32 %v4412_v55, 0.0 }
 0x204   :  { %v4898_v16 = vpack.c.bf16 %v4798_v9, %v4797_v8 }
 0x205   :  { %v4897_v17 = vpack.c.bf16 %v4796_v15, %v4795_v12  ;;  %v7174_v18 = vpop.f32.mrb[80].mxu1 }
 0x206   :  { %v4433_v20 = vadd.f32 %v7174_v18, %v8475_v51  ;;  %v4424_v22 = vpop.f32.mrb[81].mxu1 }
 0x207   :  { %v4425_v23 = vadd.f32 %v8475_v51, %v4424_v22  ;;  %v7175_v24 = vpop.f32.mrb[82].mxu1  ;;  %7296 = vmatprep.mubr.bf16.mxu0 %v4897_v17 }
 0x208   :  { %v4436_v26 = vadd.f32 %v7175_v24, %v8475_v51  ;;  %v4427_v27 = vpop.f32.mrb[83].mxu1  ;;  %7297 = vmatmul.mubr.bf16.gmra.mrb[76].mxu0 %v4898_v16  ;;  %v4801_v3 = vmax.f32 %v4433_v20, 0.0 }
 0x209   :  { %v4428_v28 = vadd.f32 %v8475_v51, %v4427_v27  ;;  %v4799_v29 = vmax.f32 %v4425_v23, 0.0 }
 0x20a   :  { %v4802_v13 = vmax.f32 %v4436_v26, 0.0 }
 0x20b   :  { %v4800_v30 = vmax.f32 %v4428_v28, 0.0 }
 0x20c   :  { %v4900_v31 = vpack.c.bf16 %v4802_v13, %v4801_v3 }
 0x20d   :  { %v4899_v32 = vpack.c.bf16 %v4800_v30, %v4799_v29  ;;  %v7178_v33 = vpop.f32.mrb[84].mxu1 }
 0x20e   :  { %v4449_v34 = vadd.f32 %v7178_v33, %v8475_v51  ;;  %v4440_v35 = vpop.f32.mrb[85].mxu1 }
 0x20f   :  { %v4441_v25 = vadd.f32 %v8475_v51, %v4440_v35  ;;  %v7179_v40 = vpop.f32.mrb[86].mxu1  ;;  %7300 = vmatprep.mubr.bf16.mxu0 %v4899_v32 }
 0x210   :  { %v4452_v41 = vadd.f32 %v7179_v40, %v8475_v51  ;;  %v4443_v42 = vpop.f32.mrb[87].mxu1  ;;  %7301 = vmatmul.mubr.bf16.gmra.mrb[80].mxu0 %v4900_v31  ;;  %v4805_v44 = vmax.f32 %v4449_v34, 0.0 }
 0x211   :  { %v4444_v11 = vadd.f32 %v8475_v51, %v4443_v42  ;;  %v4803_v46 = vmax.f32 %v4441_v25, 0.0 }
 0x212   :  { %v4806_v39 = vmax.f32 %v4452_v41, 0.0 }
 0x213   :  { %v4804_v47 = vmax.f32 %v4444_v11, 0.0 }
 0x214   :  { %v4902_v48 = vpack.c.bf16 %v4806_v39, %v4805_v44 }
 0x215   :  { %v4901_v49 = vpack.c.bf16 %v4804_v47, %v4803_v46  ;;  %v7182_v50 = vpop.f32.mrb[88].mxu1 }
 0x216   :  { %v4465_v52 = vadd.f32 %v7182_v50, %v8475_v51  ;;  %v4456_v54 = vpop.f32.mrb[89].mxu1 }
 0x217   :  { %v4457_v58 = vadd.f32 %v8475_v51, %v4456_v54  ;;  %v7183_v59 = vpop.f32.mrb[90].mxu1  ;;  %7304 = vmatprep.mubr.bf16.mxu0 %v4901_v49 }
 0x218   :  { %v4468_v60 = vadd.f32 %v7183_v59, %v8475_v51  ;;  %v4459_v57 = vpop.f32.mrb[91].mxu1  ;;  %7305 = vmatmul.mubr.bf16.gmra.mrb[84].mxu0 %v4902_v48  ;;  %v4809_v62 = vmax.f32 %v4465_v52, 0.0 }
 0x219   :  { %v4460_v37 = vadd.f32 %v8475_v51, %v4459_v57  ;;  %v4807_v61 = vmax.f32 %v4457_v58, 0.0 }
 0x21a   :  { %v4810_v7 = vmax.f32 %v4468_v60, 0.0 }
 0x21b   :  { %v4808_v63 = vmax.f32 %v4460_v37, 0.0 }
 0x21c   :  { %v4904_v0 = vpack.c.bf16 %v4810_v7, %v4809_v62 }
 0x21d   :  { %v4903_v4 = vpack.c.bf16 %v4808_v63, %v4807_v61  ;;  %v7186_v5 = vpop.f32.mrb[92].mxu1 }
 0x21e   :  { %v4481_v6 = vadd.f32 %v7186_v5, %v8475_v51  ;;  %v4472_v36 = vpop.f32.mrb[93].mxu1 }
 0x21f   :  { %v4473_v2 = vadd.f32 %v8475_v51, %v4472_v36  ;;  %v7187_v56 = vpop.f32.mrb[94].mxu1  ;;  %7308 = vmatprep.mubr.bf16.mxu0 %v4903_v4 }
 0x220   :  { %v4484_v1 = vadd.f32 %v7187_v56, %v8475_v51  ;;  %v4475_v38 = vpop.f32.mrb[95].mxu1  ;;  %7309 = vmatmul.mubr.bf16.gmra.mrb[88].mxu0 %v4904_v0  ;;  %v4813_v14 = vmax.f32 %v4481_v6, 0.0 }
 0x221   :  { %v4476_v10 = vadd.f32 %v8475_v51, %v4475_v38  ;;  %v4811_v45 = vmax.f32 %v4473_v2, 0.0 }
 0x222   :  { %v4814_v43 = vmax.f32 %v4484_v1, 0.0 }
 0x223   :  { %v4812_v19 = vmax.f32 %v4476_v10, 0.0 }
 0x224   :  { %v4906_v21 = vpack.c.bf16 %v4814_v43, %v4813_v14 }
 0x225   :  { %v4905_v53 = vpack.c.bf16 %v4812_v19, %v4811_v45  ;;  %v7190_v55 = vpop.f32.mrb[96].mxu1 }
 0x226   :  { %v4497_v8 = vadd.f32 %v7190_v55, %v8475_v51  ;;  %v4488_v9 = vpop.f32.mrb[97].mxu1 }
 0x227   :  { %v4489_v12 = vadd.f32 %v8475_v51, %v4488_v9  ;;  %v7191_v15 = vpop.f32.mrb[98].mxu1  ;;  %7312 = vmatprep.mubr.bf16.mxu0 %v4905_v53 }
 0x228   :  { %v4500_v16 = vadd.f32 %v7191_v15, %v8475_v51  ;;  %v4491_v17 = vpop.f32.mrb[99].mxu1  ;;  %7313 = vmatmul.mubr.bf16.gmra.mrb[92].mxu0 %v4906_v21  ;;  %v4817_v20 = vmax.f32 %v4497_v8, 0.0 }
 0x229   :  { %v4492_v18 = vadd.f32 %v8475_v51, %v4491_v17  ;;  %v4815_v23 = vmax.f32 %v4489_v12, 0.0 }
 0x22a   :  { %v4818_v22 = vmax.f32 %v4500_v16, 0.0 }
 0x22b   :  { %v4816_v24 = vmax.f32 %v4492_v18, 0.0 }
 0x22c   :  { %v4908_v26 = vpack.c.bf16 %v4818_v22, %v4817_v20 }
 0x22d   :  { %v4907_v27 = vpack.c.bf16 %v4816_v24, %v4815_v23  ;;  %v7194_v28 = vpop.f32.mrb[100].mxu1 }
 0x22e   :  { %v4513_v3 = vadd.f32 %v7194_v28, %v8475_v51  ;;  %v4504_v13 = vpop.f32.mrb[101].mxu1 }
 0x22f   :  { %v4505_v29 = vadd.f32 %v8475_v51, %v4504_v13  ;;  %v7195_v30 = vpop.f32.mrb[102].mxu1  ;;  %7316 = vmatprep.mubr.bf16.mxu0 %v4907_v27 }
 0x230   :  { %v4516_v31 = vadd.f32 %v7195_v30, %v8475_v51  ;;  %v4507_v32 = vpop.f32.mrb[103].mxu1  ;;  %7317 = vmatmul.mubr.bf16.gmra.mrb[96].mxu0 %v4908_v26  ;;  %v4821_v34 = vmax.f32 %v4513_v3, 0.0 }
 0x231   :  { %v4508_v33 = vadd.f32 %v8475_v51, %v4507_v32  ;;  %v4819_v25 = vmax.f32 %v4505_v29, 0.0 }
 0x232   :  { %v4822_v35 = vmax.f32 %v4516_v31, 0.0 }
 0x233   :  { %v4820_v40 = vmax.f32 %v4508_v33, 0.0 }
 0x234   :  { %v4910_v41 = vpack.c.bf16 %v4822_v35, %v4821_v34 }
 0x235   :  { %v4909_v42 = vpack.c.bf16 %v4820_v40, %v4819_v25  ;;  %v7198_v11 = vpop.f32.mrb[104].mxu1 }
 0x236   :  { %v4529_v44 = vadd.f32 %v7198_v11, %v8475_v51  ;;  %v4520_v39 = vpop.f32.mrb[105].mxu1 }
 0x237   :  { %v4521_v46 = vadd.f32 %v8475_v51, %v4520_v39  ;;  %v7199_v47 = vpop.f32.mrb[106].mxu1  ;;  %7320 = vmatprep.mubr.bf16.mxu0 %v4909_v42 }
 0x238   :  { %v4532_v48 = vadd.f32 %v7199_v47, %v8475_v51  ;;  %v4523_v49 = vpop.f32.mrb[107].mxu1  ;;  %7321 = vmatmul.mubr.bf16.gmra.mrb[100].mxu0 %v4910_v41  ;;  %v4825_v52 = vmax.f32 %v4529_v44, 0.0 }
 0x239   :  { %v4524_v50 = vadd.f32 %v8475_v51, %v4523_v49  ;;  %v4823_v58 = vmax.f32 %v4521_v46, 0.0 }
 0x23a   :  { %v4826_v54 = vmax.f32 %v4532_v48, 0.0 }
 0x23b   :  { %v4824_v59 = vmax.f32 %v4524_v50, 0.0 }
 0x23c   :  { %v4912_v60 = vpack.c.bf16 %v4826_v54, %v4825_v52 }
 0x23d   :  { %v4911_v57 = vpack.c.bf16 %v4824_v59, %v4823_v58  ;;  %v7202_v37 = vpop.f32.mrb[108].mxu1 }
 0x23e   :  { %v4545_v62 = vadd.f32 %v7202_v37, %v8475_v51  ;;  %v4536_v7 = vpop.f32.mrb[109].mxu1 }
 0x23f   :  { %v4537_v61 = vadd.f32 %v8475_v51, %v4536_v7  ;;  %v7203_v63 = vpop.f32.mrb[110].mxu1  ;;  %7324 = vmatprep.mubr.bf16.mxu0 %v4911_v57 }
 0x240   :  { %v4548_v0 = vadd.f32 %v7203_v63, %v8475_v51  ;;  %v4539_v4 = vpop.f32.mrb[111].mxu1  ;;  %7325 = vmatmul.mubr.bf16.gmra.mrb[104].mxu0 %v4912_v60  ;;  %v4829_v6 = vmax.f32 %v4545_v62, 0.0 }
 0x241   :  { %v4540_v5 = vadd.f32 %v8475_v51, %v4539_v4  ;;  %v4827_v2 = vmax.f32 %v4537_v61, 0.0 }
 0x242   :  { %v4830_v36 = vmax.f32 %v4548_v0, 0.0 }
 0x243   :  { %v4828_v56 = vmax.f32 %v4540_v5, 0.0 }
 0x244   :  { %v4914_v1 = vpack.c.bf16 %v4830_v36, %v4829_v6 }
 0x245   :  { %v4913_v38 = vpack.c.bf16 %v4828_v56, %v4827_v2  ;;  %v7206_v10 = vpop.f32.mrb[112].mxu1 }
 0x246   :  { %v4561_v14 = vadd.f32 %v7206_v10, %v8475_v51  ;;  %v4552_v43 = vpop.f32.mrb[113].mxu1 }
 0x247   :  { %v4553_v45 = vadd.f32 %v8475_v51, %v4552_v43  ;;  %v7207_v19 = vpop.f32.mrb[114].mxu1  ;;  %7328 = vmatprep.mubr.bf16.mxu0 %v4913_v38 }
 0x248   :  { %v4564_v21 = vadd.f32 %v7207_v19, %v8475_v51  ;;  %v4555_v53 = vpop.f32.mrb[115].mxu1  ;;  %7329 = vmatmul.mubr.bf16.gmra.mrb[108].mxu0 %v4914_v1  ;;  %v4833_v8 = vmax.f32 %v4561_v14, 0.0 }
 0x249   :  { %v4556_v55 = vadd.f32 %v8475_v51, %v4555_v53  ;;  %v4831_v12 = vmax.f32 %v4553_v45, 0.0 }
 0x24a   :  { %v4834_v9 = vmax.f32 %v4564_v21, 0.0 }
 0x24b   :  { %v4832_v15 = vmax.f32 %v4556_v55, 0.0 }
 0x24c   :  { %v4916_v16 = vpack.c.bf16 %v4834_v9, %v4833_v8 }
 0x24d   :  { %v4915_v17 = vpack.c.bf16 %v4832_v15, %v4831_v12  ;;  %v7210_v18 = vpop.f32.mrb[116].mxu1 }
 0x24e   :  { %v4577_v20 = vadd.f32 %v7210_v18, %v8475_v51  ;;  %v4568_v22 = vpop.f32.mrb[117].mxu1 }
 0x24f   :  { %v4569_v23 = vadd.f32 %v8475_v51, %v4568_v22  ;;  %v7211_v24 = vpop.f32.mrb[118].mxu1  ;;  %7332 = vmatprep.mubr.bf16.mxu0 %v4915_v17 }
 0x250   :  { %v4580_v26 = vadd.f32 %v7211_v24, %v8475_v51  ;;  %v4571_v27 = vpop.f32.mrb[119].mxu1  ;;  %7333 = vmatmul.mubr.bf16.gmra.mrb[112].mxu0 %v4916_v16  ;;  %v4837_v3 = vmax.f32 %v4577_v20, 0.0 }
 0x251   :  { %v4572_v28 = vadd.f32 %v8475_v51, %v4571_v27  ;;  %v4835_v29 = vmax.f32 %v4569_v23, 0.0 }
 0x252   :  { %v4838_v13 = vmax.f32 %v4580_v26, 0.0 }
 0x253   :  { %v4836_v30 = vmax.f32 %v4572_v28, 0.0 }
 0x254   :  { %v4918_v31 = vpack.c.bf16 %v4838_v13, %v4837_v3 }
 0x255   :  { %v4917_v32 = vpack.c.bf16 %v4836_v30, %v4835_v29  ;;  %v7214_v33 = vpop.f32.mrb[120].mxu1 }
 0x256   :  { %v4593_v34 = vadd.f32 %v7214_v33, %v8475_v51  ;;  %v4584_v35 = vpop.f32.mrb[121].mxu1 }
 0x257   :  { %v4585_v25 = vadd.f32 %v8475_v51, %v4584_v35  ;;  %v7215_v40 = vpop.f32.mrb[122].mxu1  ;;  %7336 = vmatprep.mubr.bf16.mxu0 %v4917_v32 }
 0x258   :  { %v4596_v41 = vadd.f32 %v7215_v40, %v8475_v51  ;;  %v4587_v42 = vpop.f32.mrb[123].mxu1  ;;  %7337 = vmatmul.mubr.bf16.gmra.mrb[116].mxu0 %v4918_v31  ;;  %v4841_v44 = vmax.f32 %v4593_v34, 0.0 }
 0x259   :  { %v4588_v11 = vadd.f32 %v8475_v51, %v4587_v42  ;;  %v4839_v46 = vmax.f32 %v4585_v25, 0.0 }
 0x25a   :  { %v4842_v39 = vmax.f32 %v4596_v41, 0.0 }
 0x25b   :  { %v4840_v47 = vmax.f32 %v4588_v11, 0.0 }
 0x25c   :  { %v4920_v48 = vpack.c.bf16 %v4842_v39, %v4841_v44 }
 0x25d   :  { %v4919_v49 = vpack.c.bf16 %v4840_v47, %v4839_v46  ;;  %v7218_v50 = vpop.f32.mrb[124].mxu1 }
 0x25e   :  { %v4609_v52 = vadd.f32 %v7218_v50, %v8475_v51  ;;  %v4600_v54 = vpop.f32.mrb[125].mxu1 }
 0x25f   :  { %v4601_v58 = vadd.f32 %v8475_v51, %v4600_v54  ;;  %v7219_v59 = vpop.f32.mrb[126].mxu1  ;;  %7340 = vmatprep.mubr.bf16.mxu0 %v4919_v49 }
 0x260   :  { %v4612_v60 = vadd.f32 %v7219_v59, %v8475_v51  ;;  %v4603_v57 = vpop.f32.mrb[127].mxu1  ;;  %7341 = vmatmul.mubr.bf16.gmra.mrb[120].mxu0 %v4920_v48  ;;  %v4845_v62 = vmax.f32 %v4609_v52, 0.0 }
 0x261   :  { %v4604_v37 = vadd.f32 %v8475_v51, %v4603_v57  ;;  %v4843_v61 = vmax.f32 %v4601_v58, 0.0 }
 0x262   :  { %v4846_v7 = vmax.f32 %v4612_v60, 0.0 }
 0x263   :  { %v4844_v63 = vmax.f32 %v4604_v37, 0.0 }
 0x264   :  { %v4922_v0 = vpack.c.bf16 %v4846_v7, %v4845_v62 }
 0x265   :  { %v4921_v4 = vpack.c.bf16 %v4844_v63, %v4843_v61  ;;  %v7222_v5 = vpop.f32.mrb[128].mxu1 }
 0x266   :  { %v4625_v6 = vadd.f32 %v7222_v5, %v8475_v51  ;;  %v4616_v36 = vpop.f32.mrb[129].mxu1 }
 0x267   :  { %v4617_v2 = vadd.f32 %v8475_v51, %v4616_v36  ;;  %v7223_v56 = vpop.f32.mrb[130].mxu1  ;;  %7344 = vmatprep.mubr.bf16.mxu0 %v4921_v4 }
 0x268   :  { %v4628_v1 = vadd.f32 %v7223_v56, %v8475_v51  ;;  %v4619_v38 = vpop.f32.mrb[131].mxu1  ;;  %7345 = vmatmul.mubr.bf16.gmra.mrb[124].mxu0 %v4922_v0  ;;  %v4849_v14 = vmax.f32 %v4625_v6, 0.0 }
 0x269   :  { %v4620_v10 = vadd.f32 %v8475_v51, %v4619_v38  ;;  %v4847_v45 = vmax.f32 %v4617_v2, 0.0 }
 0x26a   :  { %v4850_v43 = vmax.f32 %v4628_v1, 0.0 }
 0x26b   :  { %v4848_v19 = vmax.f32 %v4620_v10, 0.0 }
 0x26c   :  { %v4924_v21 = vpack.c.bf16 %v4850_v43, %v4849_v14 }
 0x26d   :  { %v4923_v53 = vpack.c.bf16 %v4848_v19, %v4847_v45  ;;  %v7226_v55 = vpop.f32.mrb[132].mxu1 }
 0x26e   :  { %v4641_v8 = vadd.f32 %v7226_v55, %v8475_v51  ;;  %v4632_v9 = vpop.f32.mrb[133].mxu1 }
 0x26f   :  { %v4633_v12 = vadd.f32 %v8475_v51, %v4632_v9  ;;  %v7227_v15 = vpop.f32.mrb[134].mxu1  ;;  %7348 = vmatprep.mubr.bf16.mxu0 %v4923_v53 }
 0x270   :  { %v4644_v16 = vadd.f32 %v7227_v15, %v8475_v51  ;;  %v4635_v17 = vpop.f32.mrb[135].mxu1  ;;  %7349 = vmatmul.mubr.bf16.gmra.mrb[128].mxu0 %v4924_v21  ;;  %v4853_v20 = vmax.f32 %v4641_v8, 0.0 }
 0x271   :  { %v4636_v18 = vadd.f32 %v8475_v51, %v4635_v17  ;;  %v4851_v23 = vmax.f32 %v4633_v12, 0.0 }
 0x272   :  { %v4854_v22 = vmax.f32 %v4644_v16, 0.0 }
 0x273   :  { %v4852_v24 = vmax.f32 %v4636_v18, 0.0 }
 0x274   :  { %v4926_v26 = vpack.c.bf16 %v4854_v22, %v4853_v20 }
 0x275   :  { %v4925_v27 = vpack.c.bf16 %v4852_v24, %v4851_v23  ;;  %v7230_v28 = vpop.f32.mrb[136].mxu1 }
 0x276   :  { %v4657_v3 = vadd.f32 %v7230_v28, %v8475_v51  ;;  %v4648_v13 = vpop.f32.mrb[137].mxu1 }
 0x277   :  { %v4649_v29 = vadd.f32 %v8475_v51, %v4648_v13  ;;  %v7231_v30 = vpop.f32.mrb[138].mxu1  ;;  %7352 = vmatprep.mubr.bf16.mxu0 %v4925_v27 }
 0x278   :  { %v4660_v31 = vadd.f32 %v7231_v30, %v8475_v51  ;;  %v4651_v32 = vpop.f32.mrb[139].mxu1  ;;  %7353 = vmatmul.mubr.bf16.gmra.mrb[132].mxu0 %v4926_v26  ;;  %v4857_v34 = vmax.f32 %v4657_v3, 0.0 }
 0x279   :  { %v4652_v33 = vadd.f32 %v8475_v51, %v4651_v32  ;;  %v4855_v25 = vmax.f32 %v4649_v29, 0.0 }
 0x27a   :  { %v4858_v35 = vmax.f32 %v4660_v31, 0.0 }
 0x27b   :  { %v4856_v40 = vmax.f32 %v4652_v33, 0.0 }
 0x27c   :  { %v4928_v41 = vpack.c.bf16 %v4858_v35, %v4857_v34 }
 0x27d   :  { %v4927_v42 = vpack.c.bf16 %v4856_v40, %v4855_v25  ;;  %v7234_v11 = vpop.f32.mrb[140].mxu1 }
 0x27e   :  { %v4673_v44 = vadd.f32 %v7234_v11, %v8475_v51  ;;  %v4664_v39 = vpop.f32.mrb[141].mxu1 }
 0x27f   :  { %v4665_v46 = vadd.f32 %v8475_v51, %v4664_v39  ;;  %v7235_v47 = vpop.f32.mrb[142].mxu1  ;;  %7356 = vmatprep.mubr.bf16.mxu0 %v4927_v42 }
 0x280   :  { %v4676_v48 = vadd.f32 %v7235_v47, %v8475_v51  ;;  %v4667_v49 = vpop.f32.mrb[143].mxu1  ;;  %7357 = vmatmul.mubr.bf16.gmra.mrb[136].mxu0 %v4928_v41  ;;  %v4861_v52 = vmax.f32 %v4673_v44, 0.0 }
 0x281   :  { %v4668_v50 = vadd.f32 %v8475_v51, %v4667_v49  ;;  %v4859_v58 = vmax.f32 %v4665_v46, 0.0 }
 0x282   :  { %v4862_v54 = vmax.f32 %v4676_v48, 0.0 }
 0x283   :  { %v4860_v59 = vmax.f32 %v4668_v50, 0.0 }
 0x284   :  { %v4930_v60 = vpack.c.bf16 %v4862_v54, %v4861_v52 }
 0x285   :  { %v4929_v57 = vpack.c.bf16 %v4860_v59, %v4859_v58  ;;  %v7238_v37 = vpop.f32.mrb[144].mxu1 }
 0x286   :  { %v4689_v62 = vadd.f32 %v7238_v37, %v8475_v51  ;;  %v4680_v7 = vpop.f32.mrb[145].mxu1 }
 0x287   :  { %v4681_v61 = vadd.f32 %v8475_v51, %v4680_v7  ;;  %v7239_v63 = vpop.f32.mrb[146].mxu1  ;;  %7360 = vmatprep.mubr.bf16.mxu0 %v4929_v57 }
 0x288   :  { %v4692_v0 = vadd.f32 %v7239_v63, %v8475_v51  ;;  %v4683_v4 = vpop.f32.mrb[147].mxu1  ;;  %7361 = vmatmul.mubr.bf16.gmra.mrb[140].mxu0 %v4930_v60  ;;  %v4865_v6 = vmax.f32 %v4689_v62, 0.0 }
 0x289   :  { %v4684_v5 = vadd.f32 %v8475_v51, %v4683_v4  ;;  %v4863_v2 = vmax.f32 %v4681_v61, 0.0 }
 0x28a   :  { %v4866_v36 = vmax.f32 %v4692_v0, 0.0 }
 0x28b   :  { %v4864_v56 = vmax.f32 %v4684_v5, 0.0 }
 0x28c   :  { %v4932_v1 = vpack.c.bf16 %v4866_v36, %v4865_v6 }
 0x28d   :  { %v4931_v38 = vpack.c.bf16 %v4864_v56, %v4863_v2  ;;  %v7242_v10 = vpop.f32.mrb[148].mxu1 }
 0x28e   :  { %v4705_v14 = vadd.f32 %v7242_v10, %v8475_v51  ;;  %v4696_v43 = vpop.f32.mrb[149].mxu1 }
 0x28f   :  { %v4697_v45 = vadd.f32 %v8475_v51, %v4696_v43  ;;  %v7243_v19 = vpop.f32.mrb[150].mxu1  ;;  %7364 = vmatprep.mubr.bf16.mxu0 %v4931_v38 }
 0x290   :  { %v4708_v21 = vadd.f32 %v7243_v19, %v8475_v51  ;;  %v4699_v53 = vpop.f32.mrb[151].mxu1  ;;  %7365 = vmatmul.mubr.bf16.gmra.mrb[144].mxu0 %v4932_v1  ;;  %v4869_v8 = vmax.f32 %v4705_v14, 0.0 }
 0x291   :  { %v4700_v55 = vadd.f32 %v8475_v51, %v4699_v53  ;;  %v4867_v12 = vmax.f32 %v4697_v45, 0.0  ;;  %v8592_v53 = vld [vmem:[%s8879_s5] ss:$0 sm:$0xff] }
 0x292   :  { %v4870_v9 = vmax.f32 %v4708_v21, 0.0 }
 0x293   :  { %v4868_v15 = vmax.f32 %v4700_v55, 0.0 }
 0x294   :  { %v4934_v16 = vpack.c.bf16 %v4870_v9, %v4869_v8 }
 0x295   :  { %v4933_v17 = vpack.c.bf16 %v4868_v15, %v4867_v12  ;;  %v7246_v18 = vpop.f32.mrb[152].mxu1 }
 0x296   :  { %v4721_v20 = vadd.f32 %v7246_v18, %v8475_v51  ;;  %v4712_v22 = vpop.f32.mrb[153].mxu1 }
 0x297   :  { %v4713_v23 = vadd.f32 %v8475_v51, %v4712_v22  ;;  %v7247_v24 = vpop.f32.mrb[154].mxu1  ;;  %7368 = vmatprep.mubr.bf16.mxu0 %v4933_v17 }
 0x298   :  { %v4724_v26 = vadd.f32 %v7247_v24, %v8475_v51  ;;  %v4715_v27 = vpop.f32.mrb[155].mxu1  ;;  %7369 = vmatmul.mubr.bf16.gmra.mrb[148].mxu0 %v4934_v16  ;;  %v4873_v3 = vmax.f32 %v4721_v20, 0.0 }
 0x299   :  { %v4716_v28 = vadd.f32 %v8475_v51, %v4715_v27  ;;  %v4871_v29 = vmax.f32 %v4713_v23, 0.0 }
 0x29a   :  { %v4874_v13 = vmax.f32 %v4724_v26, 0.0 }
 0x29b   :  { %v4872_v30 = vmax.f32 %v4716_v28, 0.0 }
 0x29c   :  { %v4936_v31 = vpack.c.bf16 %v4874_v13, %v4873_v3 }
 0x29d   :  { %v4935_v32 = vpack.c.bf16 %v4872_v30, %v4871_v29  ;;  %v7250_v33 = vpop.f32.mrb[156].mxu1 }
 0x29e   :  { %v4737_v34 = vadd.f32 %v7250_v33, %v8475_v51  ;;  %v4728_v35 = vpop.f32.mrb[157].mxu1 }
 0x29f   :  { %v4729_v25 = vadd.f32 %v8475_v51, %v4728_v35  ;;  %v7251_v40 = vpop.f32.mrb[158].mxu1  ;;  %7372 = vmatprep.mubr.bf16.mxu0 %v4935_v32 }
 0x2a0   :  { %v4740_v41 = vadd.f32 %v7251_v40, %v8475_v51  ;;  %v4731_v42 = vpop.f32.mrb[159].mxu1  ;;  %7373 = vmatmul.mubr.bf16.gmra.mrb[152].mxu0 %v4936_v31  ;;  %v4877_v44 = vmax.f32 %v4737_v34, 0.0 }
 0x2a1   :  { %v4732_v11 = vadd.f32 %v8475_v51, %v4731_v42  ;;  %v4875_v46 = vmax.f32 %v4729_v25, 0.0 }
 0x2a2   :  { %v4878_v39 = vmax.f32 %v4740_v41, 0.0 }
 0x2a3   :  { %v4876_v47 = vmax.f32 %v4732_v11, 0.0 }
 0x2a4   :  { %v4938_v48 = vpack.c.bf16 %v4878_v39, %v4877_v44 }
 0x2a5   :  { %v4937_v49 = vpack.c.bf16 %v4876_v47, %v4875_v46  ;;  %v7254_v50 = vpop.f32.mrb[160].mxu1 }
 0x2a6   :  { %v4753_v52 = vadd.f32 %v7254_v50, %v8475_v51  ;;  %v4744_v54 = vpop.f32.mrb[161].mxu1 }
 0x2a7   :  { %v4745_v58 = vadd.f32 %v8475_v51, %v4744_v54  ;;  %v7255_v59 = vpop.f32.mrb[162].mxu1  ;;  %7376 = vmatprep.mubr.bf16.mxu0 %v4937_v49 }
 0x2a8   :  { %v4756_v60 = vadd.f32 %v7255_v59, %v8475_v51  ;;  %v4747_v57 = vpop.f32.mrb[163].mxu1  ;;  %7377 = vmatmul.mubr.bf16.gmra.mrb[156].mxu0 %v4938_v48  ;;  %v4881_v62 = vmax.f32 %v4753_v52, 0.0 }
 0x2a9   :  { %v4748_v37 = vadd.f32 %v8475_v51, %v4747_v57  ;;  %v4879_v61 = vmax.f32 %v4745_v58, 0.0 }
 0x2aa   :  { %v4882_v7 = vmax.f32 %v4756_v60, 0.0 }
 0x2ab   :  { %v4880_v63 = vmax.f32 %v4748_v37, 0.0 }
 0x2ac   :  { %v4940_v0 = vpack.c.bf16 %v4882_v7, %v4881_v62 }
 0x2ad   :  { %v4939_v4 = vpack.c.bf16 %v4880_v63, %v4879_v61  ;;  %v7258_v5 = vpop.f32.mrb[164].mxu1 }
 0x2ae   :  { %v4769_v6 = vadd.f32 %v7258_v5, %v8475_v51  ;;  %v4760_v36 = vpop.f32.mrb[165].mxu1 }
 0x2af   :  { %v4761_v2 = vadd.f32 %v8475_v51, %v4760_v36  ;;  %v7259_v56 = vpop.f32.mrb[166].mxu1  ;;  %7380 = vmatprep.mubr.bf16.mxu0 %v4939_v4 }
 0x2b0   :  { %v4772_v1 = vadd.f32 %v7259_v56, %v8475_v51  ;;  %v4763_v38 = vpop.f32.mrb[167].mxu1  ;;  %7381 = vmatmul.mubr.bf16.gmra.mrb[160].mxu0 %v4940_v0  ;;  %v4885_v14 = vmax.f32 %v4769_v6, 0.0 }
 0x2b1   :  { %v4764_v10 = vadd.f32 %v8475_v51, %v4763_v38  ;;  %v4883_v45 = vmax.f32 %v4761_v2, 0.0 }
 0x2b2   :  { %v4886_v43 = vmax.f32 %v4772_v1, 0.0 }
 0x2b3   :  { %v4884_v19 = vmax.f32 %v4764_v10, 0.0  ;;  %v7278_v21 = vpop.f32.mrb[56].mxu0 }
 0x2b4   :  { %v4942_v55 = vpack.c.bf16 %v4886_v43, %v4885_v14  ;;  %v5048_v8 = vpop.f32.mrb[57].mxu0  ;;  %v5057_v15 = vadd.f32 %v7278_v21, %v8592_v53 }
 0x2b5   :  { %v4941_v9 = vpack.c.bf16 %v4884_v19, %v4883_v45  ;;  %v7279_v12 = vpop.f32.mrb[58].mxu0  ;;  %v5049_v51 = vadd.f32 %v8592_v53, %v5048_v8 }
 0x2b6   :  { %v5060_v16 = vadd.f32 %v7279_v12, %v8592_v53  ;;  %v5051_v17 = vpop.f32.mrb[59].mxu0 }
 0x2b7   :  { %v5052_v18 = vadd.f32 %v8592_v53, %v5051_v17  ;;  %7384 = vmatprep.mubr.bf16.mxu0 %v4941_v9 }
 0x2b8   :  { %v6485_v20 = vpack.c.bf16 %v5060_v16, %v5057_v15  ;;  %7385 = vmatmul.mubr.bf16.gmra.mrb[164].mxu0 %v4942_v55 }
 0x2b9   :  { %v6480_v22 = vpack.c.bf16 %v5052_v18, %v5049_v51 }
 0x2ba   :  { %6757 = vst [vmem:[%s8882_s8 + $0x8] sm:$0xff] %v6485_v20  }
 0x2bb   :  { %6481 = vst [vmem:[%s8882_s8] sm:$0xff] %v6480_v22   ;;  %v7282_v23 = vpop.f32.mrb[60].mxu0 }
 0x2bc   :  { %v5064_v24 = vpop.f32.mrb[61].mxu0  ;;  %v5073_v27 = vadd.f32 %v7282_v23, %v8592_v53 }
 0x2bd   :  { %v7283_v26 = vpop.f32.mrb[62].mxu0  ;;  %v5065_v13 = vadd.f32 %v8592_v53, %v5064_v24 }
 0x2be   :  { %v5076_v28 = vadd.f32 %v7283_v26, %v8592_v53  ;;  %v5067_v3 = vpop.f32.mrb[63].mxu0 }
 0x2bf   :  { %v5068_v29 = vadd.f32 %v8592_v53, %v5067_v3 }
 0x2c0   :  { %v6495_v30 = vpack.c.bf16 %v5076_v28, %v5073_v27 }
 0x2c1   :  { %v6490_v31 = vpack.c.bf16 %v5068_v29, %v5065_v13 }
 0x2c2   :  { %6759 = vst [vmem:[%s8882_s8 + $0x18] sm:$0xff] %v6495_v30  }
 0x2c3   :  { %6758 = vst [vmem:[%s8882_s8 + $0x10] sm:$0xff] %v6490_v31   ;;  %v7286_v32 = vpop.f32.mrb[64].mxu0 }
 0x2c4   :  { %v5080_v33 = vpop.f32.mrb[65].mxu0  ;;  %v5089_v35 = vadd.f32 %v7286_v32, %v8592_v53 }
 0x2c5   :  { %v7287_v34 = vpop.f32.mrb[66].mxu0  ;;  %v5081_v41 = vadd.f32 %v8592_v53, %v5080_v33 }
 0x2c6   :  { %v5092_v25 = vadd.f32 %v7287_v34, %v8592_v53  ;;  %v5083_v40 = vpop.f32.mrb[67].mxu0 }
 0x2c7   :  { %v5084_v42 = vadd.f32 %v8592_v53, %v5083_v40 }
 0x2c8   :  { %v6505_v11 = vpack.c.bf16 %v5092_v25, %v5089_v35 }
 0x2c9   :  { %v6500_v44 = vpack.c.bf16 %v5084_v42, %v5081_v41 }
 0x2ca   :  { %6761 = vst [vmem:[%s8882_s8 + $0x28] sm:$0xff] %v6505_v11  }
 0x2cb   :  { %6760 = vst [vmem:[%s8882_s8 + $0x20] sm:$0xff] %v6500_v44   ;;  %v7290_v39 = vpop.f32.mrb[68].mxu0 }
 0x2cc   :  { %v5096_v46 = vpop.f32.mrb[69].mxu0  ;;  %v5105_v48 = vadd.f32 %v7290_v39, %v8592_v53 }
 0x2cd   :  { %v7291_v47 = vpop.f32.mrb[70].mxu0  ;;  %v5097_v52 = vadd.f32 %v8592_v53, %v5096_v46 }
 0x2ce   :  { %v5108_v49 = vadd.f32 %v7291_v47, %v8592_v53  ;;  %v5099_v50 = vpop.f32.mrb[71].mxu0 }
 0x2cf   :  { %v5100_v54 = vadd.f32 %v8592_v53, %v5099_v50 }
 0x2d0   :  { %v6515_v58 = vpack.c.bf16 %v5108_v49, %v5105_v48 }
 0x2d1   :  { %v6510_v59 = vpack.c.bf16 %v5100_v54, %v5097_v52 }
 0x2d2   :  { %6763 = vst [vmem:[%s8882_s8 + $0x38] sm:$0xff] %v6515_v58  }
 0x2d3   :  { %6762 = vst [vmem:[%s8882_s8 + $0x30] sm:$0xff] %v6510_v59   ;;  %v7294_v60 = vpop.f32.mrb[72].mxu0 }
 0x2d4   :  { %v5112_v57 = vpop.f32.mrb[73].mxu0  ;;  %v5121_v62 = vadd.f32 %v7294_v60, %v8592_v53 }
 0x2d5   :  { %v7295_v37 = vpop.f32.mrb[74].mxu0  ;;  %v5113_v63 = vadd.f32 %v8592_v53, %v5112_v57 }
 0x2d6   :  { %v5124_v7 = vadd.f32 %v7295_v37, %v8592_v53  ;;  %v5115_v61 = vpop.f32.mrb[75].mxu0 }
 0x2d7   :  { %v5116_v0 = vadd.f32 %v8592_v53, %v5115_v61 }
 0x2d8   :  { %v6525_v4 = vpack.c.bf16 %v5124_v7, %v5121_v62 }
 0x2d9   :  { %v6520_v5 = vpack.c.bf16 %v5116_v0, %v5113_v63 }
 0x2da   :  { %6765 = vst [vmem:[%s8882_s8 + $0x48] sm:$0xff] %v6525_v4  }
 0x2db   :  { %6764 = vst [vmem:[%s8882_s8 + $0x40] sm:$0xff] %v6520_v5   ;;  %v7298_v6 = vpop.f32.mrb[76].mxu0 }
 0x2dc   :  { %v5128_v36 = vpop.f32.mrb[77].mxu0  ;;  %v5137_v56 = vadd.f32 %v7298_v6, %v8592_v53 }
 0x2dd   :  { %v7299_v2 = vpop.f32.mrb[78].mxu0  ;;  %v5129_v10 = vadd.f32 %v8592_v53, %v5128_v36 }
 0x2de   :  { %v5140_v1 = vadd.f32 %v7299_v2, %v8592_v53  ;;  %v5131_v38 = vpop.f32.mrb[79].mxu0 }
 0x2df   :  { %v5132_v14 = vadd.f32 %v8592_v53, %v5131_v38 }
 0x2e0   :  { %v6535_v43 = vpack.c.bf16 %v5140_v1, %v5137_v56 }
 0x2e1   :  { %v6530_v45 = vpack.c.bf16 %v5132_v14, %v5129_v10 }
 0x2e2   :  { %6767 = vst [vmem:[%s8882_s8 + $0x58] sm:$0xff] %v6535_v43  }
 0x2e3   :  { %6766 = vst [vmem:[%s8882_s8 + $0x50] sm:$0xff] %v6530_v45   ;;  %v7302_v19 = vpop.f32.mrb[80].mxu0 }
 0x2e4   :  { %v5144_v21 = vpop.f32.mrb[81].mxu0  ;;  %v5153_v8 = vadd.f32 %v7302_v19, %v8592_v53 }
 0x2e5   :  { %v7303_v55 = vpop.f32.mrb[82].mxu0  ;;  %v5145_v15 = vadd.f32 %v8592_v53, %v5144_v21 }
 0x2e6   :  { %v5156_v9 = vadd.f32 %v7303_v55, %v8592_v53  ;;  %v5147_v12 = vpop.f32.mrb[83].mxu0 }
 0x2e7   :  { %v5148_v16 = vadd.f32 %v8592_v53, %v5147_v12 }
 0x2e8   :  { %v6545_v17 = vpack.c.bf16 %v5156_v9, %v5153_v8 }
 0x2e9   :  { %v6540_v51 = vpack.c.bf16 %v5148_v16, %v5145_v15 }
 0x2ea   :  { %6769 = vst [vmem:[%s8882_s8 + $0x68] sm:$0xff] %v6545_v17  }
 0x2eb   :  { %6768 = vst [vmem:[%s8882_s8 + $0x60] sm:$0xff] %v6540_v51   ;;  %v7306_v18 = vpop.f32.mrb[84].mxu0 }
 0x2ec   :  { %v5160_v20 = vpop.f32.mrb[85].mxu0  ;;  %v5169_v23 = vadd.f32 %v7306_v18, %v8592_v53 }
 0x2ed   :  { %v7307_v22 = vpop.f32.mrb[86].mxu0  ;;  %v5161_v27 = vadd.f32 %v8592_v53, %v5160_v20 }
 0x2ee   :  { %v5172_v24 = vadd.f32 %v7307_v22, %v8592_v53  ;;  %v5163_v26 = vpop.f32.mrb[87].mxu0 }
 0x2ef   :  { %v5164_v28 = vadd.f32 %v8592_v53, %v5163_v26 }
 0x2f0   :  { %v6555_v3 = vpack.c.bf16 %v5172_v24, %v5169_v23 }
 0x2f1   :  { %v6550_v13 = vpack.c.bf16 %v5164_v28, %v5161_v27 }
 0x2f2   :  { %6771 = vst [vmem:[%s8882_s8 + $0x78] sm:$0xff] %v6555_v3  }
 0x2f3   :  { %6770 = vst [vmem:[%s8882_s8 + $0x70] sm:$0xff] %v6550_v13   ;;  %v7310_v29 = vpop.f32.mrb[88].mxu0 }
 0x2f4   :  { %v5176_v30 = vpop.f32.mrb[89].mxu0  ;;  %v5185_v32 = vadd.f32 %v7310_v29, %v8592_v53 }
 0x2f5   :  { %v7311_v31 = vpop.f32.mrb[90].mxu0  ;;  %v5177_v35 = vadd.f32 %v8592_v53, %v5176_v30 }
 0x2f6   :  { %v5188_v33 = vadd.f32 %v7311_v31, %v8592_v53  ;;  %v5179_v34 = vpop.f32.mrb[91].mxu0 }
 0x2f7   :  { %v5180_v25 = vadd.f32 %v8592_v53, %v5179_v34 }
 0x2f8   :  { %v6565_v40 = vpack.c.bf16 %v5188_v33, %v5185_v32 }
 0x2f9   :  { %v6560_v41 = vpack.c.bf16 %v5180_v25, %v5177_v35 }
 0x2fa   :  { %6773 = vst [vmem:[%s8882_s8 + $0x88] sm:$0xff] %v6565_v40  }
 0x2fb   :  { %6772 = vst [vmem:[%s8882_s8 + $0x80] sm:$0xff] %v6560_v41   ;;  %v7314_v42 = vpop.f32.mrb[92].mxu0 }
 0x2fc   :  { %v5192_v11 = vpop.f32.mrb[93].mxu0  ;;  %v5201_v39 = vadd.f32 %v7314_v42, %v8592_v53 }
 0x2fd   :  { %v7315_v44 = vpop.f32.mrb[94].mxu0  ;;  %v5193_v48 = vadd.f32 %v8592_v53, %v5192_v11 }
 0x2fe   :  { %v5204_v46 = vadd.f32 %v7315_v44, %v8592_v53  ;;  %v5195_v47 = vpop.f32.mrb[95].mxu0 }
 0x2ff   :  { %v5196_v49 = vadd.f32 %v8592_v53, %v5195_v47 }
 0x300   :  { %v6575_v50 = vpack.c.bf16 %v5204_v46, %v5201_v39 }
 0x301   :  { %v6570_v52 = vpack.c.bf16 %v5196_v49, %v5193_v48 }
 0x302   :  { %6775 = vst [vmem:[%s8882_s8 + $0x98] sm:$0xff] %v6575_v50  }
 0x303   :  { %6774 = vst [vmem:[%s8882_s8 + $0x90] sm:$0xff] %v6570_v52   ;;  %v7318_v54 = vpop.f32.mrb[96].mxu0 }
 0x304   :  { %v5208_v58 = vpop.f32.mrb[97].mxu0  ;;  %v5217_v60 = vadd.f32 %v7318_v54, %v8592_v53 }
 0x305   :  { %v7319_v59 = vpop.f32.mrb[98].mxu0  ;;  %v5209_v62 = vadd.f32 %v8592_v53, %v5208_v58 }
 0x306   :  { %v5220_v57 = vadd.f32 %v7319_v59, %v8592_v53  ;;  %v5211_v37 = vpop.f32.mrb[99].mxu0 }
 0x307   :  { %v5212_v7 = vadd.f32 %v8592_v53, %v5211_v37 }
 0x308   :  { %v6585_v61 = vpack.c.bf16 %v5220_v57, %v5217_v60 }
 0x309   :  { %v6580_v63 = vpack.c.bf16 %v5212_v7, %v5209_v62 }
 0x30a   :  { %6777 = vst [vmem:[%s8882_s8 + $0xa8] sm:$0xff] %v6585_v61  }
 0x30b   :  { %6776 = vst [vmem:[%s8882_s8 + $0xa0] sm:$0xff] %v6580_v63   ;;  %v7322_v0 = vpop.f32.mrb[100].mxu0 }
 0x30c   :  { %v5224_v4 = vpop.f32.mrb[101].mxu0  ;;  %v5233_v6 = vadd.f32 %v7322_v0, %v8592_v53 }
 0x30d   :  { %v7323_v5 = vpop.f32.mrb[102].mxu0  ;;  %v5225_v56 = vadd.f32 %v8592_v53, %v5224_v4 }
 0x30e   :  { %v5236_v36 = vadd.f32 %v7323_v5, %v8592_v53  ;;  %v5227_v2 = vpop.f32.mrb[103].mxu0 }
 0x30f   :  { %v5228_v1 = vadd.f32 %v8592_v53, %v5227_v2 }
 0x310   :  { %v6595_v38 = vpack.c.bf16 %v5236_v36, %v5233_v6 }
 0x311   :  { %v6590_v10 = vpack.c.bf16 %v5228_v1, %v5225_v56 }
 0x312   :  { %6779 = vst [vmem:[%s8882_s8 + $0xb8] sm:$0xff] %v6595_v38  }
 0x313   :  { %6778 = vst [vmem:[%s8882_s8 + $0xb0] sm:$0xff] %v6590_v10   ;;  %v7326_v14 = vpop.f32.mrb[104].mxu0 }
 0x314   :  { %v5240_v43 = vpop.f32.mrb[105].mxu0  ;;  %v5249_v19 = vadd.f32 %v7326_v14, %v8592_v53 }
 0x315   :  { %v7327_v45 = vpop.f32.mrb[106].mxu0  ;;  %v5241_v8 = vadd.f32 %v8592_v53, %v5240_v43 }
 0x316   :  { %v5252_v21 = vadd.f32 %v7327_v45, %v8592_v53  ;;  %v5243_v55 = vpop.f32.mrb[107].mxu0 }
 0x317   :  { %v5244_v9 = vadd.f32 %v8592_v53, %v5243_v55 }
 0x318   :  { %v6605_v12 = vpack.c.bf16 %v5252_v21, %v5249_v19 }
 0x319   :  { %v6600_v15 = vpack.c.bf16 %v5244_v9, %v5241_v8 }
 0x31a   :  { %6781 = vst [vmem:[%s8882_s8 + $0xc8] sm:$0xff] %v6605_v12  }
 0x31b   :  { %6780 = vst [vmem:[%s8882_s8 + $0xc0] sm:$0xff] %v6600_v15   ;;  %v7330_v16 = vpop.f32.mrb[108].mxu0 }
 0x31c   :  { %v5256_v17 = vpop.f32.mrb[109].mxu0  ;;  %v5265_v18 = vadd.f32 %v7330_v16, %v8592_v53 }
 0x31d   :  { %v7331_v51 = vpop.f32.mrb[110].mxu0  ;;  %v5257_v23 = vadd.f32 %v8592_v53, %v5256_v17 }
 0x31e   :  { %v5268_v20 = vadd.f32 %v7331_v51, %v8592_v53  ;;  %v5259_v22 = vpop.f32.mrb[111].mxu0 }
 0x31f   :  { %v5260_v24 = vadd.f32 %v8592_v53, %v5259_v22 }
 0x320   :  { %v6615_v26 = vpack.c.bf16 %v5268_v20, %v5265_v18 }
 0x321   :  { %v6610_v27 = vpack.c.bf16 %v5260_v24, %v5257_v23 }
 0x322   :  { %6783 = vst [vmem:[%s8882_s8 + $0xd8] sm:$0xff] %v6615_v26  }
 0x323   :  { %6782 = vst [vmem:[%s8882_s8 + $0xd0] sm:$0xff] %v6610_v27   ;;  %v7334_v28 = vpop.f32.mrb[112].mxu0 }
 0x324   :  { %v5272_v3 = vpop.f32.mrb[113].mxu0  ;;  %v5281_v29 = vadd.f32 %v7334_v28, %v8592_v53 }
 0x325   :  { %v7335_v13 = vpop.f32.mrb[114].mxu0  ;;  %v5273_v32 = vadd.f32 %v8592_v53, %v5272_v3 }
 0x326   :  { %v5284_v30 = vadd.f32 %v7335_v13, %v8592_v53  ;;  %v5275_v31 = vpop.f32.mrb[115].mxu0 }
 0x327   :  { %v5276_v33 = vadd.f32 %v8592_v53, %v5275_v31 }
 0x328   :  { %v6625_v34 = vpack.c.bf16 %v5284_v30, %v5281_v29 }
 0x329   :  { %v6620_v35 = vpack.c.bf16 %v5276_v33, %v5273_v32 }
 0x32a   :  { %6785 = vst [vmem:[%s8882_s8 + $0xe8] sm:$0xff] %v6625_v34  }
 0x32b   :  { %6784 = vst [vmem:[%s8882_s8 + $0xe0] sm:$0xff] %v6620_v35   ;;  %v7338_v25 = vpop.f32.mrb[116].mxu0 }
 0x32c   :  { %v5288_v40 = vpop.f32.mrb[117].mxu0  ;;  %v5297_v42 = vadd.f32 %v7338_v25, %v8592_v53 }
 0x32d   :  { %v7339_v41 = vpop.f32.mrb[118].mxu0  ;;  %v5289_v39 = vadd.f32 %v8592_v53, %v5288_v40 }
 0x32e   :  { %v5300_v11 = vadd.f32 %v7339_v41, %v8592_v53  ;;  %v5291_v44 = vpop.f32.mrb[119].mxu0 }
 0x32f   :  { %v5292_v46 = vadd.f32 %v8592_v53, %v5291_v44 }
 0x330   :  { %v6635_v47 = vpack.c.bf16 %v5300_v11, %v5297_v42 }
 0x331   :  { %v6630_v48 = vpack.c.bf16 %v5292_v46, %v5289_v39 }
 0x332   :  { %6787 = vst [vmem:[%s8882_s8 + $0xf8] sm:$0xff] %v6635_v47  }
 0x333   :  { %6786 = vst [vmem:[%s8882_s8 + $0xf0] sm:$0xff] %v6630_v48   ;;  %v7342_v49 = vpop.f32.mrb[120].mxu0 }
 0x334   :  { %v5304_v50 = vpop.f32.mrb[121].mxu0  ;;  %v5313_v54 = vadd.f32 %v7342_v49, %v8592_v53 }
 0x335   :  { %v7343_v52 = vpop.f32.mrb[122].mxu0  ;;  %v5305_v60 = vadd.f32 %v8592_v53, %v5304_v50 }
 0x336   :  { %v5316_v58 = vadd.f32 %v7343_v52, %v8592_v53  ;;  %v5307_v59 = vpop.f32.mrb[123].mxu0 }
 0x337   :  { %v5308_v57 = vadd.f32 %v8592_v53, %v5307_v59 }
 0x338   :  { %v6645_v37 = vpack.c.bf16 %v5316_v58, %v5313_v54 }
 0x339   :  { %v6640_v62 = vpack.c.bf16 %v5308_v57, %v5305_v60 }
 0x33a   :  { %6789 = vst [vmem:[%s8882_s8 + $0x108] sm:$0xff] %v6645_v37  }
 0x33b   :  { %6788 = vst [vmem:[%s8882_s8 + $0x100] sm:$0xff] %v6640_v62   ;;  %v7346_v7 = vpop.f32.mrb[124].mxu0 }
 0x33c   :  { %v5320_v61 = vpop.f32.mrb[125].mxu0  ;;  %v5329_v0 = vadd.f32 %v7346_v7, %v8592_v53 }
 0x33d   :  { %v7347_v63 = vpop.f32.mrb[126].mxu0  ;;  %v5321_v6 = vadd.f32 %v8592_v53, %v5320_v61 }
 0x33e   :  { %v5332_v4 = vadd.f32 %v7347_v63, %v8592_v53  ;;  %v5323_v5 = vpop.f32.mrb[127].mxu0 }
 0x33f   :  { %v5324_v36 = vadd.f32 %v8592_v53, %v5323_v5 }
 0x340   :  { %v6655_v2 = vpack.c.bf16 %v5332_v4, %v5329_v0 }
 0x341   :  { %v6650_v56 = vpack.c.bf16 %v5324_v36, %v5321_v6 }
 0x342   :  { %6791 = vst [vmem:[%s8882_s8 + $0x118] sm:$0xff] %v6655_v2  }
 0x343   :  { %6790 = vst [vmem:[%s8882_s8 + $0x110] sm:$0xff] %v6650_v56   ;;  %v7350_v1 = vpop.f32.mrb[128].mxu0 }
 0x344   :  { %v5336_v38 = vpop.f32.mrb[129].mxu0  ;;  %v5345_v14 = vadd.f32 %v7350_v1, %v8592_v53 }
 0x345   :  { %v7351_v10 = vpop.f32.mrb[130].mxu0  ;;  %v5337_v19 = vadd.f32 %v8592_v53, %v5336_v38 }
 0x346   :  { %v5348_v43 = vadd.f32 %v7351_v10, %v8592_v53  ;;  %v5339_v45 = vpop.f32.mrb[131].mxu0 }
 0x347   :  { %v5340_v21 = vadd.f32 %v8592_v53, %v5339_v45 }
 0x348   :  { %v6665_v55 = vpack.c.bf16 %v5348_v43, %v5345_v14 }
 0x349   :  { %v6660_v8 = vpack.c.bf16 %v5340_v21, %v5337_v19 }
 0x34a   :  { %6793 = vst [vmem:[%s8882_s8 + $0x128] sm:$0xff] %v6665_v55  }
 0x34b   :  { %6792 = vst [vmem:[%s8882_s8 + $0x120] sm:$0xff] %v6660_v8   ;;  %v7354_v9 = vpop.f32.mrb[132].mxu0 }
 0x34c   :  { %v5352_v12 = vpop.f32.mrb[133].mxu0  ;;  %v5361_v16 = vadd.f32 %v7354_v9, %v8592_v53 }
 0x34d   :  { %v7355_v15 = vpop.f32.mrb[134].mxu0  ;;  %v5353_v18 = vadd.f32 %v8592_v53, %v5352_v12 }
 0x34e   :  { %v5364_v17 = vadd.f32 %v7355_v15, %v8592_v53  ;;  %v5355_v51 = vpop.f32.mrb[135].mxu0 }
 0x34f   :  { %v5356_v20 = vadd.f32 %v8592_v53, %v5355_v51 }
 0x350   :  { %v6675_v22 = vpack.c.bf16 %v5364_v17, %v5361_v16 }
 0x351   :  { %v6670_v23 = vpack.c.bf16 %v5356_v20, %v5353_v18 }
 0x352   :  { %6795 = vst [vmem:[%s8882_s8 + $0x138] sm:$0xff] %v6675_v22  }
 0x353   :  { %6794 = vst [vmem:[%s8882_s8 + $0x130] sm:$0xff] %v6670_v23   ;;  %v7358_v24 = vpop.f32.mrb[136].mxu0 }
 0x354   :  { %v5368_v26 = vpop.f32.mrb[137].mxu0  ;;  %v5377_v28 = vadd.f32 %v7358_v24, %v8592_v53 }
 0x355   :  { %v7359_v27 = vpop.f32.mrb[138].mxu0  ;;  %v5369_v29 = vadd.f32 %v8592_v53, %v5368_v26 }
 0x356   :  { %v5380_v3 = vadd.f32 %v7359_v27, %v8592_v53  ;;  %v5371_v13 = vpop.f32.mrb[139].mxu0 }
 0x357   :  { %v5372_v30 = vadd.f32 %v8592_v53, %v5371_v13 }
 0x358   :  { %v6685_v31 = vpack.c.bf16 %v5380_v3, %v5377_v28 }
 0x359   :  { %v6680_v32 = vpack.c.bf16 %v5372_v30, %v5369_v29 }
 0x35a   :  { %6797 = vst [vmem:[%s8882_s8 + $0x148] sm:$0xff] %v6685_v31  }
 0x35b   :  { %6796 = vst [vmem:[%s8882_s8 + $0x140] sm:$0xff] %v6680_v32   ;;  %v7362_v33 = vpop.f32.mrb[140].mxu0 }
 0x35c   :  { %v5384_v34 = vpop.f32.mrb[141].mxu0  ;;  %v5393_v25 = vadd.f32 %v7362_v33, %v8592_v53 }
 0x35d   :  { %v7363_v35 = vpop.f32.mrb[142].mxu0  ;;  %v5385_v42 = vadd.f32 %v8592_v53, %v5384_v34 }
 0x35e   :  { %v5396_v40 = vadd.f32 %v7363_v35, %v8592_v53  ;;  %v5387_v41 = vpop.f32.mrb[143].mxu0 }
 0x35f   :  { %v5388_v11 = vadd.f32 %v8592_v53, %v5387_v41 }
 0x360   :  { %v6695_v44 = vpack.c.bf16 %v5396_v40, %v5393_v25 }
 0x361   :  { %v6690_v39 = vpack.c.bf16 %v5388_v11, %v5385_v42 }
 0x362   :  { %6799 = vst [vmem:[%s8882_s8 + $0x158] sm:$0xff] %v6695_v44  }
 0x363   :  { %6798 = vst [vmem:[%s8882_s8 + $0x150] sm:$0xff] %v6690_v39   ;;  %v7366_v46 = vpop.f32.mrb[144].mxu0 }
 0x364   :  { %v5400_v47 = vpop.f32.mrb[145].mxu0  ;;  %v5409_v49 = vadd.f32 %v7366_v46, %v8592_v53 }
 0x365   :  { %v7367_v48 = vpop.f32.mrb[146].mxu0  ;;  %v5401_v54 = vadd.f32 %v8592_v53, %v5400_v47 }
 0x366   :  { %v5412_v50 = vadd.f32 %v7367_v48, %v8592_v53  ;;  %v5403_v52 = vpop.f32.mrb[147].mxu0 }
 0x367   :  { %v5404_v58 = vadd.f32 %v8592_v53, %v5403_v52 }
 0x368   :  { %v6705_v59 = vpack.c.bf16 %v5412_v50, %v5409_v49 }
 0x369   :  { %v6700_v60 = vpack.c.bf16 %v5404_v58, %v5401_v54 }
 0x36a   :  { %6801 = vst [vmem:[%s8882_s8 + $0x168] sm:$0xff] %v6705_v59  }
 0x36b   :  { %6800 = vst [vmem:[%s8882_s8 + $0x160] sm:$0xff] %v6700_v60   ;;  %v7370_v57 = vpop.f32.mrb[148].mxu0 }
 0x36c   :  { %v5416_v37 = vpop.f32.mrb[149].mxu0  ;;  %v5425_v7 = vadd.f32 %v7370_v57, %v8592_v53 }
 0x36d   :  { %v7371_v62 = vpop.f32.mrb[150].mxu0  ;;  %v5417_v0 = vadd.f32 %v8592_v53, %v5416_v37 }
 0x36e   :  { %v5428_v61 = vadd.f32 %v7371_v62, %v8592_v53  ;;  %v5419_v63 = vpop.f32.mrb[151].mxu0 }
 0x36f   :  { %v5420_v4 = vadd.f32 %v8592_v53, %v5419_v63 }
 0x370   :  { %v6715_v5 = vpack.c.bf16 %v5428_v61, %v5425_v7 }
 0x371   :  { %v6710_v6 = vpack.c.bf16 %v5420_v4, %v5417_v0 }
 0x372   :  { %6803 = vst [vmem:[%s8882_s8 + $0x178] sm:$0xff] %v6715_v5  }
 0x373   :  { %6802 = vst [vmem:[%s8882_s8 + $0x170] sm:$0xff] %v6710_v6   ;;  %v7374_v36 = vpop.f32.mrb[152].mxu0 }
 0x374   :  { %v5432_v2 = vpop.f32.mrb[153].mxu0  ;;  %v5441_v1 = vadd.f32 %v7374_v36, %v8592_v53 }
 0x375   :  { %v7375_v56 = vpop.f32.mrb[154].mxu0  ;;  %v5433_v14 = vadd.f32 %v8592_v53, %v5432_v2 }
 0x376   :  { %v5444_v38 = vadd.f32 %v7375_v56, %v8592_v53  ;;  %v5435_v10 = vpop.f32.mrb[155].mxu0 }
 0x377   :  { %v5436_v43 = vadd.f32 %v8592_v53, %v5435_v10 }
 0x378   :  { %v6725_v45 = vpack.c.bf16 %v5444_v38, %v5441_v1 }
 0x379   :  { %v6720_v19 = vpack.c.bf16 %v5436_v43, %v5433_v14 }
 0x37a   :  { %6805 = vst [vmem:[%s8882_s8 + $0x188] sm:$0xff] %v6725_v45  }
 0x37b   :  { %6804 = vst [vmem:[%s8882_s8 + $0x180] sm:$0xff] %v6720_v19   ;;  %v7378_v21 = vpop.f32.mrb[156].mxu0 }
 0x37c   :  { %v5448_v55 = vpop.f32.mrb[157].mxu0  ;;  %v5457_v9 = vadd.f32 %v7378_v21, %v8592_v53 }
 0x37d   :  { %v7379_v8 = vpop.f32.mrb[158].mxu0  ;;  %v5449_v16 = vadd.f32 %v8592_v53, %v5448_v55 }
 0x37e   :  { %v5460_v12 = vadd.f32 %v7379_v8, %v8592_v53  ;;  %v5451_v15 = vpop.f32.mrb[159].mxu0 }
 0x37f   :  { %v5452_v17 = vadd.f32 %v8592_v53, %v5451_v15 }
 0x380   :  { %v6735_v51 = vpack.c.bf16 %v5460_v12, %v5457_v9 }
 0x381   :  { %v6730_v18 = vpack.c.bf16 %v5452_v17, %v5449_v16 }
 0x382   :  { %6807 = vst [vmem:[%s8882_s8 + $0x198] sm:$0xff] %v6735_v51  }
 0x383   :  { %6806 = vst [vmem:[%s8882_s8 + $0x190] sm:$0xff] %v6730_v18   ;;  %v7382_v20 = vpop.f32.mrb[160].mxu0 }
 0x384   :  { %v5464_v22 = vpop.f32.mrb[161].mxu0  ;;  %v5473_v24 = vadd.f32 %v7382_v20, %v8592_v53 }
 0x385   :  { %v7383_v23 = vpop.f32.mrb[162].mxu0  ;;  %v5465_v28 = vadd.f32 %v8592_v53, %v5464_v22 }
 0x386   :  { %v5476_v26 = vadd.f32 %v7383_v23, %v8592_v53  ;;  %v5467_v27 = vpop.f32.mrb[163].mxu0 }
 0x387   :  { %v5468_v3 = vadd.f32 %v8592_v53, %v5467_v27 }
 0x388   :  { %v6745_v13 = vpack.c.bf16 %v5476_v26, %v5473_v24 }
 0x389   :  { %v6740_v29 = vpack.c.bf16 %v5468_v3, %v5465_v28 }
 0x38a   :  { %6809 = vst [vmem:[%s8882_s8 + $0x1a8] sm:$0xff] %v6745_v13  }
 0x38b   :  { %6808 = vst [vmem:[%s8882_s8 + $0x1a0] sm:$0xff] %v6740_v29   ;;  %v7386_v30 = vpop.f32.mrb[164].mxu0 }
 0x38c   :  { %v5480_v31 = vpop.f32.mrb[165].mxu0  ;;  %v5489_v33 = vadd.f32 %v7386_v30, %v8592_v53 }
 0x38d   :  { %v7387_v32 = vpop.f32.mrb[166].mxu0  ;;  %v5481_v25 = vadd.f32 %v8592_v53, %v5480_v31 }
 0x38e   :  { %v5492_v34 = vadd.f32 %v7387_v32, %v8592_v53  ;;  %v5483_v35 = vpop.f32.mrb[167].mxu0 }
 0x38f   :  { %v5484_v40 = vadd.f32 %v8592_v53, %v5483_v35 }
 0x390   :  { %v6755_v41 = vpack.c.bf16 %v5492_v34, %v5489_v33 }
 0x391   :  { %v6750_v42 = vpack.c.bf16 %v5484_v40, %v5481_v25 }
 0x392   :  { %6811 = vst [vmem:[%s8882_s8 + $0x1b8] sm:$0xff] %v6755_v41  }
 0x393   :  { %6810 = vst [vmem:[%s8882_s8 + $0x1b0] sm:$0xff] %v6750_v42  }

</bundles_post_ra>
